<compile_context>
chip_gen: v7x
topology: tpu7x:2x2x1
jax: 0.10.0
libtpu: 0.0.40
codegen_flags: <defaults>
</compile_context>

<pallas_src>
import functools

import jax
import jax.numpy as jnp
from jax import lax
from jax.experimental import pallas as pl
from jax.experimental.pallas import tpu as pltpu

EPS = 1e-5  # torch.nn.BatchNorm3d default


def _round_up(x, m):
    return (x + m - 1) // m * m


# ----------------------------------------------------------------------------
# Fused Pallas kernel: conv1(+BN+ReLU) -> conv2(+BN+ReLU) -> +residual
# One batch sample per grid step; h1 stays in a padded VMEM scratch.
# ----------------------------------------------------------------------------
def _make_fused_kernel(*, D, H, W, CIN_P, COUT, PF, mm_dtype):
    Wp = W + 2                 # padded row width (zero column on each side)
    L = H * Wp                 # over-computed rows per depth slice
    K1 = 3 * CIN_P             # contraction depth per (dh, dw) group, conv1
    K2 = 3 * COUT              # contraction depth per (dh, dw) group, conv2
    # group g = kh*3 + kw ; window lane start for (dh, dw) = (kh-1, kw-1)
    starts = tuple(PF + dh * Wp + dw for dh in (-1, 0, 1) for dw in (-1, 0, 1))

    def kernel(xp_ref, w1_ref, b1_ref, w2_ref, b2_ref, mask_ref, o_ref, h1_ref):
        # xp_ref : ((D+2)*CIN_P, STOT) f32   zero-padded input, row = d_pad*CIN_P + c
        # w1_ref : (9, COUT, 3*CIN_P) mm_dtype   (BN folded, col = kd*CIN_P + c)
        # b1_ref : (COUT, 1) f32                 (bias + BN shift folded)
        # w2_ref : (9, COUT, 3*COUT) mm_dtype
        # b2_ref : (COUT, 1) f32
        # mask_ref: (1, L) f32   1.0 on real (h, w) columns, 0.0 on row-pad columns
        # o_ref  : (D, COUT, L) f32
        # h1_ref : ((D+2)*COUT, STOT) f32 VMEM scratch (padded intermediate)

        # Zero the scratch so every halo / pad region of h1 reads as zero.
        h1_ref[...] = jnp.zeros_like(h1_ref)

        mask = mask_ref[...]          # hoisted, loop-invariant
        b1 = b1_ref[...]
        b2 = b2_ref[...]

        # ---- pass 1: h1 = ReLU(BN(conv1(x))) into the padded VMEM scratch ----
        def conv1_body(d, carry):
            r0 = pl.multiple_of(d * CIN_P, CIN_P)   # covers orig depths d-1, d, d+1
            acc = jnp.zeros((COUT, L), jnp.float32)
            for g in range(9):                      # 9 matmuls, K = 3*CIN_P
                win = xp_ref[pl.ds(r0, K1), pl.ds(starts[g], L)]
                acc = acc + jnp.dot(w1_ref[g], win.astype(mm_dtype),
                                    preferred_element_type=jnp.float32)
            y = jnp.maximum(acc + b1, 0.0) * mask   # bias+BN, ReLU, zero pad cols
            w0 = pl.multiple_of((d + 1) * COUT, COUT)
            h1_ref[pl.ds(w0, COUT), pl.ds(PF, L)] = y
            return carry

        lax.fori_loop(0, D, conv1_body, 0)

        # ---- pass 2: out = ReLU(BN(conv2(h1))) + h1 -------------------------
        def conv2_body(d, carry):
            r0 = pl.multiple_of(d * COUT, COUT)
            acc = jnp.zeros((COUT, L), jnp.float32)
            for g in range(9):                      # 9 matmuls, K = 3*COUT
                win = h1_ref[pl.ds(r0, K2), pl.ds(starts[g], L)]
                acc = acc + jnp.dot(w2_ref[g], win.astype(mm_dtype),
                                    preferred_element_type=jnp.float32)
            y = jnp.maximum(acc + b2, 0.0)
            # residual: centre depth slab of h1 (f32, pad columns already zero)
            y = y + h1_ref[pl.ds(r0 + COUT, COUT), pl.ds(PF, L)]
            o_ref[d] = y
            return carry

        lax.fori_loop(0, D, conv2_body, 0)

    return kernel


# ----------------------------------------------------------------------------
# Parameter folding / layout glue (tiny tensors, plain JAX)
# ----------------------------------------------------------------------------
def _fold_conv_bn(w, b, gamma, beta, rmean, rvar, *, with_bn, eps=EPS):
    """Fold eval-mode BatchNorm into the conv weight / bias (exact algebra)."""
    if with_bn:
        s = gamma / jnp.sqrt(rvar + eps)
        w = w * s[:, None, None, None, None]
        b = (b - rmean) * s + beta
    return w.astype(jnp.float32), b.astype(jnp.float32)


def _weight_groups(w, cin_pad, mm_dtype):
    """(Cout, Cin, 3,3,3) -> (9, Cout, 3*cin_pad); g = kh*3+kw, col = kd*cin_pad+c."""
    cout, cin = w.shape[0], w.shape[1]
    if cin_pad > cin:
        w = jnp.pad(w, ((0, 0), (0, cin_pad - cin), (0, 0), (0, 0), (0, 0)))
    wg = jnp.transpose(w, (3, 4, 0, 2, 1))          # (kh, kw, O, kd, c)
    return wg.reshape(9, cout, 3 * cin_pad).astype(mm_dtype)


def _prep_input(x, cin_pad, PF, STOT):
    """(N, C, D, H, W) -> (N, (D+2)*cin_pad, STOT) zero-padded, channels on sublanes,
    spatial plane flattened with per-row zero columns + halo, on lanes."""
    N, C, D, H, W = x.shape
    Wp = W + 2
    xt = jnp.transpose(x, (0, 2, 1, 3, 4))                               # (N,D,C,H,W)
    xt = jnp.pad(xt, ((0, 0), (1, 1), (0, cin_pad - C), (0, 0), (1, 1)))  # depth/C/W pads
    xt = xt.reshape(N, D + 2, cin_pad, H * Wp)
    xt = jnp.pad(xt, ((0, 0), (0, 0), (0, 0), (PF, STOT - PF - H * Wp)))  # flat halo
    return xt.reshape(N, (D + 2) * cin_pad, STOT)


def _col_mask(H, W):
    """(1, H*(W+2)) f32: 1.0 on real columns, 0.0 on the per-row pad columns."""
    Wp = W + 2
    col = jnp.arange(H * Wp, dtype=jnp.int32) % Wp
    return ((col >= 1) & (col <= W)).astype(jnp.float32).reshape(1, H * Wp)


def conv_block_forward(x, params, *, with_bn=True, mm_dtype=jnp.bfloat16):
    """Pallas path.  x: (N, ch_in, D, H, W) f32 -> (N, ch_out, D, H, W) f32."""
    N, Cin, D, H, W = x.shape
    Cout = params["w1"].shape[0]
    assert Cout % 8 == 0, "this kernel assumes ch_out is a multiple of 8"
    Wp = W + 2
    L = H * Wp                              # over-computed rows per depth slice
    PF = Wp + 1                             # front halo on the flattened plane
    STOT = _round_up(L + 2 * Wp + 2, 8)     # total padded lane width
    CIN_P = _round_up(Cin, 8)               # sublane-aligned input channels

    w1, b1 = _fold_conv_bn(params["w1"], params["b1"], params.get("gamma1"),
                           params.get("beta1"), params.get("rm1"),
                           params.get("rv1"), with_bn=with_bn)
    w2, b2 = _fold_conv_bn(params["w2"], params["b2"], params.get("gamma2"),
                           params.get("beta2"), params.get("rm2"),
                           params.get("rv2"), with_bn=with_bn)

    xp = _prep_input(x, CIN_P, PF, STOT)
    w1g = _weight_groups(w1, CIN_P, mm_dtype)
    w2g = _weight_groups(w2, Cout, mm_dtype)
    mask = _col_mask(H, W)

    kernel = _make_fused_kernel(D=D, H=H, W=W, CIN_P=CIN_P, COUT=Cout,
                                PF=PF, mm_dtype=mm_dtype)

    flops = 2 * 27 * N * D * H * W * (Cin * Cout + Cout * Cout)
    bytes_accessed = (xp.size * xp.dtype.itemsize
                      + N * D * Cout * L * 4
                      + w1g.size * w1g.dtype.itemsize
                      + w2g.size * w2g.dtype.itemsize
                      + 2 * Cout * 4 + mask.size * 4)

    out = pl.pallas_call(
        kernel,
        out_shape=jax.ShapeDtypeStruct((N, D, Cout, L), jnp.float32),
        grid=(N,),
        in_specs=[
            pl.BlockSpec((None, (D + 2) * CIN_P, STOT), lambda n: (n, 0, 0)),
            pl.BlockSpec((9, Cout, 3 * CIN_P), lambda n: (0, 0, 0)),
            pl.BlockSpec((Cout, 1), lambda n: (0, 0)),
            pl.BlockSpec((9, Cout, 3 * Cout), lambda n: (0, 0, 0)),
            pl.BlockSpec((Cout, 1), lambda n: (0, 0)),
            pl.BlockSpec((1, L), lambda n: (0, 0)),
        ],
        out_specs=pl.BlockSpec((None, D, Cout, L), lambda n: (n, 0, 0, 0)),
        scratch_shapes=[pltpu.VMEM(((D + 2) * Cout, STOT), jnp.float32)],
        compiler_params=pltpu.CompilerParams(
            dimension_semantics=("parallel",),
            vmem_limit_bytes=32 * 1024 * 1024,
        ),
        cost_estimate=pl.CostEstimate(flops=flops, transcendentals=0,
                                      bytes_accessed=bytes_accessed),
    )(xp, w1g, b1.reshape(Cout, 1), w2g, b2.reshape(Cout, 1), mask)

    # drop the per-row pad columns and return NCDHW
    out = out.reshape(N, D, Cout, H, Wp)[..., 1:W + 1]
    return jnp.transpose(out, (0, 2, 1, 3, 4))


# ----------------------------------------------------------------------------
# Pure-JAX references
# ----------------------------------------------------------------------------
def conv_block_reference(x, params, *, with_bn=True, eps=EPS):
    """Exact f32 reference mirroring the PyTorch module (eval-mode BN)."""
    def conv(y, w, b):
        y = lax.conv_general_dilated(
            y, w, window_strides=(1, 1, 1), padding=[(1, 1)] * 3,
            dimension_numbers=("NCDHW", "OIDHW", "NCDHW"),
            precision=lax.Precision.HIGHEST)
        return y + b.reshape(1, -1, 1, 1, 1)

    def bn(y, g, bta, rm, rv):
        c = lambda v: v.reshape(1, -1, 1, 1, 1)
        return (y - c(rm)) / jnp.sqrt(c(rv) + eps) * c(g) + c(bta)

    h = conv(x, params["w1"], params["b1"])
    if with_bn:
        h = bn(h, params["gamma1"], params["beta1"], params["rm1"], params["rv1"])
    h = jnp.maximum(h, 0.0)
    z = conv(h, params["w2"], params["b2"])
    if with_bn:
        z = bn(z, params["gamma2"], params["beta2"], params["rm2"], params["rv2"])
    z = jnp.maximum(z, 0.0)
    return z + h


def conv_block_reference_lowprec(x, params, *, with_bn=True,
                                 mm_dtype=jnp.bfloat16):
    """Reference reproducing the kernel arithmetic: folded BN, matmul operands
    rounded to mm_dtype, f32 accumulation / epilogue, f32 residual."""
    rnd = lambda a: a.astype(mm_dtype).astype(jnp.float32)

    def conv(y, w):
        return lax.conv_general_dilated(
            rnd(y), rnd(w), window_strides=(1, 1, 1), padding=[(1, 1)] * 3,
            dimension_numbers=("NCDHW", "OIDHW", "NCDHW"),
            precision=lax.Precision.HIGHEST)

    w1, b1 = _fold_conv_bn(params["w1"], params["b1"], params.get("gamma1"),
                           params.get("beta1"), params.get("rm1"),
                           params.get("rv1"), with_bn=with_bn)
    w2, b2 = _fold_conv_bn(params["w2"], params["b2"], params.get("gamma2"),
                           params.get("beta2"), params.get("rm2"),
                           params.get("rv2"), with_bn=with_bn)
    h = jnp.maximum(conv(x, w1) + b1.reshape(1, -1, 1, 1, 1), 0.0)
    z = jnp.maximum(conv(h, w2) + b2.reshape(1, -1, 1, 1, 1), 0.0)
    return z + h


# ----------------------------------------------------------------------------
# Main
# ----------------------------------------------------------------------------
if __name__ == "__main__":
    # conv_block(ch_in=4, ch_out=32, with_bn=True), input (2, 4, 16, 16, 16)
    N, Cin, Cout = 2, 4, 32
    D = H = W = 16

    key = jax.random.PRNGKey(0)
    ks = jax.random.split(key, 13)
    x = jax.random.normal(ks[0], (N, Cin, D, H, W), jnp.float32)
    params = {
        "w1": 0.1 * jax.random.normal(ks[1], (Cout, Cin, 3, 3, 3), jnp.float32),
        "b1": 0.1 * jax.random.normal(ks[2], (Cout,), jnp.float32),
        "gamma1": 1.0 + 0.1 * jax.random.normal(ks[3], (Cout,), jnp.float32),
        "beta1": 0.1 * jax.random.normal(ks[4], (Cout,), jnp.float32),
        "rm1": 0.1 * jax.random.normal(ks[5], (Cout,), jnp.float32),
        "rv1": 0.5 + jax.random.uniform(ks[6], (Cout,), jnp.float32),
        "w2": 0.1 * jax.random.normal(ks[7], (Cout, Cout, 3, 3, 3), jnp.float32),
        "b2": 0.1 * jax.random.normal(ks[8], (Cout,), jnp.float32),
        "gamma2": 1.0 + 0.1 * jax.random.normal(ks[9], (Cout,), jnp.float32),
        "beta2": 0.1 * jax.random.normal(ks[10], (Cout,), jnp.float32),
        "rm2": 0.1 * jax.random.normal(ks[11], (Cout,), jnp.float32),
        "rv2": 0.5 + jax.random.uniform(ks[12], (Cout,), jnp.float32),
    }

    fwd = jax.jit(functools.partial(conv_block_forward, with_bn=True,
                                    mm_dtype=jnp.bfloat16))
    out = jax.block_until_ready(fwd(x, params))
    assert out.shape == (N, Cout, D, H, W), out.shape

    ref = jax.block_until_ready(conv_block_reference(x, params, with_bn=True))
    ref_lp = jax.block_until_ready(
        conv_block_reference_lowprec(x, params, with_bn=True,
                                     mm_dtype=jnp.bfloat16))

    scale = float(jnp.max(jnp.abs(ref)))
    err_true = float(jnp.max(jnp.abs(out - ref)))
    err_lp = float(jnp.max(jnp.abs(out - ref_lp)))

    # Tight check vs the arithmetic-equivalent (bf16-operand) reference, and a
    # bf16-appropriate relative check vs the exact f32 reference.
    if err_lp > 2e-2:
        raise AssertionError(f"mismatch vs bf16-emulated reference: {err_lp}")
    if err_true > 3e-2 * max(1.0, scale):
        raise AssertionError(
            f"mismatch vs f32 reference: {err_true} (scale {scale})")

    print("KERNEL_OK")
</pallas_src>

<mosaic_0001>
module attributes {stable_mosaic.version = 11 : i64} {
  func.func @kernel(%arg0: i32, %arg1: memref<1x144x328xf32, #tpu.memory_space<vmem>>, %arg2: memref<9x32x24xbf16, #tpu.memory_space<vmem>>, %arg3: memref<32x1xf32, #tpu.memory_space<vmem>>, %arg4: memref<9x32x96xbf16, #tpu.memory_space<vmem>>, %arg5: memref<32x1xf32, #tpu.memory_space<vmem>>, %arg6: memref<1x288xf32, #tpu.memory_space<vmem>>, %arg7: memref<1x16x32x288xf32, #tpu.memory_space<vmem>>, %arg8: memref<576x328xf32, #tpu.memory_space<vmem>>) attributes {dimension_semantics = [#tpu.dimension_semantics<parallel>], iteration_bounds = array<i64: 2>, scalar_prefetch = 0 : i64, scratch_operands = 1 : i64, tpu.core_type = #tpu.core_type<tc>, window_params = [{transform_indices = @transform_0, window_bounds = array<i64: 1, 144, 328>}, {pipeline_mode = #tpu.pipeline_mode<synchronous>, transform_indices = @transform_1, window_bounds = array<i64: 9, 32, 24>}, {pipeline_mode = #tpu.pipeline_mode<synchronous>, transform_indices = @transform_2, window_bounds = array<i64: 32, 1>}, {pipeline_mode = #tpu.pipeline_mode<synchronous>, transform_indices = @transform_3, window_bounds = array<i64: 9, 32, 96>}, {pipeline_mode = #tpu.pipeline_mode<synchronous>, transform_indices = @transform_4, window_bounds = array<i64: 32, 1>}, {pipeline_mode = #tpu.pipeline_mode<synchronous>, transform_indices = @transform_5, window_bounds = array<i64: 1, 288>}, {transform_indices = @transform_6, window_bounds = array<i64: 1, 16, 32, 288>}]} {
    %cst = arith.constant 0.000000e+00 : f32
    %0 = vector.broadcast %cst : f32 to vector<576x328xf32>
    %c0 = arith.constant 0 : index
    %c0_0 = arith.constant 0 : index
    %1 = vector.load %arg8[%c0, %c0_0] : memref<576x328xf32, #tpu.memory_space<vmem>>, vector<576x328xf32>
    tpu.vector_store %arg8[%c0, %c0_0], %0 {strides = array<i32>} : memref<576x328xf32, #tpu.memory_space<vmem>>, vector<576x328xf32>,
    %c0_1 = arith.constant 0 : index
    %c0_2 = arith.constant 0 : index
    %2 = vector.load %arg6[%c0_1, %c0_2] : memref<1x288xf32, #tpu.memory_space<vmem>>, vector<1x288xf32>
    %c0_3 = arith.constant 0 : index
    %c0_4 = arith.constant 0 : index
    %3 = vector.load %arg3[%c0_3, %c0_4] : memref<32x1xf32, #tpu.memory_space<vmem>>, vector<32x1xf32>
    %c0_5 = arith.constant 0 : index
    %c0_6 = arith.constant 0 : index
    %4 = vector.load %arg5[%c0_5, %c0_6] : memref<32x1xf32, #tpu.memory_space<vmem>>, vector<32x1xf32>
    %c0_i32 = arith.constant 0 : i32
    %c16_i32 = arith.constant 16 : i32
    %5 = arith.addi %c0_i32, %c16_i32 : i32
    %c1_i32 = arith.constant 1 : i32
    scf.for %arg9 = %c0_i32 to %5 step %c1_i32  : i32 {
      %c8_i32 = arith.constant 8 : i32
      %7 = arith.muli %arg9, %c8_i32 : i32
      %8 = tpu.assume_multiple %7, 8 : i32
      %cst_12 = arith.constant 0.000000e+00 : f32
      %9 = vector.broadcast %cst_12 : f32 to vector<32x288xf32>
      %c0_13 = arith.constant 0 : index
      %10 = arith.index_cast %8 : i32 to index
      %c0_14 = arith.constant 0 : index
      %11 = vector.load %arg1[%c0_13, %10, %c0_14] : memref<1x144x328xf32, #tpu.memory_space<vmem>>, vector<1x24x288xf32>
      %12 = vector.shape_cast %11 : vector<1x24x288xf32> to vector<24x288xf32>
      %c0_15 = arith.constant 0 : index
      %c0_16 = arith.constant 0 : index
      %c0_17 = arith.constant 0 : index
      %13 = vector.load %arg2[%c0_15, %c0_16, %c0_17] : memref<9x32x24xbf16, #tpu.memory_space<vmem>>, vector<1x32x24xbf16>
      %14 = vector.shape_cast %13 : vector<1x32x24xbf16> to vector<32x24xbf16>
      %15 = arith.truncf %12 : vector<24x288xf32> to vector<24x288xbf16>
      %cst_18 = arith.constant dense<0.000000e+00> : vector<32x288xf32>
      %16 = tpu.matmul %14, %15, %cst_18 {dimension_numbers = #tpu.dot_dimension_numbers<[1], [0], [0], [1], [0, 0, 1, 1], [], []>} : vector<32x24xbf16>, vector<24x288xbf16>, vector<32x288xf32> -> vector<32x288xf32>
      %17 = arith.addf %9, %16 : vector<32x288xf32>
      %c0_19 = arith.constant 0 : index
      %18 = arith.index_cast %8 : i32 to index
      %c1 = arith.constant 1 : index
      %19 = vector.load %arg1[%c0_19, %18, %c1] : memref<1x144x328xf32, #tpu.memory_space<vmem>>, vector<1x24x288xf32>
      %20 = vector.shape_cast %19 : vector<1x24x288xf32> to vector<24x288xf32>
      %c1_20 = arith.constant 1 : index
      %c0_21 = arith.constant 0 : index
      %c0_22 = arith.constant 0 : index
      %21 = vector.load %arg2[%c1_20, %c0_21, %c0_22] : memref<9x32x24xbf16, #tpu.memory_space<vmem>>, vector<1x32x24xbf16>
      %22 = vector.shape_cast %21 : vector<1x32x24xbf16> to vector<32x24xbf16>
      %23 = arith.truncf %20 : vector<24x288xf32> to vector<24x288xbf16>
      %cst_23 = arith.constant dense<0.000000e+00> : vector<32x288xf32>
      %24 = tpu.matmul %22, %23, %cst_23 {dimension_numbers = #tpu.dot_dimension_numbers<[1], [0], [0], [1], [0, 0, 1, 1], [], []>} : vector<32x24xbf16>, vector<24x288xbf16>, vector<32x288xf32> -> vector<32x288xf32>
      %25 = arith.addf %17, %24 : vector<32x288xf32>
      %c0_24 = arith.constant 0 : index
      %26 = arith.index_cast %8 : i32 to index
      %c2 = arith.constant 2 : index
      %27 = vector.load %arg1[%c0_24, %26, %c2] : memref<1x144x328xf32, #tpu.memory_space<vmem>>, vector<1x24x288xf32>
      %28 = vector.shape_cast %27 : vector<1x24x288xf32> to vector<24x288xf32>
      %c2_25 = arith.constant 2 : index
      %c0_26 = arith.constant 0 : index
      %c0_27 = arith.constant 0 : index
      %29 = vector.load %arg2[%c2_25, %c0_26, %c0_27] : memref<9x32x24xbf16, #tpu.memory_space<vmem>>, vector<1x32x24xbf16>
      %30 = vector.shape_cast %29 : vector<1x32x24xbf16> to vector<32x24xbf16>
      %31 = arith.truncf %28 : vector<24x288xf32> to vector<24x288xbf16>
      %cst_28 = arith.constant dense<0.000000e+00> : vector<32x288xf32>
      %32 = tpu.matmul %30, %31, %cst_28 {dimension_numbers = #tpu.dot_dimension_numbers<[1], [0], [0], [1], [0, 0, 1, 1], [], []>} : vector<32x24xbf16>, vector<24x288xbf16>, vector<32x288xf32> -> vector<32x288xf32>
      %33 = arith.addf %25, %32 : vector<32x288xf32>
      %c0_29 = arith.constant 0 : index
      %34 = arith.index_cast %8 : i32 to index
      %c18 = arith.constant 18 : index
      %35 = vector.load %arg1[%c0_29, %34, %c18] : memref<1x144x328xf32, #tpu.memory_space<vmem>>, vector<1x24x288xf32>
      %36 = vector.shape_cast %35 : vector<1x24x288xf32> to vector<24x288xf32>
      %c3 = arith.constant 3 : index
      %c0_30 = arith.constant 0 : index
      %c0_31 = arith.constant 0 : index
      %37 = vector.load %arg2[%c3, %c0_30, %c0_31] : memref<9x32x24xbf16, #tpu.memory_space<vmem>>, vector<1x32x24xbf16>
      %38 = vector.shape_cast %37 : vector<1x32x24xbf16> to vector<32x24xbf16>
      %39 = arith.truncf %36 : vector<24x288xf32> to vector<24x288xbf16>
      %cst_32 = arith.constant dense<0.000000e+00> : vector<32x288xf32>
      %40 = tpu.matmul %38, %39, %cst_32 {dimension_numbers = #tpu.dot_dimension_numbers<[1], [0], [0], [1], [0, 0, 1, 1], [], []>} : vector<32x24xbf16>, vector<24x288xbf16>, vector<32x288xf32> -> vector<32x288xf32>
      %41 = arith.addf %33, %40 : vector<32x288xf32>
      %c0_33 = arith.constant 0 : index
      %42 = arith.index_cast %8 : i32 to index
      %c19 = arith.constant 19 : index
      %43 = vector.load %arg1[%c0_33, %42, %c19] : memref<1x144x328xf32, #tpu.memory_space<vmem>>, vector<1x24x288xf32>
      %44 = vector.shape_cast %43 : vector<1x24x288xf32> to vector<24x288xf32>
      %c4 = arith.constant 4 : index
      %c0_34 = arith.constant 0 : index
      %c0_35 = arith.constant 0 : index
      %45 = vector.load %arg2[%c4, %c0_34, %c0_35] : memref<9x32x24xbf16, #tpu.memory_space<vmem>>, vector<1x32x24xbf16>
      %46 = vector.shape_cast %45 : vector<1x32x24xbf16> to vector<32x24xbf16>
      %47 = arith.truncf %44 : vector<24x288xf32> to vector<24x288xbf16>
      %cst_36 = arith.constant dense<0.000000e+00> : vector<32x288xf32>
      %48 = tpu.matmul %46, %47, %cst_36 {dimension_numbers = #tpu.dot_dimension_numbers<[1], [0], [0], [1], [0, 0, 1, 1], [], []>} : vector<32x24xbf16>, vector<24x288xbf16>, vector<32x288xf32> -> vector<32x288xf32>
      %49 = arith.addf %41, %48 : vector<32x288xf32>
      %c0_37 = arith.constant 0 : index
      %50 = arith.index_cast %8 : i32 to index
      %c20 = arith.constant 20 : index
      %51 = vector.load %arg1[%c0_37, %50, %c20] : memref<1x144x328xf32, #tpu.memory_space<vmem>>, vector<1x24x288xf32>
      %52 = vector.shape_cast %51 : vector<1x24x288xf32> to vector<24x288xf32>
      %c5 = arith.constant 5 : index
      %c0_38 = arith.constant 0 : index
      %c0_39 = arith.constant 0 : index
      %53 = vector.load %arg2[%c5, %c0_38, %c0_39] : memref<9x32x24xbf16, #tpu.memory_space<vmem>>, vector<1x32x24xbf16>
      %54 = vector.shape_cast %53 : vector<1x32x24xbf16> to vector<32x24xbf16>
      %55 = arith.truncf %52 : vector<24x288xf32> to vector<24x288xbf16>
      %cst_40 = arith.constant dense<0.000000e+00> : vector<32x288xf32>
      %56 = tpu.matmul %54, %55, %cst_40 {dimension_numbers = #tpu.dot_dimension_numbers<[1], [0], [0], [1], [0, 0, 1, 1], [], []>} : vector<32x24xbf16>, vector<24x288xbf16>, vector<32x288xf32> -> vector<32x288xf32>
      %57 = arith.addf %49, %56 : vector<32x288xf32>
      %c0_41 = arith.constant 0 : index
      %58 = arith.index_cast %8 : i32 to index
      %c36 = arith.constant 36 : index
      %59 = vector.load %arg1[%c0_41, %58, %c36] : memref<1x144x328xf32, #tpu.memory_space<vmem>>, vector<1x24x288xf32>
      %60 = vector.shape_cast %59 : vector<1x24x288xf32> to vector<24x288xf32>
      %c6 = arith.constant 6 : index
      %c0_42 = arith.constant 0 : index
      %c0_43 = arith.constant 0 : index
      %61 = vector.load %arg2[%c6, %c0_42, %c0_43] : memref<9x32x24xbf16, #tpu.memory_space<vmem>>, vector<1x32x24xbf16>
      %62 = vector.shape_cast %61 : vector<1x32x24xbf16> to vector<32x24xbf16>
      %63 = arith.truncf %60 : vector<24x288xf32> to vector<24x288xbf16>
      %cst_44 = arith.constant dense<0.000000e+00> : vector<32x288xf32>
      %64 = tpu.matmul %62, %63, %cst_44 {dimension_numbers = #tpu.dot_dimension_numbers<[1], [0], [0], [1], [0, 0, 1, 1], [], []>} : vector<32x24xbf16>, vector<24x288xbf16>, vector<32x288xf32> -> vector<32x288xf32>
      %65 = arith.addf %57, %64 : vector<32x288xf32>
      %c0_45 = arith.constant 0 : index
      %66 = arith.index_cast %8 : i32 to index
      %c37 = arith.constant 37 : index
      %67 = vector.load %arg1[%c0_45, %66, %c37] : memref<1x144x328xf32, #tpu.memory_space<vmem>>, vector<1x24x288xf32>
      %68 = vector.shape_cast %67 : vector<1x24x288xf32> to vector<24x288xf32>
      %c7 = arith.constant 7 : index
      %c0_46 = arith.constant 0 : index
      %c0_47 = arith.constant 0 : index
      %69 = vector.load %arg2[%c7, %c0_46, %c0_47] : memref<9x32x24xbf16, #tpu.memory_space<vmem>>, vector<1x32x24xbf16>
      %70 = vector.shape_cast %69 : vector<1x32x24xbf16> to vector<32x24xbf16>
      %71 = arith.truncf %68 : vector<24x288xf32> to vector<24x288xbf16>
      %cst_48 = arith.constant dense<0.000000e+00> : vector<32x288xf32>
      %72 = tpu.matmul %70, %71, %cst_48 {dimension_numbers = #tpu.dot_dimension_numbers<[1], [0], [0], [1], [0, 0, 1, 1], [], []>} : vector<32x24xbf16>, vector<24x288xbf16>, vector<32x288xf32> -> vector<32x288xf32>
      %73 = arith.addf %65, %72 : vector<32x288xf32>
      %c0_49 = arith.constant 0 : index
      %74 = arith.index_cast %8 : i32 to index
      %c38 = arith.constant 38 : index
      %75 = vector.load %arg1[%c0_49, %74, %c38] : memref<1x144x328xf32, #tpu.memory_space<vmem>>, vector<1x24x288xf32>
      %76 = vector.shape_cast %75 : vector<1x24x288xf32> to vector<24x288xf32>
      %c8 = arith.constant 8 : index
      %c0_50 = arith.constant 0 : index
      %c0_51 = arith.constant 0 : index
      %77 = vector.load %arg2[%c8, %c0_50, %c0_51] : memref<9x32x24xbf16, #tpu.memory_space<vmem>>, vector<1x32x24xbf16>
      %78 = vector.shape_cast %77 : vector<1x32x24xbf16> to vector<32x24xbf16>
      %79 = arith.truncf %76 : vector<24x288xf32> to vector<24x288xbf16>
      %cst_52 = arith.constant dense<0.000000e+00> : vector<32x288xf32>
      %80 = tpu.matmul %78, %79, %cst_52 {dimension_numbers = #tpu.dot_dimension_numbers<[1], [0], [0], [1], [0, 0, 1, 1], [], []>} : vector<32x24xbf16>, vector<24x288xbf16>, vector<32x288xf32> -> vector<32x288xf32>
      %81 = arith.addf %73, %80 : vector<32x288xf32>
      %82 = vector.broadcast %3 : vector<32x1xf32> to vector<32x288xf32>
      %83 = arith.addf %81, %82 : vector<32x288xf32>
      %cst_53 = arith.constant 0.000000e+00 : f32
      %84 = vector.broadcast %cst_53 : f32 to vector<32x288xf32>
      %85 = arith.maximumf %83, %84 : vector<32x288xf32>
      %86 = vector.broadcast %2 : vector<1x288xf32> to vector<32x288xf32>
      %87 = arith.mulf %85, %86 : vector<32x288xf32>
      %c1_i32_54 = arith.constant 1 : i32
      %88 = arith.addi %arg9, %c1_i32_54 : i32
      %c32_i32 = arith.constant 32 : i32
      %89 = arith.muli %88, %c32_i32 : i32
      %90 = tpu.assume_multiple %89, 32 : i32
      %91 = arith.index_cast %90 : i32 to index
      %c19_55 = arith.constant 19 : index
      %92 = vector.load %arg8[%91, %c19_55] : memref<576x328xf32, #tpu.memory_space<vmem>>, vector<32x288xf32>
      tpu.vector_store %arg8[%91, %c19_55], %87 {strides = array<i32>} : memref<576x328xf32, #tpu.memory_space<vmem>>, vector<32x288xf32>,
    }
    %c16_i32_7 = arith.constant 16 : i32
    %c0_i32_8 = arith.constant 0 : i32
    %c16_i32_9 = arith.constant 16 : i32
    %6 = arith.addi %c0_i32_8, %c16_i32_9 : i32
    %c1_i32_10 = arith.constant 1 : i32
    scf.for %arg9 = %c0_i32_8 to %6 step %c1_i32_10  : i32 {
      %c32_i32 = arith.constant 32 : i32
      %7 = arith.muli %arg9, %c32_i32 : i32
      %8 = tpu.assume_multiple %7, 32 : i32
      %cst_12 = arith.constant 0.000000e+00 : f32
      %9 = vector.broadcast %cst_12 : f32 to vector<32x288xf32>
      %10 = arith.index_cast %8 : i32 to index
      %c0_13 = arith.constant 0 : index
      %11 = vector.load %arg8[%10, %c0_13] : memref<576x328xf32, #tpu.memory_space<vmem>>, vector<96x288xf32>
      %c0_14 = arith.constant 0 : index
      %c0_15 = arith.constant 0 : index
      %c0_16 = arith.constant 0 : index
      %12 = vector.load %arg4[%c0_14, %c0_15, %c0_16] : memref<9x32x96xbf16, #tpu.memory_space<vmem>>, vector<1x32x96xbf16>
      %13 = vector.shape_cast %12 : vector<1x32x96xbf16> to vector<32x96xbf16>
      %14 = arith.truncf %11 : vector<96x288xf32> to vector<96x288xbf16>
      %cst_17 = arith.constant dense<0.000000e+00> : vector<32x288xf32>
      %15 = tpu.matmul %13, %14, %cst_17 {dimension_numbers = #tpu.dot_dimension_numbers<[1], [0], [0], [1], [0, 0, 1, 1], [], []>} : vector<32x96xbf16>, vector<96x288xbf16>, vector<32x288xf32> -> vector<32x288xf32>
      %16 = arith.addf %9, %15 : vector<32x288xf32>
      %17 = arith.index_cast %8 : i32 to index
      %c1 = arith.constant 1 : index
      %18 = vector.load %arg8[%17, %c1] : memref<576x328xf32, #tpu.memory_space<vmem>>, vector<96x288xf32>
      %c1_18 = arith.constant 1 : index
      %c0_19 = arith.constant 0 : index
      %c0_20 = arith.constant 0 : index
      %19 = vector.load %arg4[%c1_18, %c0_19, %c0_20] : memref<9x32x96xbf16, #tpu.memory_space<vmem>>, vector<1x32x96xbf16>
      %20 = vector.shape_cast %19 : vector<1x32x96xbf16> to vector<32x96xbf16>
      %21 = arith.truncf %18 : vector<96x288xf32> to vector<96x288xbf16>
      %cst_21 = arith.constant dense<0.000000e+00> : vector<32x288xf32>
      %22 = tpu.matmul %20, %21, %cst_21 {dimension_numbers = #tpu.dot_dimension_numbers<[1], [0], [0], [1], [0, 0, 1, 1], [], []>} : vector<32x96xbf16>, vector<96x288xbf16>, vector<32x288xf32> -> vector<32x288xf32>
      %23 = arith.addf %16, %22 : vector<32x288xf32>
      %24 = arith.index_cast %8 : i32 to index
      %c2 = arith.constant 2 : index
      %25 = vector.load %arg8[%24, %c2] : memref<576x328xf32, #tpu.memory_space<vmem>>, vector<96x288xf32>
      %c2_22 = arith.constant 2 : index
      %c0_23 = arith.constant 0 : index
      %c0_24 = arith.constant 0 : index
      %26 = vector.load %arg4[%c2_22, %c0_23, %c0_24] : memref<9x32x96xbf16, #tpu.memory_space<vmem>>, vector<1x32x96xbf16>
      %27 = vector.shape_cast %26 : vector<1x32x96xbf16> to vector<32x96xbf16>
      %28 = arith.truncf %25 : vector<96x288xf32> to vector<96x288xbf16>
      %cst_25 = arith.constant dense<0.000000e+00> : vector<32x288xf32>
      %29 = tpu.matmul %27, %28, %cst_25 {dimension_numbers = #tpu.dot_dimension_numbers<[1], [0], [0], [1], [0, 0, 1, 1], [], []>} : vector<32x96xbf16>, vector<96x288xbf16>, vector<32x288xf32> -> vector<32x288xf32>
      %30 = arith.addf %23, %29 : vector<32x288xf32>
      %31 = arith.index_cast %8 : i32 to index
      %c18 = arith.constant 18 : index
      %32 = vector.load %arg8[%31, %c18] : memref<576x328xf32, #tpu.memory_space<vmem>>, vector<96x288xf32>
      %c3 = arith.constant 3 : index
      %c0_26 = arith.constant 0 : index
      %c0_27 = arith.constant 0 : index
      %33 = vector.load %arg4[%c3, %c0_26, %c0_27] : memref<9x32x96xbf16, #tpu.memory_space<vmem>>, vector<1x32x96xbf16>
      %34 = vector.shape_cast %33 : vector<1x32x96xbf16> to vector<32x96xbf16>
      %35 = arith.truncf %32 : vector<96x288xf32> to vector<96x288xbf16>
      %cst_28 = arith.constant dense<0.000000e+00> : vector<32x288xf32>
      %36 = tpu.matmul %34, %35, %cst_28 {dimension_numbers = #tpu.dot_dimension_numbers<[1], [0], [0], [1], [0, 0, 1, 1], [], []>} : vector<32x96xbf16>, vector<96x288xbf16>, vector<32x288xf32> -> vector<32x288xf32>
      %37 = arith.addf %30, %36 : vector<32x288xf32>
      %38 = arith.index_cast %8 : i32 to index
      %c19 = arith.constant 19 : index
      %39 = vector.load %arg8[%38, %c19] : memref<576x328xf32, #tpu.memory_space<vmem>>, vector<96x288xf32>
      %c4 = arith.constant 4 : index
      %c0_29 = arith.constant 0 : index
      %c0_30 = arith.constant 0 : index
      %40 = vector.load %arg4[%c4, %c0_29, %c0_30] : memref<9x32x96xbf16, #tpu.memory_space<vmem>>, vector<1x32x96xbf16>
      %41 = vector.shape_cast %40 : vector<1x32x96xbf16> to vector<32x96xbf16>
      %42 = arith.truncf %39 : vector<96x288xf32> to vector<96x288xbf16>
      %cst_31 = arith.constant dense<0.000000e+00> : vector<32x288xf32>
      %43 = tpu.matmul %41, %42, %cst_31 {dimension_numbers = #tpu.dot_dimension_numbers<[1], [0], [0], [1], [0, 0, 1, 1], [], []>} : vector<32x96xbf16>, vector<96x288xbf16>, vector<32x288xf32> -> vector<32x288xf32>
      %44 = arith.addf %37, %43 : vector<32x288xf32>
      %45 = arith.index_cast %8 : i32 to index
      %c20 = arith.constant 20 : index
      %46 = vector.load %arg8[%45, %c20] : memref<576x328xf32, #tpu.memory_space<vmem>>, vector<96x288xf32>
      %c5 = arith.constant 5 : index
      %c0_32 = arith.constant 0 : index
      %c0_33 = arith.constant 0 : index
      %47 = vector.load %arg4[%c5, %c0_32, %c0_33] : memref<9x32x96xbf16, #tpu.memory_space<vmem>>, vector<1x32x96xbf16>
      %48 = vector.shape_cast %47 : vector<1x32x96xbf16> to vector<32x96xbf16>
      %49 = arith.truncf %46 : vector<96x288xf32> to vector<96x288xbf16>
      %cst_34 = arith.constant dense<0.000000e+00> : vector<32x288xf32>
      %50 = tpu.matmul %48, %49, %cst_34 {dimension_numbers = #tpu.dot_dimension_numbers<[1], [0], [0], [1], [0, 0, 1, 1], [], []>} : vector<32x96xbf16>, vector<96x288xbf16>, vector<32x288xf32> -> vector<32x288xf32>
      %51 = arith.addf %44, %50 : vector<32x288xf32>
      %52 = arith.index_cast %8 : i32 to index
      %c36 = arith.constant 36 : index
      %53 = vector.load %arg8[%52, %c36] : memref<576x328xf32, #tpu.memory_space<vmem>>, vector<96x288xf32>
      %c6 = arith.constant 6 : index
      %c0_35 = arith.constant 0 : index
      %c0_36 = arith.constant 0 : index
      %54 = vector.load %arg4[%c6, %c0_35, %c0_36] : memref<9x32x96xbf16, #tpu.memory_space<vmem>>, vector<1x32x96xbf16>
      %55 = vector.shape_cast %54 : vector<1x32x96xbf16> to vector<32x96xbf16>
      %56 = arith.truncf %53 : vector<96x288xf32> to vector<96x288xbf16>
      %cst_37 = arith.constant dense<0.000000e+00> : vector<32x288xf32>
      %57 = tpu.matmul %55, %56, %cst_37 {dimension_numbers = #tpu.dot_dimension_numbers<[1], [0], [0], [1], [0, 0, 1, 1], [], []>} : vector<32x96xbf16>, vector<96x288xbf16>, vector<32x288xf32> -> vector<32x288xf32>
      %58 = arith.addf %51, %57 : vector<32x288xf32>
      %59 = arith.index_cast %8 : i32 to index
      %c37 = arith.constant 37 : index
      %60 = vector.load %arg8[%59, %c37] : memref<576x328xf32, #tpu.memory_space<vmem>>, vector<96x288xf32>
      %c7 = arith.constant 7 : index
      %c0_38 = arith.constant 0 : index
      %c0_39 = arith.constant 0 : index
      %61 = vector.load %arg4[%c7, %c0_38, %c0_39] : memref<9x32x96xbf16, #tpu.memory_space<vmem>>, vector<1x32x96xbf16>
      %62 = vector.shape_cast %61 : vector<1x32x96xbf16> to vector<32x96xbf16>
      %63 = arith.truncf %60 : vector<96x288xf32> to vector<96x288xbf16>
      %cst_40 = arith.constant dense<0.000000e+00> : vector<32x288xf32>
      %64 = tpu.matmul %62, %63, %cst_40 {dimension_numbers = #tpu.dot_dimension_numbers<[1], [0], [0], [1], [0, 0, 1, 1], [], []>} : vector<32x96xbf16>, vector<96x288xbf16>, vector<32x288xf32> -> vector<32x288xf32>
      %65 = arith.addf %58, %64 : vector<32x288xf32>
      %66 = arith.index_cast %8 : i32 to index
      %c38 = arith.constant 38 : index
      %67 = vector.load %arg8[%66, %c38] : memref<576x328xf32, #tpu.memory_space<vmem>>, vector<96x288xf32>
      %c8 = arith.constant 8 : index
      %c0_41 = arith.constant 0 : index
      %c0_42 = arith.constant 0 : index
      %68 = vector.load %arg4[%c8, %c0_41, %c0_42] : memref<9x32x96xbf16, #tpu.memory_space<vmem>>, vector<1x32x96xbf16>
      %69 = vector.shape_cast %68 : vector<1x32x96xbf16> to vector<32x96xbf16>
      %70 = arith.truncf %67 : vector<96x288xf32> to vector<96x288xbf16>
      %cst_43 = arith.constant dense<0.000000e+00> : vector<32x288xf32>
      %71 = tpu.matmul %69, %70, %cst_43 {dimension_numbers = #tpu.dot_dimension_numbers<[1], [0], [0], [1], [0, 0, 1, 1], [], []>} : vector<32x96xbf16>, vector<96x288xbf16>, vector<32x288xf32> -> vector<32x288xf32>
      %72 = arith.addf %65, %71 : vector<32x288xf32>
      %73 = vector.broadcast %4 : vector<32x1xf32> to vector<32x288xf32>
      %74 = arith.addf %72, %73 : vector<32x288xf32>
      %cst_44 = arith.constant 0.000000e+00 : f32
      %75 = vector.broadcast %cst_44 : f32 to vector<32x288xf32>
      %76 = arith.maximumf %74, %75 : vector<32x288xf32>
      %c32_i32_45 = arith.constant 32 : i32
      %77 = arith.addi %8, %c32_i32_45 : i32
      %78 = arith.index_cast %77 : i32 to index
      %c19_46 = arith.constant 19 : index
      %79 = vector.load %arg8[%78, %c19_46] : memref<576x328xf32, #tpu.memory_space<vmem>>, vector<32x288xf32>
      %80 = arith.addf %76, %79 : vector<32x288xf32>
      %c0_47 = arith.constant 0 : index
      %81 = arith.index_cast %arg9 : i32 to index
      %c0_48 = arith.constant 0 : index
      %c0_49 = arith.constant 0 : index
      %82 = vector.load %arg7[%c0_47, %81, %c0_48, %c0_49] : memref<1x16x32x288xf32, #tpu.memory_space<vmem>>, vector<1x1x32x288xf32>
      %83 = vector.shape_cast %82 : vector<1x1x32x288xf32> to vector<32x288xf32>
      %84 = vector.shape_cast %80 : vector<32x288xf32> to vector<1x1x32x288xf32>
      tpu.vector_store %arg7[%c0_47, %81, %c0_48, %c0_49], %84 {strides = array<i32>} : memref<1x16x32x288xf32, #tpu.memory_space<vmem>>, vector<1x1x32x288xf32>,
    }
    %c16_i32_11 = arith.constant 16 : i32
    return
  }
  func.func @transform_0(%arg0: i32) -> (i32, i32, i32) {
    %c0_i32 = arith.constant 0 : i32
    %c0_i32_0 = arith.constant 0 : i32
    %c0_i32_1 = arith.constant 0 : i32
    return %arg0, %c0_i32, %c0_i32_0 : i32, i32, i32
  }
  func.func @transform_1(%arg0: i32) -> (i32, i32, i32) {
    %c0_i32 = arith.constant 0 : i32
    %c0_i32_0 = arith.constant 0 : i32
    %c0_i32_1 = arith.constant 0 : i32
    %c0_i32_2 = arith.constant 0 : i32
    return %c0_i32, %c0_i32_0, %c0_i32_1 : i32, i32, i32
  }
  func.func @transform_2(%arg0: i32) -> (i32, i32) {
    %c0_i32 = arith.constant 0 : i32
    %c0_i32_0 = arith.constant 0 : i32
    %c0_i32_1 = arith.constant 0 : i32
    return %c0_i32, %c0_i32_0 : i32, i32
  }
  func.func @transform_3(%arg0: i32) -> (i32, i32, i32) {
    %c0_i32 = arith.constant 0 : i32
    %c0_i32_0 = arith.constant 0 : i32
    %c0_i32_1 = arith.constant 0 : i32
    %c0_i32_2 = arith.constant 0 : i32
    return %c0_i32, %c0_i32_0, %c0_i32_1 : i32, i32, i32
  }
  func.func @transform_4(%arg0: i32) -> (i32, i32) {
    %c0_i32 = arith.constant 0 : i32
    %c0_i32_0 = arith.constant 0 : i32
    %c0_i32_1 = arith.constant 0 : i32
    return %c0_i32, %c0_i32_0 : i32, i32
  }
  func.func @transform_5(%arg0: i32) -> (i32, i32) {
    %c0_i32 = arith.constant 0 : i32
    %c0_i32_0 = arith.constant 0 : i32
    %c0_i32_1 = arith.constant 0 : i32
    return %c0_i32, %c0_i32_0 : i32, i32
  }
  func.func @transform_6(%arg0: i32) -> (i32, i32, i32, i32) {
    %c0_i32 = arith.constant 0 : i32
    %c0_i32_0 = arith.constant 0 : i32
    %c0_i32_1 = arith.constant 0 : i32
    %c0_i32_2 = arith.constant 0 : i32
    return %arg0, %c0_i32, %c0_i32_0, %c0_i32_1 : i32, i32, i32, i32
  }
}

</mosaic_0001>

<bundles_post_ra>
// kernel: conv_block_forward.1
= control target key start
LH: loop header
LB: loop body
LE: loop exit
PB: predicated region body
PF: predicated region fallthrough
CT: control target
= control target key end

     0   :  { %s5023_s21 = smov 0   ;;  %s6451_s0 = inlined_call_operand.vmem [shape: f32[2,144,328], index: 0, kind: input, shape index: {}]   ;;  %s6452_s1 = inlined_call_operand.vmem [shape: bf16[9,32,24], index: 1, kind: input, shape index: {}]   ;;  %s6453_s2 = inlined_call_operand.vmem [shape: f32[32,1], index: 2, kind: input, shape index: {}]   ;;  %s6454_s3 = inlined_call_operand.vmem [shape: bf16[9,32,96], index: 3, kind: input, shape index: {}]   ;;  %s6455_s4 = inlined_call_operand.vmem [shape: f32[32,1], index: 4, kind: input, shape index: {}]   ;;  %s6456_s5 = inlined_call_operand.vmem [shape: f32[1,288], index: 5, kind: input, shape index: {}]   ;;  %s6457_s6 = inlined_call_operand.vmem [shape: f32[2,16,32,288], index: 6, kind: output, shape index: {}]  }
   0x1 LB: > { %s4128_s22 = sadd.s32 4294967295, %s4958_s21   ;;  %p4132_p0 = scmp.ge.s32.totalorder %s4958_s21, 1  ;;  %s4958_s21 = sphi %s5023_s21, %s16_s21  }
   0x2   : > { %p212_p1 = scmp.lt.s32.totalorder %s4958_s21, 3 }
   0x4   : > { %p213_p2 = pnand %p4132_p0, %p212_p1 }
   0x5   : > { %p5033_p3 = scmp.lt.s32.totalorder (!%p213_p2), %s4128_s22, 1  ;;  %v5040_v0 = vld [vmem:[%s6456_s5] sm:$0x7] (!%p213_p2)  ;;  %v5050_v2 = vld [vmem:[%s6453_s2 + $0x8] sm:$0xff] (!%p213_p2)  ;;  %v4968_v3 = vmov (!%p213_p2), 0.0   ;;  %v5199_v4 = vld [vmem:[%s6453_s2 + $0x10] sm:$0xff] (!%p213_p2) }
   0x6   : > { %216 = sbr.rel (%p213_p2) target bundleno = 1362 (0x552), region = 44  ;;  %v5045_v1 = vld [vmem:[%s6453_s2] sm:$0xff] (!%p213_p2)  ;;  %253 = vst [vmem:[#allocation2] sm:$0xff] (!%p213_p2), %v4968_v3  ;;  %254 = vst [vmem:[#allocation2 + $0x8] sm:$0xff] (!%p213_p2), %v4968_v3  ;;  %v5204_v5 = vld [vmem:[%s6453_s2 + $0x18] sm:$0xff] (!%p213_p2)  ;;  %vm255_vm0 = vcmask (!%p213_p2), 588800  }
   0x7   : > { %257 = vst [vmem:[#allocation2 + $0x18] sm:$0xff] (!%p213_p2), %v4968_v3  ;;  %258 = vst [vmem:[#allocation2 + $0x20] sm:$0xff] (!%p213_p2), %v4968_v3  ;;  %v5209_v6 = vld [vmem:[%s6455_s4] sm:$0xff] (!%p213_p2)  ;;  %v5220_v7 = vld [vmem:[%s6455_s4 + $0x8] sm:$0xff] (!%p213_p2)  ;;  %s5388_s28 = smov (!%p213_p2), 0  }
   0x8   : > { %260 = vst [vmem:[#allocation2 + $0x30] sm:$0xff] (!%p213_p2), %v4968_v3  ;;  %261 = vst [vmem:[#allocation2 + $0x38] sm:$0xff] (!%p213_p2), %v4968_v3  ;;  %v5225_v8 = vld [vmem:[%s6455_s4 + $0x10] sm:$0xff] (!%p213_p2)  ;;  %v5230_v9 = vld [vmem:[%s6455_s4 + $0x18] sm:$0xff] (!%p213_p2) }
   0x9   : > { %263 = vst [vmem:[#allocation2 + $0x48] sm:$0xff] (!%p213_p2), %v4968_v3  ;;  %264 = vst [vmem:[#allocation2 + $0x50] sm:$0xff] (!%p213_p2), %v4968_v3 }
   0xa   : > { %266 = vst [vmem:[#allocation2 + $0x60] sm:$0xff] (!%p213_p2), %v4968_v3  ;;  %267 = vst [vmem:[#allocation2 + $0x68] sm:$0xff] (!%p213_p2), %v4968_v3 }
   0xb   : > { %269 = vst [vmem:[#allocation2 + $0x78] sm:$0xff] (!%p213_p2), %v4968_v3  ;;  %270 = vst [vmem:[#allocation2 + $0x80] sm:$0xff] (!%p213_p2), %v4968_v3 }
   0xc   : > { %272 = vst [vmem:[#allocation2 + $0x90] sm:$0xff] (!%p213_p2), %v4968_v3  ;;  %273 = vst [vmem:[#allocation2 + $0x98] sm:$0xff] (!%p213_p2), %v4968_v3 }
   0xd   : > { %275 = vst [vmem:[#allocation2 + $0xa8] sm:$0xff] %v4968_v3  ;;  %276 = vst [vmem:[#allocation2 + $0xb0] sm:$0xff] %v4968_v3  ;;  %s6460_s22 = smov (!%p5033_p3, %s4128_s22), 1 }
   0xe   : > { %278 = vst [vmem:[#allocation2 + $0xc0] sm:$0xff] %v4968_v3  ;;  %279 = vst [vmem:[#allocation2 + $0xc8] sm:$0xff] %v4968_v3  ;;  %s4858_s18 = smul.u32 432, %s6460_s22 }
   0xf   : > { %281 = vst [vmem:[#allocation2 + $0xd8] sm:$0xff] %v4968_v3  ;;  %282 = vst [vmem:[#allocation2 + $0xe0] sm:$0xff] %v4968_v3  ;;  %s4859_s19 = smul.u32 1536, %s6460_s22 }
  0x10   : > { %284 = vst [vmem:[#allocation2 + $0xf0] sm:$0xff] %v4968_v3  ;;  %285 = vst [vmem:[#allocation2 + $0xf8] sm:$0xff] %v4968_v3  ;;  %s5381_s24 = scalar_lea.vmem %s6451_s0, %s4858_s18 }
  0x11   : > { %287 = vst [vmem:[#allocation2 + $0x108] sm:$0xff] %v4968_v3  ;;  %288 = vst [vmem:[#allocation2 + $0x110] sm:$0xff] %v4968_v3  ;;  %s5386_s27 = scalar_lea.vmem %s6457_s6, %s4859_s19 }
  0x12   : > { %290 = vst [vmem:[#allocation2 + $0x120] sm:$0xff] %v4968_v3  ;;  %291 = vst [vmem:[#allocation2 + $0x128] sm:$0xff] %v4968_v3 }
  0x13   : > { %293 = vst [vmem:[#allocation2 + $0x138] sm:$0xff] %v4968_v3  ;;  %294 = vst [vmem:[#allocation2 + $0x140] sm:$0xff] %v4968_v3 }
  0x14   : > { %296 = vst [vmem:[#allocation2 + $0x150] sm:$0xff] %v4968_v3  ;;  %297 = vst [vmem:[#allocation2 + $0x158] sm:$0xff] %v4968_v3 }
  0x15   : > { %299 = vst [vmem:[#allocation2 + $0x168] sm:$0xff] %v4968_v3  ;;  %300 = vst [vmem:[#allocation2 + $0x170] sm:$0xff] %v4968_v3 }
  0x16   : > { %302 = vst [vmem:[#allocation2 + $0x180] sm:$0xff] %v4968_v3  ;;  %303 = vst [vmem:[#allocation2 + $0x188] sm:$0xff] %v4968_v3 }
  0x17   : > { %305 = vst [vmem:[#allocation2 + $0x198] sm:$0xff] %v4968_v3  ;;  %306 = vst [vmem:[#allocation2 + $0x1a0] sm:$0xff] %v4968_v3 }
  0x18   : > { %308 = vst [vmem:[#allocation2 + $0x1b0] sm:$0xff] %v4968_v3  ;;  %309 = vst [vmem:[#allocation2 + $0x1b8] sm:$0xff] %v4968_v3 }
  0x19   : > { %311 = vst [vmem:[#allocation2 + $0x1c8] sm:$0xff] %v4968_v3  ;;  %312 = vst [vmem:[#allocation2 + $0x1d0] sm:$0xff] %v4968_v3 }
  0x1a   : > { %314 = vst [vmem:[#allocation2 + $0x1e0] sm:$0xff] %v4968_v3  ;;  %315 = vst [vmem:[#allocation2 + $0x1e8] sm:$0xff] %v4968_v3 }
  0x1b   : > { %317 = vst [vmem:[#allocation2 + $0x1f8] sm:$0xff] %v4968_v3  ;;  %318 = vst [vmem:[#allocation2 + $0x200] sm:$0xff] %v4968_v3 }
  0x1c   : > { %320 = vst [vmem:[#allocation2 + $0x210] sm:$0xff] %v4968_v3  ;;  %321 = vst [vmem:[#allocation2 + $0x218] sm:$0xff] %v4968_v3 }
  0x1d   : > { %323 = vst [vmem:[#allocation2 + $0x228] sm:$0xff] %v4968_v3  ;;  %324 = vst [vmem:[#allocation2 + $0x230] sm:$0xff] %v4968_v3 }
  0x1e   : > { %326 = vst [vmem:[#allocation2 + $0x240] sm:$0xff] %v4968_v3  ;;  %327 = vst [vmem:[#allocation2 + $0x248] sm:$0xff] %v4968_v3 }
  0x1f   : > { %329 = vst [vmem:[#allocation2 + $0x258] sm:$0xff] %v4968_v3  ;;  %330 = vst [vmem:[#allocation2 + $0x260] sm:$0xff] %v4968_v3 }
  0x20   : > { %332 = vst [vmem:[#allocation2 + $0x270] sm:$0xff] %v4968_v3  ;;  %333 = vst [vmem:[#allocation2 + $0x278] sm:$0xff] %v4968_v3 }
  0x21   : > { %335 = vst [vmem:[#allocation2 + $0x288] sm:$0xff] %v4968_v3  ;;  %336 = vst [vmem:[#allocation2 + $0x290] sm:$0xff] %v4968_v3 }
  0x22   : > { %338 = vst [vmem:[#allocation2 + $0x2a0] sm:$0xff] %v4968_v3  ;;  %339 = vst [vmem:[#allocation2 + $0x2a8] sm:$0xff] %v4968_v3 }
  0x23   : > { %341 = vst [vmem:[#allocation2 + $0x2b8] sm:$0xff] %v4968_v3  ;;  %342 = vst [vmem:[#allocation2 + $0x2c0] sm:$0xff] %v4968_v3 }
  0x24   : > { %344 = vst [vmem:[#allocation2 + $0x2d0] sm:$0xff] %v4968_v3  ;;  %345 = vst [vmem:[#allocation2 + $0x2d8] sm:$0xff] %v4968_v3 }
  0x25   : > { %347 = vst [vmem:[#allocation2 + $0x2e8] sm:$0xff] %v4968_v3  ;;  %348 = vst [vmem:[#allocation2 + $0x2f0] sm:$0xff] %v4968_v3 }
  0x26   : > { %350 = vst [vmem:[#allocation2 + $0x300] sm:$0xff] %v4968_v3  ;;  %351 = vst [vmem:[#allocation2 + $0x308] sm:$0xff] %v4968_v3 }
  0x27   : > { %353 = vst [vmem:[#allocation2 + $0x318] sm:$0xff] %v4968_v3  ;;  %354 = vst [vmem:[#allocation2 + $0x320] sm:$0xff] %v4968_v3 }
  0x28   : > { %356 = vst [vmem:[#allocation2 + $0x330] sm:$0xff] %v4968_v3  ;;  %357 = vst [vmem:[#allocation2 + $0x338] sm:$0xff] %v4968_v3 }
  0x29   : > { %359 = vst [vmem:[#allocation2 + $0x348] sm:$0xff] %v4968_v3  ;;  %360 = vst [vmem:[#allocation2 + $0x350] sm:$0xff] %v4968_v3 }
  0x2a   : > { %362 = vst [vmem:[#allocation2 + $0x360] sm:$0xff] %v4968_v3  ;;  %363 = vst [vmem:[#allocation2 + $0x368] sm:$0xff] %v4968_v3 }
  0x2b   : > { %365 = vst [vmem:[#allocation2 + $0x378] sm:$0xff] %v4968_v3  ;;  %366 = vst [vmem:[#allocation2 + $0x380] sm:$0xff] %v4968_v3 }
  0x2c   : > { %368 = vst [vmem:[#allocation2 + $0x390] sm:$0xff] %v4968_v3  ;;  %369 = vst [vmem:[#allocation2 + $0x398] sm:$0xff] %v4968_v3 }
  0x2d   : > { %371 = vst [vmem:[#allocation2 + $0x3a8] sm:$0xff] %v4968_v3  ;;  %372 = vst [vmem:[#allocation2 + $0x3b0] sm:$0xff] %v4968_v3 }
  0x2e   : > { %374 = vst [vmem:[#allocation2 + $0x3c0] sm:$0xff] %v4968_v3  ;;  %375 = vst [vmem:[#allocation2 + $0x3c8] sm:$0xff] %v4968_v3 }
  0x2f   : > { %377 = vst [vmem:[#allocation2 + $0x3d8] sm:$0xff] %v4968_v3  ;;  %378 = vst [vmem:[#allocation2 + $0x3e0] sm:$0xff] %v4968_v3 }
  0x30   : > { %380 = vst [vmem:[#allocation2 + $0x3f0] sm:$0xff] %v4968_v3  ;;  %381 = vst [vmem:[#allocation2 + $0x3f8] sm:$0xff] %v4968_v3 }
  0x31   : > { %383 = vst [vmem:[#allocation2 + $0x408] sm:$0xff] %v4968_v3  ;;  %384 = vst [vmem:[#allocation2 + $0x410] sm:$0xff] %v4968_v3 }
  0x32   : > { %386 = vst [vmem:[#allocation2 + $0x420] sm:$0xff] %v4968_v3  ;;  %387 = vst [vmem:[#allocation2 + $0x428] sm:$0xff] %v4968_v3 }
  0x33   : > { %389 = vst [vmem:[#allocation2 + $0x438] sm:$0xff] %v4968_v3  ;;  %390 = vst [vmem:[#allocation2 + $0x440] sm:$0xff] %v4968_v3 }
  0x34   : > { %392 = vst [vmem:[#allocation2 + $0x450] sm:$0xff] %v4968_v3  ;;  %393 = vst [vmem:[#allocation2 + $0x458] sm:$0xff] %v4968_v3 }
  0x35   : > { %395 = vst [vmem:[#allocation2 + $0x468] sm:$0xff] %v4968_v3  ;;  %396 = vst [vmem:[#allocation2 + $0x470] sm:$0xff] %v4968_v3 }
  0x36   : > { %398 = vst [vmem:[#allocation2 + $0x480] sm:$0xff] %v4968_v3  ;;  %399 = vst [vmem:[#allocation2 + $0x488] sm:$0xff] %v4968_v3 }
  0x37   : > { %401 = vst [vmem:[#allocation2 + $0x498] sm:$0xff] %v4968_v3  ;;  %402 = vst [vmem:[#allocation2 + $0x4a0] sm:$0xff] %v4968_v3 }
  0x38   : > { %404 = vst [vmem:[#allocation2 + $0x4b0] sm:$0xff] %v4968_v3  ;;  %405 = vst [vmem:[#allocation2 + $0x4b8] sm:$0xff] %v4968_v3 }
  0x39   : > { %407 = vst [vmem:[#allocation2 + $0x4c8] sm:$0xff] %v4968_v3  ;;  %408 = vst [vmem:[#allocation2 + $0x4d0] sm:$0xff] %v4968_v3 }
  0x3a   : > { %410 = vst [vmem:[#allocation2 + $0x4e0] sm:$0xff] %v4968_v3  ;;  %411 = vst [vmem:[#allocation2 + $0x4e8] sm:$0xff] %v4968_v3 }
  0x3b   : > { %413 = vst [vmem:[#allocation2 + $0x4f8] sm:$0xff] %v4968_v3  ;;  %414 = vst [vmem:[#allocation2 + $0x500] sm:$0xff] %v4968_v3 }
  0x3c   : > { %416 = vst [vmem:[#allocation2 + $0x510] sm:$0xff] %v4968_v3  ;;  %417 = vst [vmem:[#allocation2 + $0x518] sm:$0xff] %v4968_v3 }
  0x3d   : > { %419 = vst [vmem:[#allocation2 + $0x528] sm:$0xff] %v4968_v3  ;;  %420 = vst [vmem:[#allocation2 + $0x530] sm:$0xff] %v4968_v3 }
  0x3e   : > { %422 = vst [vmem:[#allocation2 + $0x540] sm:$0xff] %v4968_v3  ;;  %423 = vst [vmem:[#allocation2 + $0x548] sm:$0xff] %v4968_v3 }
  0x3f   : > { %425 = vst [vmem:[#allocation2 + $0x558] sm:$0xff] %v4968_v3  ;;  %426 = vst [vmem:[#allocation2 + $0x560] sm:$0xff] %v4968_v3 }
  0x40   : > { %428 = vst [vmem:[#allocation2 + $0x570] sm:$0xff] %v4968_v3  ;;  %429 = vst [vmem:[#allocation2 + $0x578] sm:$0xff] %v4968_v3 }
  0x41   : > { %431 = vst [vmem:[#allocation2 + $0x588] sm:$0xff] %v4968_v3  ;;  %432 = vst [vmem:[#allocation2 + $0x590] sm:$0xff] %v4968_v3 }
  0x42   : > { %434 = vst [vmem:[#allocation2 + $0x5a0] sm:$0xff] %v4968_v3  ;;  %435 = vst [vmem:[#allocation2 + $0x5a8] sm:$0xff] %v4968_v3 }
  0x43   : > { %437 = vst [vmem:[#allocation2 + $0x5b8] sm:$0xff] %v4968_v3  ;;  %438 = vst [vmem:[#allocation2 + $0x5c0] sm:$0xff] %v4968_v3 }
  0x44   : > { %440 = vst [vmem:[#allocation2 + $0x5d0] sm:$0xff] %v4968_v3  ;;  %441 = vst [vmem:[#allocation2 + $0x5d8] sm:$0xff] %v4968_v3 }
  0x45   : > { %443 = vst [vmem:[#allocation2 + $0x5e8] sm:$0xff] %v4968_v3  ;;  %444 = vst [vmem:[#allocation2 + $0x5f0] sm:$0xff] %v4968_v3 }
  0x46   : > { %446 = vst [vmem:[#allocation2 + $0x600] sm:$0xff] %v4968_v3  ;;  %447 = vst [vmem:[#allocation2 + $0x608] sm:$0xff] %v4968_v3 }
  0x47   : > { %449 = vst [vmem:[#allocation2 + $0x618] sm:$0xff] %v4968_v3  ;;  %450 = vst [vmem:[#allocation2 + $0x620] sm:$0xff] %v4968_v3 }
  0x48   : > { %452 = vst [vmem:[#allocation2 + $0x630] sm:$0xff] %v4968_v3  ;;  %453 = vst [vmem:[#allocation2 + $0x638] sm:$0xff] %v4968_v3 }
  0x49   : > { %455 = vst [vmem:[#allocation2 + $0x648] sm:$0xff] %v4968_v3  ;;  %456 = vst [vmem:[#allocation2 + $0x650] sm:$0xff] %v4968_v3 }
  0x4a   : > { %458 = vst [vmem:[#allocation2 + $0x660] sm:$0xff] %v4968_v3  ;;  %459 = vst [vmem:[#allocation2 + $0x668] sm:$0xff] %v4968_v3 }
  0x4b   : > { %461 = vst [vmem:[#allocation2 + $0x678] sm:$0xff] %v4968_v3  ;;  %462 = vst [vmem:[#allocation2 + $0x680] sm:$0xff] %v4968_v3 }
  0x4c   : > { %464 = vst [vmem:[#allocation2 + $0x690] sm:$0xff] %v4968_v3  ;;  %465 = vst [vmem:[#allocation2 + $0x698] sm:$0xff] %v4968_v3 }
  0x4d   : > { %467 = vst [vmem:[#allocation2 + $0x6a8] sm:$0xff] %v4968_v3  ;;  %468 = vst [vmem:[#allocation2 + $0x6b0] sm:$0xff] %v4968_v3 }
  0x4e   : > { %256 = vst.msk [vmem:[#allocation2 + $0x10] sm:$0xff] %vm255_vm0, %v4968_v3  ;;  %259 = vst.msk [vmem:[#allocation2 + $0x28] sm:$0xff] %vm255_vm0, %v4968_v3 }
  0x4f   : > { %262 = vst.msk [vmem:[#allocation2 + $0x40] sm:$0xff] %vm255_vm0, %v4968_v3  ;;  %265 = vst.msk [vmem:[#allocation2 + $0x58] sm:$0xff] %vm255_vm0, %v4968_v3 }
  0x50   : > { %268 = vst.msk [vmem:[#allocation2 + $0x70] sm:$0xff] %vm255_vm0, %v4968_v3  ;;  %271 = vst.msk [vmem:[#allocation2 + $0x88] sm:$0xff] %vm255_vm0, %v4968_v3 }
  0x51   : > { %274 = vst.msk [vmem:[#allocation2 + $0xa0] sm:$0xff] %vm255_vm0, %v4968_v3  ;;  %277 = vst.msk [vmem:[#allocation2 + $0xb8] sm:$0xff] %vm255_vm0, %v4968_v3 }
  0x52   : > { %280 = vst.msk [vmem:[#allocation2 + $0xd0] sm:$0xff] %vm255_vm0, %v4968_v3  ;;  %283 = vst.msk [vmem:[#allocation2 + $0xe8] sm:$0xff] %vm255_vm0, %v4968_v3 }
  0x53   : > { %286 = vst.msk [vmem:[#allocation2 + $0x100] sm:$0xff] %vm255_vm0, %v4968_v3  ;;  %289 = vst.msk [vmem:[#allocation2 + $0x118] sm:$0xff] %vm255_vm0, %v4968_v3 }
  0x54   : > { %292 = vst.msk [vmem:[#allocation2 + $0x130] sm:$0xff] %vm255_vm0, %v4968_v3  ;;  %295 = vst.msk [vmem:[#allocation2 + $0x148] sm:$0xff] %vm255_vm0, %v4968_v3 }
  0x55   : > { %298 = vst.msk [vmem:[#allocation2 + $0x160] sm:$0xff] %vm255_vm0, %v4968_v3  ;;  %301 = vst.msk [vmem:[#allocation2 + $0x178] sm:$0xff] %vm255_vm0, %v4968_v3 }
  0x56   : > { %304 = vst.msk [vmem:[#allocation2 + $0x190] sm:$0xff] %vm255_vm0, %v4968_v3  ;;  %307 = vst.msk [vmem:[#allocation2 + $0x1a8] sm:$0xff] %vm255_vm0, %v4968_v3 }
  0x57   : > { %310 = vst.msk [vmem:[#allocation2 + $0x1c0] sm:$0xff] %vm255_vm0, %v4968_v3  ;;  %313 = vst.msk [vmem:[#allocation2 + $0x1d8] sm:$0xff] %vm255_vm0, %v4968_v3 }
  0x58   : > { %316 = vst.msk [vmem:[#allocation2 + $0x1f0] sm:$0xff] %vm255_vm0, %v4968_v3  ;;  %319 = vst.msk [vmem:[#allocation2 + $0x208] sm:$0xff] %vm255_vm0, %v4968_v3 }
  0x59   : > { %322 = vst.msk [vmem:[#allocation2 + $0x220] sm:$0xff] %vm255_vm0, %v4968_v3  ;;  %325 = vst.msk [vmem:[#allocation2 + $0x238] sm:$0xff] %vm255_vm0, %v4968_v3 }
  0x5a   : > { %328 = vst.msk [vmem:[#allocation2 + $0x250] sm:$0xff] %vm255_vm0, %v4968_v3  ;;  %331 = vst.msk [vmem:[#allocation2 + $0x268] sm:$0xff] %vm255_vm0, %v4968_v3 }
  0x5b   : > { %334 = vst.msk [vmem:[#allocation2 + $0x280] sm:$0xff] %vm255_vm0, %v4968_v3  ;;  %337 = vst.msk [vmem:[#allocation2 + $0x298] sm:$0xff] %vm255_vm0, %v4968_v3 }
  0x5c   : > { %340 = vst.msk [vmem:[#allocation2 + $0x2b0] sm:$0xff] %vm255_vm0, %v4968_v3  ;;  %343 = vst.msk [vmem:[#allocation2 + $0x2c8] sm:$0xff] %vm255_vm0, %v4968_v3 }
  0x5d   : > { %346 = vst.msk [vmem:[#allocation2 + $0x2e0] sm:$0xff] %vm255_vm0, %v4968_v3  ;;  %349 = vst.msk [vmem:[#allocation2 + $0x2f8] sm:$0xff] %vm255_vm0, %v4968_v3 }
  0x5e   : > { %352 = vst.msk [vmem:[#allocation2 + $0x310] sm:$0xff] %vm255_vm0, %v4968_v3  ;;  %355 = vst.msk [vmem:[#allocation2 + $0x328] sm:$0xff] %vm255_vm0, %v4968_v3 }
  0x5f   : > { %358 = vst.msk [vmem:[#allocation2 + $0x340] sm:$0xff] %vm255_vm0, %v4968_v3  ;;  %361 = vst.msk [vmem:[#allocation2 + $0x358] sm:$0xff] %vm255_vm0, %v4968_v3 }
  0x60   : > { %364 = vst.msk [vmem:[#allocation2 + $0x370] sm:$0xff] %vm255_vm0, %v4968_v3  ;;  %367 = vst.msk [vmem:[#allocation2 + $0x388] sm:$0xff] %vm255_vm0, %v4968_v3 }
  0x61   : > { %370 = vst.msk [vmem:[#allocation2 + $0x3a0] sm:$0xff] %vm255_vm0, %v4968_v3  ;;  %373 = vst.msk [vmem:[#allocation2 + $0x3b8] sm:$0xff] %vm255_vm0, %v4968_v3 }
  0x62   : > { %376 = vst.msk [vmem:[#allocation2 + $0x3d0] sm:$0xff] %vm255_vm0, %v4968_v3  ;;  %379 = vst.msk [vmem:[#allocation2 + $0x3e8] sm:$0xff] %vm255_vm0, %v4968_v3 }
  0x63   : > { %382 = vst.msk [vmem:[#allocation2 + $0x400] sm:$0xff] %vm255_vm0, %v4968_v3  ;;  %385 = vst.msk [vmem:[#allocation2 + $0x418] sm:$0xff] %vm255_vm0, %v4968_v3 }
  0x64   : > { %388 = vst.msk [vmem:[#allocation2 + $0x430] sm:$0xff] %vm255_vm0, %v4968_v3  ;;  %391 = vst.msk [vmem:[#allocation2 + $0x448] sm:$0xff] %vm255_vm0, %v4968_v3 }
  0x65   : > { %394 = vst.msk [vmem:[#allocation2 + $0x460] sm:$0xff] %vm255_vm0, %v4968_v3  ;;  %397 = vst.msk [vmem:[#allocation2 + $0x478] sm:$0xff] %vm255_vm0, %v4968_v3 }
  0x66   : > { %400 = vst.msk [vmem:[#allocation2 + $0x490] sm:$0xff] %vm255_vm0, %v4968_v3  ;;  %403 = vst.msk [vmem:[#allocation2 + $0x4a8] sm:$0xff] %vm255_vm0, %v4968_v3 }
  0x67   : > { %406 = vst.msk [vmem:[#allocation2 + $0x4c0] sm:$0xff] %vm255_vm0, %v4968_v3  ;;  %409 = vst.msk [vmem:[#allocation2 + $0x4d8] sm:$0xff] %vm255_vm0, %v4968_v3 }
  0x68   : > { %412 = vst.msk [vmem:[#allocation2 + $0x4f0] sm:$0xff] %vm255_vm0, %v4968_v3  ;;  %415 = vst.msk [vmem:[#allocation2 + $0x508] sm:$0xff] %vm255_vm0, %v4968_v3 }
  0x69   : > { %418 = vst.msk [vmem:[#allocation2 + $0x520] sm:$0xff] %vm255_vm0, %v4968_v3  ;;  %421 = vst.msk [vmem:[#allocation2 + $0x538] sm:$0xff] %vm255_vm0, %v4968_v3 }
  0x6a   : > { %424 = vst.msk [vmem:[#allocation2 + $0x550] sm:$0xff] %vm255_vm0, %v4968_v3  ;;  %427 = vst.msk [vmem:[#allocation2 + $0x568] sm:$0xff] %vm255_vm0, %v4968_v3 }
  0x6b   : > { %430 = vst.msk [vmem:[#allocation2 + $0x580] sm:$0xff] %vm255_vm0, %v4968_v3  ;;  %433 = vst.msk [vmem:[#allocation2 + $0x598] sm:$0xff] %vm255_vm0, %v4968_v3 }
  0x6c   : > { %436 = vst.msk [vmem:[#allocation2 + $0x5b0] sm:$0xff] %vm255_vm0, %v4968_v3  ;;  %439 = vst.msk [vmem:[#allocation2 + $0x5c8] sm:$0xff] %vm255_vm0, %v4968_v3 }
  0x6d   : > { %442 = vst.msk [vmem:[#allocation2 + $0x5e0] sm:$0xff] %vm255_vm0, %v4968_v3  ;;  %445 = vst.msk [vmem:[#allocation2 + $0x5f8] sm:$0xff] %vm255_vm0, %v4968_v3 }
  0x6e   : > { %448 = vst.msk [vmem:[#allocation2 + $0x610] sm:$0xff] %vm255_vm0, %v4968_v3  ;;  %451 = vst.msk [vmem:[#allocation2 + $0x628] sm:$0xff] %vm255_vm0, %v4968_v3 }
  0x6f   : > { %454 = vst.msk [vmem:[#allocation2 + $0x640] sm:$0xff] %vm255_vm0, %v4968_v3  ;;  %457 = vst.msk [vmem:[#allocation2 + $0x658] sm:$0xff] %vm255_vm0, %v4968_v3 }
  0x70   : > { %460 = vst.msk [vmem:[#allocation2 + $0x670] sm:$0xff] %vm255_vm0, %v4968_v3  ;;  %463 = vst.msk [vmem:[#allocation2 + $0x688] sm:$0xff] %vm255_vm0, %v4968_v3 }
  0x71   : > { %466 = vst.msk [vmem:[#allocation2 + $0x6a0] sm:$0xff] %vm255_vm0, %v4968_v3  ;;  %469 = vst.msk [vmem:[#allocation2 + $0x6b8] sm:$0xff] %vm255_vm0, %v4968_v3 }
  0x72 LB: >> { %s4135_s22 = sshll.u32 %s4962_s28, 3  ;;  %s4969_s8 = smov 127   ;;  %v4970_v22 = vmov 0   ;;  %vm543_vm1 = vcmask 1039360   ;;  %vm558_vm2 = vcmask 1043456   ;;  %v4906_v37 = vld [vmem:[%s6452_s1 + $0x10] sm:$0xff]   ;;  %s4962_s28 = sphi %s5388_s28, %s484_s28  }
  0x73   : >> { %s486_s29 = sshra.s32 %s4135_s22, 3  ;;  %600 = vmatprep.mubr.bf16.mxu1 %v4970_v22  ;;  %879 = vmatprep.mubr.bf16.mxu0 %v4970_v22  ;;  %s4971_s9 = smov 126   ;;  %vm824_vm3 = vcmask 1031168   ;;  %vm551_vm4 = vcmask 195584   ;;  %v4907_v45 = vld [vmem:[%s6452_s1 + $0x18] sm:$0xff]   ;;  %v5496_v51 = vld [vmem:[%s6452_s1 + $0x20] sm:$0xff]  }
  0x74   : >> { %s4326_s30 = smul.u32 24, %s486_s29  ;;  %4904 = vset.pattern.permute.xlu0 %v4970_v22  ;;  %4905 = vset.pattern.permute.xlu1 %v4970_v22  ;;  %s4972_s10 = smov 110   ;;  %vm988_vm5 = vcmask 900096   ;;  %v5511_v58 = vld [vmem:[%s6452_s1 + $0x28] sm:$0xff]   ;;  %vm1152_vm6 = vcmask 891904   ;;  %vm1316_vm7 = vcmask 883712  }
  0x75   : >> { %s4973_s11 = smov 109   ;;  %s4974_s12 = smov 108   ;;  %vm1480_vm8 = vcmask 752640   ;;  %vm1644_vm9 = vcmask 744448   ;;  %vm1808_vm10 = vcmask 736256   ;;  %vm2081_vm11 = vcmask 1047704  }
  0x76   : >> { %s490_s7 = scalar_lea.vmem %s5381_s24, %s4326_s30  ;;  %s4975_s13 = smov 92   ;;  %vm2055_vm12 = vcmask 154624   ;;  %vm2084_vm13 = vcmask 416768  }
  0x77   : >> { %v492_v10 = vld [vmem:[%s490_s7 + $0x8] sm:$0xff]  ;;  %v495_v11 = vld [vmem:[%s490_s7 + $0x20] sm:$0xff]  ;;  %v494_v14 = vld [vmem:[%s490_s7 + $0x18] sm:$0xff]  ;;  %s4976_s14 = smov 91   ;;  %s4977_s15 = smov 90  }
  0x78   : >> { %v491_v12 = vld [vmem:[%s490_s7] sm:$0xff]  ;;  %v5395_v13 = vpack.c.bf16 %v495_v11, %v492_v10  ;;  %v493_v15 = vld [vmem:[%s490_s7 + $0x10] sm:$0xff]  ;;  %v496_v16 = vld [vmem:[%s490_s7 + $0x28] sm:$0xff] }
  0x79   : >> { %v5397_v17 = vpack.c.bf16 %v494_v14, %v491_v12  ;;  %v497_v18 = vld [vmem:[%s490_s7 + $0x30] sm:$0xff]  ;;  %v498_v19 = vld [vmem:[%s490_s7 + $0x38] sm:$0xff]  ;;  %v5400_v20 = vpack.c.bf16 %v496_v16, %v493_v15  ;;  %v499_v21 = vld [vmem:[%s490_s7 + $0x40] sm:$0xff] }
  0x7a   : >> { %533 = vrot.lane.b32.xlu0 %v5395_v13, %s4969_s8  ;;  %v5404_v23 = vpack.c.bf16 %v497_v18, %v497_v18  ;;  %v5410_v24 = vpack.c.bf16 %v498_v19, %v498_v19  ;;  %v5413_v25 = vpack.c.bf16 %v499_v21, %v499_v21  ;;  %v4910_v10 = vld [vmem:[%s6452_s1] sm:$0xff]   ;;  %v5541_v14 = vld [vmem:[%s6452_s1 + $0x30] sm:$0xff]   ;;  %v4912_v19 = vld [vmem:[%s6452_s1 + $0x8] sm:$0xff]  }
  0x7b   : >> { %531 = vrot.lane.b32.xlu1 %v5397_v17, %s4969_s8 }
  0x7c   : >> { %v687_v62 = vsel %vm558_vm2, %v5404_v23, 0 }
  0x7e   : >> { %535 = vrot.lane.b32.xlu0 %v5400_v20, %s4969_s8 }
  0x7f   : >> { %537 = vrot.lane.b32.xlu1 %v5404_v23, %s4969_s8 }
  0x82   : >> { %539 = vrot.lane.b32.xlu0 %v5410_v24, %s4969_s8 }
  0x83   : >> { %541 = vrot.lane.b32.xlu1 %v5413_v25, %s4969_s8 }
  0x86   : >> { %814 = vrot.lane.b32.xlu0 %v5395_v13, %s4971_s9 }
  0x87   : >> { %816 = vrot.lane.b32.xlu1 %v5400_v20, %s4971_s9 }
  0x8a   : >> { %812 = vrot.lane.b32.xlu0 %v5397_v17, %s4971_s9 }
  0x8b   : >> { %818 = vrot.lane.b32.xlu1 %v5404_v23, %s4971_s9 }
  0x8e   : >> { %820 = vrot.lane.b32.xlu0 %v5410_v24, %s4971_s9 }
  0x8f   : >> { %822 = vrot.lane.b32.xlu1 %v5413_v25, %s4971_s9 }
  0x92   : >> { %978 = vrot.lane.b32.xlu0 %v5395_v13, %s4972_s10 }
  0x93   : >> { %980 = vrot.lane.b32.xlu1 %v5400_v20, %s4972_s10 }
  0x96   : >> { %976 = vrot.lane.b32.xlu0 %v5397_v17, %s4972_s10 }
  0x97   : >> { %982 = vrot.lane.b32.xlu1 %v5404_v23, %s4972_s10 }
  0x9a   : >> { %984 = vrot.lane.b32.xlu0 %v5410_v24, %s4972_s10 }
  0x9b   : >> { %986 = vrot.lane.b32.xlu1 %v5413_v25, %s4972_s10 }
  0x9e   : >> { %1142 = vrot.lane.b32.xlu0 %v5395_v13, %s4973_s11 }
  0x9f   : >> { %1144 = vrot.lane.b32.xlu1 %v5400_v20, %s4973_s11 }
  0xa2   : >> { %1140 = vrot.lane.b32.xlu0 %v5397_v17, %s4973_s11 }
  0xa3   : >> { %1146 = vrot.lane.b32.xlu1 %v5404_v23, %s4973_s11 }
  0xa6   : >> { %1148 = vrot.lane.b32.xlu0 %v5410_v24, %s4973_s11 }
  0xa7   : >> { %1150 = vrot.lane.b32.xlu1 %v5413_v25, %s4973_s11 }
  0xaa   : >> { %1306 = vrot.lane.b32.xlu0 %v5395_v13, %s4974_s12 }
  0xab   : >> { %1308 = vrot.lane.b32.xlu1 %v5400_v20, %s4974_s12 }
  0xae   : >> { %1304 = vrot.lane.b32.xlu0 %v5397_v17, %s4974_s12 }
  0xaf   : >> { %1310 = vrot.lane.b32.xlu1 %v5404_v23, %s4974_s12 }
  0xb2   : >> { %1312 = vrot.lane.b32.xlu0 %v5410_v24, %s4974_s12 }
  0xb3   : >> { %1314 = vrot.lane.b32.xlu1 %v5413_v25, %s4974_s12  ;;  %s4978_s12 = smov 19  }
  0xb6   : >> { %1470 = vrot.lane.b32.xlu0 %v5395_v13, %s4975_s13 }
  0xb7   : >> { %1472 = vrot.lane.b32.xlu1 %v5400_v20, %s4975_s13 }
  0xba   : >> { %1468 = vrot.lane.b32.xlu0 %v5397_v17, %s4975_s13 }
  0xbb   : >> { %1474 = vrot.lane.b32.xlu1 %v5404_v23, %s4975_s13 }
  0xbe   : >> { %1476 = vrot.lane.b32.xlu0 %v5410_v24, %s4975_s13 }
  0xbf   : >> { %1478 = vrot.lane.b32.xlu1 %v5413_v25, %s4975_s13  ;;  %s4327_s13 = sshll.u32 %s4962_s28, 5  ;;  %s484_s28 = sadd.s32 1, %s4962_s28  }
  0xc0   : >> { %p481_p4 = scmp.ge.s32.totalorder %s484_s28, 16  }
  0xc1   : > { %s5761_s18 = smov (%p481_p4), 0  }
  0xc2   : >> { %1634 = vrot.lane.b32.xlu0 %v5395_v13, %s4976_s14 }
  0xc3   : >> { %1636 = vrot.lane.b32.xlu1 %v5400_v20, %s4976_s14 }
  0xc6   : >> { %1632 = vrot.lane.b32.xlu0 %v5397_v17, %s4976_s14 }
  0xc7   : >> { %1638 = vrot.lane.b32.xlu1 %v5404_v23, %s4976_s14 }
  0xca   : >> { %1640 = vrot.lane.b32.xlu0 %v5410_v24, %s4976_s14 }
  0xcb   : >> { %1642 = vrot.lane.b32.xlu1 %v5413_v25, %s4976_s14  ;;  %s4328_s14 = sadd.s32 32, %s4327_s13 }
  0xce   : >> { %1798 = vrot.lane.b32.xlu0 %v5395_v13, %s4977_s15 }
  0xcf   : >> { %1800 = vrot.lane.b32.xlu1 %v5400_v20, %s4977_s15 }
  0xd2   : >> { %1796 = vrot.lane.b32.xlu0 %v5397_v17, %s4977_s15 }
  0xd3   : >> { %1802 = vrot.lane.b32.xlu1 %v5404_v23, %s4977_s15 }
  0xd6   : >> { %1804 = vrot.lane.b32.xlu0 %v5410_v24, %s4977_s15 }
  0xd7   : >> { %1806 = vrot.lane.b32.xlu1 %v5413_v25, %s4977_s15  ;;  %s2076_s15 = sshra.s32 %s4328_s14, 3 }
  0xd8   : >> { %s4329_s16 = smul.u32 24, %s2076_s15 }
  0xda   : >> { %1947 = vperm.xlu0 %4904, %v5045_v1   ;;  %s5728_s17 = scalar_lea.vmem [#allocation2], %s4329_s16 }
  0xdb   : >> { %1952 = vperm.xlu1 %4905, %v5050_v2  }
  0xde   : >> { %1962 = vperm.xlu0 %4904, %v5204_v5  }
  0xdf   : >> { %1957 = vperm.xlu1 %4905, %v5199_v4  }
  0xec   : >> { %v534_v26 = vpop.permute.xlu0 %533 }
  0xed   : >> { %v532_v27 = vpop.permute.xlu1 %531 }
  0xee   : >> { %v544_v31 = vsel %vm543_vm1, %v532_v27, %v534_v26 }
  0xf0   : >> { %v536_v28 = vpop.permute.xlu0 %535 }
  0xf1   : >> { %v538_v29 = vpop.permute.xlu1 %537  ;;  %v545_v30 = vsel %vm543_vm1, %v534_v26, %v536_v28  ;;  %v4913_v26 = vld [vmem:[%s6452_s1 + $0x38] sm:$0xff]  }
  0xf2   : >> { %568 = vmatprep.subr.bf16.mxu1 %v545_v30 }
  0xf3   : >> { %569 = vmatpush1.bf16.msra.mxu1 %v544_v31 }
  0xf4   : >> { %v540_v32 = vpop.permute.xlu0 %539 }
  0xf5   : >> { %v546_v33 = vsel %vm543_vm1, %v538_v29, %v540_v32  ;;  %v542_v34 = vpop.permute.xlu1 %541 }
  0xf6   : >> { %v547_v35 = vsel %vm543_vm1, %v540_v32, %v542_v34  ;;  %v560_v36 = vsel %vm558_vm2, %v546_v33, 0  ;;  %v566_v44 = vsel %vm558_vm2, %v542_v34, 0  ;;  %v4914_v32 = vld [vmem:[%s6452_s1 + $0x40] sm:$0xff]  }
  0xf7   : >> { %4143 = vmatprep.subr.msk.bf16.mxu1 %vm558_vm2, %v547_v35 }
  0xf8   : >> { %571 = vmatpush1.bf16.msra.mxu1 %v560_v36  ;;  %v815_v38 = vpop.permute.xlu0 %814 }
  0xf9   : >> { %4441 = vmatprep.subr.bf16.mxu1 %v536_v28  ;;  %v5472_v39 = vpop.permute.xlu1 %816 }
  0xfa   : >> { %v826_v40 = vsel %vm824_vm3, %v815_v38, %v5472_v39 }
  0xfb   : >> { %4144 = vmatmul.mubr.msk.bf16.vlgmr.msra.gmra.mrb[0].mxu1 %vm551_vm4, %v4906_v37  ;;  %847 = vmatprep.subr.bf16.mxu0 %v826_v40 }
  0xfc   : >> { %4442 = vmatpush3.bf16.msra.mxu1 %v536_v28  ;;  %v813_v41 = vpop.permute.xlu0 %812  ;;  %610 = vmatprep.mubr.bf16.mxu1 %v4970_v22 }
  0xfd   : >> { %4849 = vmatprep.subr.msk.bf16.mxu1 %vm558_vm2, %v542_v34  ;;  %v819_v42 = vpop.permute.xlu1 %818  ;;  %v825_v43 = vsel %vm824_vm3, %v813_v41, %v815_v38 }
  0xfe   : >> { %848 = vmatpush1.bf16.msra.mxu0 %v825_v43  ;;  %v4915_v43 = vld [vmem:[%s6452_s1 + $0x48] sm:$0xff]  }
 0x100   : >> { %4444 = vmatpush3.bf16.msra.mxu1 %v566_v44  ;;  %v821_v46 = vpop.permute.xlu0 %820 }
 0x101   : >> { %v827_v47 = vsel %vm824_vm3, %v819_v42, %v821_v46  ;;  %v5485_v48 = vpop.permute.xlu1 %822  ;;  %695 = vmatprep.subr.bf16.mxu1 %v5395_v13 }
 0x102   : >> { %v828_v49 = vsel %vm824_vm3, %v821_v46, %v5485_v48  ;;  %v839_v50 = vsel %vm558_vm2, %v827_v47, 0  ;;  %v4916_v47 = vld [vmem:[%s6452_s1 + $0x50] sm:$0xff]  }
 0x103   : >> { %4145 = vmatmul.mubr.msk.bf16.gmra.mrb[4].mxu1 %vm551_vm4, %v4907_v45  ;;  %4161 = vmatprep.subr.msk.bf16.mxu0 %vm558_vm2, %v828_v49 }
 0x104   : >> { %850 = vmatpush1.bf16.msra.mxu0 %v839_v50  ;;  %v979_v52 = vpop.permute.xlu0 %978  ;;  %4445 = vmatprep.mubr.msk.bf16.mxu1 %vm551_vm4, %v4906_v37  ;;  %v845_v37 = vsel %vm558_vm2, %v5485_v48, 0 }
 0x105   : >> { %v5499_v53 = vpop.permute.xlu1 %980 }
 0x106   : >> { %v990_v54 = vsel %vm988_vm5, %v979_v52, %v5499_v53 }
 0x107   : >> { %4162 = vmatmul.mubr.msk.bf16.vlgmr.msra.gmra.mrb[0].mxu0 %vm551_vm4, %v5496_v51  ;;  %1011 = vmatprep.subr.bf16.mxu0 %v990_v54 }
 0x108   : >> { %v977_v55 = vpop.permute.xlu0 %976  ;;  %889 = vmatprep.mubr.bf16.mxu0 %v4970_v22 }
 0x109   : >> { %v989_v56 = vsel %vm988_vm5, %v977_v55, %v979_v52  ;;  %v983_v57 = vpop.permute.xlu1 %982 }
 0x10a   : >> { %1012 = vmatpush1.bf16.msra.mxu0 %v989_v56  ;;  %v4917_v56 = vld [vmem:[%s6452_s1 + $0x58] sm:$0xff]  }
 0x10b   : >> { %4446 = vmatmul.mubr.msk.bf16.vlgmr.msra.gmra.mrb[8].mxu1 %vm551_vm4, %v4907_v45 }
 0x10c   : >> { %696 = vmatpush1.bf16.msra.mxu1 %v5397_v17  ;;  %v985_v59 = vpop.permute.xlu0 %984  ;;  %727 = vmatprep.mubr.bf16.mxu1 %v4970_v22  ;;  %v693_v17 = vsel %vm558_vm2, %v5413_v25, 0 }
 0x10d   : >> { %v991_v60 = vsel %vm988_vm5, %v983_v57, %v985_v59  ;;  %v5516_v61 = vpop.permute.xlu1 %986  ;;  %4150 = vmatprep.subr.msk.bf16.mxu1 %vm558_vm2, %v5410_v24 }
 0x10e   : >> { %v1003_v63 = vsel %vm558_vm2, %v991_v60, 0  ;;  %v992_v3 = vsel %vm988_vm5, %v985_v59, %v5516_v61  ;;  %v1009_v46 = vsel %vm558_vm2, %v5516_v61, 0 }
 0x10f   : >> { %4163 = vmatmul.mubr.msk.bf16.gmra.mrb[4].mxu0 %vm551_vm4, %v5511_v58  ;;  %4172 = vmatprep.subr.msk.bf16.mxu0 %vm558_vm2, %v992_v3 }
 0x110   : >> { %698 = vmatpush1.bf16.msra.mxu1 %v687_v62  ;;  %1014 = vmatpush1.bf16.msra.mxu0 %v1003_v63  ;;  %v1143_v11 = vpop.permute.xlu0 %1142 }
 0x111   : >> { %4449 = vmatprep.subr.bf16.mxu1 %v5400_v20  ;;  %v5532_v12 = vpop.permute.xlu1 %1144  ;;  %1043 = vmatprep.mubr.bf16.mxu0 %v4970_v22 }
 0x112   : >> { %v1154_v13 = vsel %vm1152_vm6, %v1143_v11, %v5532_v12 }
 0x113   : >> { %4151 = vmatmul.mubr.msk.bf16.vlgmr.msra.gmra.mrb[0].mxu1 %vm551_vm4, %v4910_v10  ;;  %1175 = vmatprep.subr.bf16.mxu0 %v1154_v13 }
 0x114   : >> { %4450 = vmatpush3.bf16.msra.mxu1 %v5400_v20  ;;  %v1141_v15 = vpop.permute.xlu0 %1140  ;;  %737 = vmatprep.mubr.bf16.mxu1 %v4970_v22 }
 0x115   : >> { %v1153_v16 = vsel %vm1152_vm6, %v1141_v15, %v1143_v11  ;;  %4850 = vmatprep.subr.msk.bf16.mxu1 %vm558_vm2, %v5413_v25  ;;  %v1147_v18 = vpop.permute.xlu1 %1146 }
 0x117   : >> { %4173 = vmatmul.mubr.msk.bf16.vlgmr.msra.gmra.mrb[0].mxu0 %vm551_vm4, %v5541_v14 }
 0x118   : >> { %4452 = vmatpush3.bf16.msra.mxu1 %v693_v17  ;;  %1176 = vmatpush1.bf16.msra.mxu0 %v1153_v16  ;;  %v1149_v20 = vpop.permute.xlu0 %1148  ;;  %v4919_v17 = vld [vmem:[%s6452_s1 + $0x68] sm:$0xff]  }
 0x119   : >> { %4457 = vmatprep.subr.bf16.mxu1 %v5472_v39  ;;  %v1155_v21 = vsel %vm1152_vm6, %v1147_v18, %v1149_v20  ;;  %v5557_v23 = vpop.permute.xlu1 %1150  ;;  %1053 = vmatprep.mubr.bf16.mxu0 %v4970_v22 }
 0x11a   : >> { %v1167_v24 = vsel %vm558_vm2, %v1155_v21, 0  ;;  %v1156_v25 = vsel %vm1152_vm6, %v1149_v20, %v5557_v23  ;;  %v1173_v60 = vsel %vm558_vm2, %v5557_v23, 0  ;;  %v4920_v20 = vld [vmem:[%s6452_s1 + $0x70] sm:$0xff]  }
 0x11b   : >> { %4152 = vmatmul.mubr.msk.bf16.gmra.mrb[4].mxu1 %vm551_vm4, %v4912_v19  ;;  %4183 = vmatprep.subr.msk.bf16.mxu0 %vm558_vm2, %v1156_v25 }
 0x11c   : >> { %1178 = vmatpush1.bf16.msra.mxu0 %v1167_v24  ;;  %v1307_v27 = vpop.permute.xlu0 %1306  ;;  %4453 = vmatprep.mubr.msk.bf16.mxu1 %vm551_vm4, %v4910_v10 }
 0x11d   : >> { %v5569_v28 = vpop.permute.xlu1 %1308 }
 0x11e   : >> { %v1318_v29 = vsel %vm1316_vm7, %v1307_v27, %v5569_v28 }
 0x11f   : >> { %4174 = vmatmul.mubr.msk.bf16.gmra.mrb[4].mxu0 %vm551_vm4, %v4913_v26  ;;  %1339 = vmatprep.subr.bf16.mxu0 %v1318_v29  ;;  %v4921_v29 = vld [vmem:[%s6452_s1 + $0x78] sm:$0xff]  }
 0x120   : >> { %v1305_v30 = vpop.permute.xlu0 %1304  ;;  %1207 = vmatprep.mubr.bf16.mxu0 %v4970_v22 }
 0x121   : >> { %v1311_v31 = vpop.permute.xlu1 %1310  ;;  %v1317_v34 = vsel %vm1316_vm7, %v1305_v30, %v1307_v27 }
 0x123   : >> { %4454 = vmatmul.mubr.msk.bf16.vlgmr.msra.gmra.mrb[8].mxu1 %vm551_vm4, %v4912_v19 }
 0x124   : >> { %4458 = vmatpush3.bf16.msra.mxu1 %v5472_v39  ;;  %v1313_v33 = vpop.permute.xlu0 %1312  ;;  %4461 = vmatprep.mubr.msk.bf16.mxu1 %vm551_vm4, %v5496_v51 }
 0x125   : >> { %4851 = vmatprep.subr.msk.bf16.mxu1 %vm558_vm2, %v5485_v48  ;;  %v5585_v35 = vpop.permute.xlu1 %1314  ;;  %v1319_v36 = vsel %vm1316_vm7, %v1311_v31, %v1313_v33  ;;  %v4922_v31 = vld [vmem:[%s6452_s1 + $0x80] sm:$0xff]  }
 0x126   : >> { %v1320_v38 = vsel %vm1316_vm7, %v1313_v33, %v5585_v35  ;;  %v1331_v40 = vsel %vm558_vm2, %v1319_v36, 0  ;;  %v1337_v16 = vsel %vm558_vm2, %v5585_v35, 0 }
 0x127   : >> { %4184 = vmatmul.mubr.msk.bf16.vlgmr.msra.gmra.mrb[0].mxu0 %vm551_vm4, %v4914_v32 }
 0x128   : >> { %4460 = vmatpush3.bf16.msra.mxu1 %v845_v37  ;;  %1340 = vmatpush1.bf16.msra.mxu0 %v1317_v34  ;;  %v1471_v39 = vpop.permute.xlu0 %1470 }
 0x129   : >> { %4465 = vmatprep.subr.bf16.mxu1 %v5499_v53  ;;  %1217 = vmatprep.mubr.bf16.mxu0 %v4970_v22  ;;  %v5596_v41 = vpop.permute.xlu1 %1472 }
 0x12a   : >> { %4194 = vmatprep.subr.msk.bf16.mxu0 %vm558_vm2, %v1320_v38  ;;  %v1482_v42 = vsel %vm1480_vm8, %v1471_v39, %v5596_v41 }
 0x12c   : >> { %1342 = vmatpush1.bf16.msra.mxu0 %v1331_v40  ;;  %v1469_v44 = vpop.permute.xlu0 %1468 }
 0x12d   : >> { %1503 = vmatprep.subr.bf16.mxu0 %v1482_v42  ;;  %v1475_v45 = vpop.permute.xlu1 %1474  ;;  %v1481_v50 = vsel %vm1480_vm8, %v1469_v44, %v1471_v39 }
 0x12f   : >> { %4462 = vmatmul.mubr.msk.bf16.vlgmr.msra.gmra.mrb[8].mxu1 %vm551_vm4, %v5511_v58  ;;  %4185 = vmatmul.mubr.msk.bf16.gmra.mrb[4].mxu0 %vm551_vm4, %v4915_v43 }
 0x130   : >> { %4466 = vmatpush3.bf16.msra.mxu1 %v5499_v53  ;;  %1371 = vmatprep.mubr.bf16.mxu0 %v4970_v22  ;;  %v1477_v48 = vpop.permute.xlu0 %1476 }
 0x131   : >> { %4852 = vmatprep.subr.msk.bf16.mxu1 %vm558_vm2, %v5516_v61  ;;  %4469 = vmatprep.mubr.msk.bf16.mxu1 %vm551_vm4, %v5541_v14  ;;  %v5618_v49 = vpop.permute.xlu1 %1478  ;;  %v1483_v51 = vsel %vm1480_vm8, %v1475_v45, %v1477_v48  ;;  %v4918_v61 = vld [vmem:[%s6452_s1 + $0x60] sm:$0xff]  }
 0x132   : >> { %v1484_v52 = vsel %vm1480_vm8, %v1477_v48, %v5618_v49  ;;  %v1495_v55 = vsel %vm558_vm2, %v1483_v51, 0 }
 0x134   : >> { %4468 = vmatpush3.bf16.msra.mxu1 %v1009_v46  ;;  %v1635_v53 = vpop.permute.xlu0 %1634 }
 0x135   : >> { %4473 = vmatprep.subr.bf16.mxu1 %v5532_v12  ;;  %v5627_v54 = vpop.permute.xlu1 %1636 }
 0x136   : >> { %v1646_v57 = vsel %vm1644_vm9, %v1635_v53, %v5627_v54 }
 0x137   : >> { %4195 = vmatmul.mubr.msk.bf16.vlgmr.msra.gmra.mrb[0].mxu0 %vm551_vm4, %v4916_v47 }
 0x138   : >> { %1504 = vmatpush1.bf16.msra.mxu0 %v1481_v50  ;;  %1381 = vmatprep.mubr.bf16.mxu0 %v4970_v22  ;;  %v1633_v58 = vpop.permute.xlu0 %1632 }
 0x139   : >> { %4205 = vmatprep.subr.msk.bf16.mxu0 %vm558_vm2, %v1484_v52  ;;  %v1639_v59 = vpop.permute.xlu1 %1638  ;;  %v1645_v3 = vsel %vm1644_vm9, %v1633_v58, %v1635_v53 }
 0x13b   : >> { %4470 = vmatmul.mubr.msk.bf16.vlgmr.msra.gmra.mrb[8].mxu1 %vm551_vm4, %v4913_v26  ;;  %v1501_v26 = vsel %vm558_vm2, %v5618_v49, 0 }
 0x13c   : >> { %4474 = vmatpush3.bf16.msra.mxu1 %v5532_v12  ;;  %1506 = vmatpush1.bf16.msra.mxu0 %v1495_v55  ;;  %v1641_v62 = vpop.permute.xlu0 %1640 }
 0x13d   : >> { %4853 = vmatprep.subr.msk.bf16.mxu1 %vm558_vm2, %v5557_v23  ;;  %4477 = vmatprep.mubr.msk.bf16.mxu1 %vm551_vm4, %v4914_v32  ;;  %v1643_v63 = vpop.permute.xlu1 %1642  ;;  %v1647_v10 = vsel %vm1644_vm9, %v1639_v59, %v1641_v62  ;;  %v4923_v32 = vld [vmem:[%s6452_s1 + $0x88] sm:$0xff]  }
 0x13e   : >> { %1667 = vmatprep.subr.bf16.mxu0 %v1646_v57  ;;  %v1648_v11 = vsel %vm1644_vm9, %v1641_v62, %v1643_v63  ;;  %v1659_v14 = vsel %vm558_vm2, %v1647_v10, 0  ;;  %v1665_v30 = vsel %vm558_vm2, %v1643_v63, 0 }
 0x13f   : >> { %4196 = vmatmul.mubr.msk.bf16.gmra.mrb[4].mxu0 %vm551_vm4, %v4917_v56 }
 0x140   : >> { %4476 = vmatpush3.bf16.msra.mxu1 %v1173_v60  ;;  %1535 = vmatprep.mubr.bf16.mxu0 %v4970_v22  ;;  %v1799_v12 = vpop.permute.xlu0 %1798 }
 0x141   : >> { %4481 = vmatprep.subr.bf16.mxu1 %v5569_v28  ;;  %v1801_v13 = vpop.permute.xlu1 %1800 }
 0x142   : >> { %v1810_v15 = vsel %vm1808_vm10, %v1799_v12, %v1801_v13 }
 0x144   : >> { %v1797_v18 = vpop.permute.xlu0 %1796 }
 0x145   : >> { %v1803_v19 = vpop.permute.xlu1 %1802  ;;  %v1809_v24 = vsel %vm1808_vm10, %v1797_v18, %v1799_v12 }
 0x147   : >> { %4478 = vmatmul.mubr.msk.bf16.vlgmr.msra.gmra.mrb[8].mxu1 %vm551_vm4, %v4915_v43  ;;  %4206 = vmatmul.mubr.msk.bf16.vlgmr.msra.gmra.mrb[0].mxu0 %vm551_vm4, %v4918_v61 }
 0x148   : >> { %4482 = vmatpush3.bf16.msra.mxu1 %v5569_v28  ;;  %1668 = vmatpush1.bf16.msra.mxu0 %v1645_v3  ;;  %v1805_v21 = vpop.permute.xlu0 %1804 }
 0x149   : >> { %4854 = vmatprep.subr.msk.bf16.mxu1 %vm558_vm2, %v5585_v35  ;;  %1545 = vmatprep.mubr.bf16.mxu0 %v4970_v22  ;;  %v1807_v23 = vpop.permute.xlu1 %1806  ;;  %v1811_v25 = vsel %vm1808_vm10, %v1803_v19, %v1805_v21 }
 0x14a   : >> { %4216 = vmatprep.subr.msk.bf16.mxu0 %vm558_vm2, %v1648_v11  ;;  %4485 = vmatprep.mubr.msk.bf16.mxu1 %vm551_vm4, %v4916_v47  ;;  %v1812_v27 = vsel %vm1808_vm10, %v1805_v21, %v1807_v23  ;;  %v1823_v28 = vsel %vm558_vm2, %v1811_v25, 0  ;;  %v1829_v33 = vsel %vm558_vm2, %v1807_v23, 0 }
 0x14c   : >> { %4484 = vmatpush3.bf16.msra.mxu1 %v1337_v16  ;;  %1670 = vmatpush1.bf16.msra.mxu0 %v1659_v14 }
 0x14d   : >> { %4489 = vmatprep.subr.bf16.mxu1 %v5596_v41  ;;  %1831 = vmatprep.subr.bf16.mxu0 %v1810_v15 }
 0x14f   : >> { %4207 = vmatmul.mubr.msk.bf16.gmra.mrb[4].mxu0 %vm551_vm4, %v4919_v17 }
 0x150   : >> { %1699 = vmatprep.mubr.bf16.mxu0 %v4970_v22 }
 0x153   : >> { %4486 = vmatmul.mubr.msk.bf16.vlgmr.msra.gmra.mrb[8].mxu1 %vm551_vm4, %v4917_v56 }
 0x154   : >> { %4490 = vmatpush3.bf16.msra.mxu1 %v5596_v41  ;;  %4493 = vmatprep.mubr.msk.bf16.mxu1 %vm551_vm4, %v4918_v61  ;;  %v1990_v41 = vlaneseq }
 0x155   : >> { %4855 = vmatprep.subr.msk.bf16.mxu1 %vm558_vm2, %v5618_v49 }
 0x156   : >> { %v1991_v42 = vshrl.u32 %v1990_v41, 7 }
 0x157   : >> { %4217 = vmatmul.mubr.msk.bf16.vlgmr.msra.gmra.mrb[0].mxu0 %vm551_vm4, %v4920_v20 }
 0x158   : >> { %4492 = vmatpush3.bf16.msra.mxu1 %v1501_v26  ;;  %1832 = vmatpush1.bf16.msra.mxu0 %v1809_v24  ;;  %v1992_v43 = vsub.s32 0, %v1991_v42  ;;  %v1996_v45 = vsub.s32 1, %v1991_v42 }
 0x159   : >> { %4497 = vmatprep.subr.bf16.mxu1 %v5627_v54  ;;  %1709 = vmatprep.mubr.bf16.mxu0 %v4970_v22  ;;  %v1948_v48 = vpop.permute.xlu0 %1947 }
 0x15a   : >> { %4227 = vmatprep.subr.msk.bf16.mxu0 %vm558_vm2, %v1812_v27  ;;  %v1953_v51 = vpop.permute.xlu1 %1952  ;;  %v1993_v55 = vrot.slane %v5040_v0, %v1992_v43  ;;  %v1997_v58 = vrot.slane %v5040_v0, %v1996_v45 }
 0x15c   : >> { %1834 = vmatpush1.bf16.msra.mxu0 %v1823_v28 }
 0x15f   : >> { %4494 = vmatmul.mubr.msk.bf16.vlgmr.msra.gmra.mrb[8].mxu1 %vm551_vm4, %v4919_v17  ;;  %4218 = vmatmul.mubr.msk.bf16.gmra.mrb[4].mxu0 %vm551_vm4, %v4921_v29  ;;  %v1958_v17 = vpop.permute.xlu1 %1957 }
 0x160   : >> { %4498 = vmatpush3.bf16.msra.mxu1 %v5627_v54  ;;  %1863 = vmatprep.mubr.bf16.mxu0 %v4970_v22 }
 0x161   : >> { %4856 = vmatprep.subr.msk.bf16.mxu1 %vm558_vm2, %v1643_v63  ;;  %4501 = vmatprep.mubr.msk.bf16.mxu1 %vm551_vm4, %v4920_v20 }
 0x164   : >> { %4500 = vmatpush3.bf16.msra.mxu1 %v1665_v30 }
 0x165   : >> { %4505 = vmatprep.subr.bf16.mxu1 %v1801_v13 }
 0x167   : >> { %4228 = vmatmul.mubr.msk.bf16.vlgmr.msra.gmra.mrb[0].mxu0 %vm551_vm4, %v4922_v31 }
 0x168   : >> { %1873 = vmatprep.mubr.bf16.mxu0 %v4970_v22 }
 0x16b   : >> { %4502 = vmatmul.mubr.msk.bf16.vlgmr.msra.gmra.mrb[8].mxu1 %vm551_vm4, %v4921_v29  ;;  %v2000_v29 = vsub.s32 2, %v1991_v42 }
 0x16c   : >> { %4506 = vmatpush3.bf16.msra.mxu1 %v1801_v13  ;;  %4509 = vmatprep.mubr.msk.bf16.mxu1 %vm551_vm4, %v4922_v31 }
 0x16d   : >> { %4857 = vmatprep.subr.msk.bf16.mxu1 %vm558_vm2, %v1807_v23  ;;  %v1963_v23 = vpop.permute.xlu0 %1962 }
 0x16f   : >> { %4229 = vmatmul.mubr.msk.bf16.gmra.mrb[4].mxu0 %vm551_vm4, %v4923_v32 }
 0x170   : >> { %4508 = vmatpush3.bf16.msra.mxu1 %v1829_v33 }
 0x177   : >> { %4510 = vmatmul.mubr.msk.bf16.vlgmr.msra.gmra.mrb[8].mxu1 %vm551_vm4, %v4923_v32 }
 0x1e6   : >> { %v729_v34 = vpop.f32.mrb[0].mxu1 }
 0x1e7   : >> { %v731_v22 = vpop.f32.mrb[1].mxu1 }
 0x1e8   : >> { %v733_v35 = vpop.f32.mrb[2].mxu1 }
 0x1e9   : >> { %v735_v36 = vpop.f32.mrb[3].mxu1 }
 0x1ee   : >> { %v739_v37 = vpop.f32.mrb[4].mxu1 }
 0x1ef   : >> { %v741_v38 = vpop.f32.mrb[5].mxu1 }
 0x1f0   : >> { %v743_v39 = vpop.f32.mrb[6].mxu1 }
 0x1f1   : >> { %v745_v40 = vpop.f32.mrb[7].mxu1 }
 0x23a   : >> { %v1865_v44 = vpop.f32.mrb[0].mxu0 }
 0x23b   : >> { %v4657_v46 = vadd.f32 %v1865_v44, %v729_v34  ;;  %v1867_v47 = vpop.f32.mrb[1].mxu0 }
 0x23c   : >> { %v4658_v49 = vadd.f32 %v1867_v47, %v731_v22  ;;  %v1869_v50 = vpop.f32.mrb[2].mxu0 }
 0x23d   : >> { %v1965_v52 = vadd.f32 %v4657_v46, %v1948_v48  ;;  %v4659_v53 = vadd.f32 %v1869_v50, %v733_v35  ;;  %v1871_v54 = vpop.f32.mrb[3].mxu0  ;;  %v2001_v35 = vrot.slane %v5040_v0, %v2000_v29 }
 0x23e   : >> { %v1966_v56 = vadd.f32 %v4658_v49, %v1948_v48  ;;  %v4660_v57 = vadd.f32 %v1871_v54, %v735_v36 }
 0x23f   : >> { %v1977_v59 = vmax.f32 %v1965_v52, 0.0  ;;  %v1968_v60 = vadd.f32 %v4659_v53, %v1953_v51 }
 0x240   : >> { %v1978_v61 = vmax.f32 %v1966_v56, 0.0  ;;  %v1969_v62 = vadd.f32 %v4660_v57, %v1953_v51 }
 0x241   : >> { %v2005_v63 = vmul.f32 %v1993_v55, %v1977_v59  ;;  %v1980_v3 = vmax.f32 %v1968_v60, 0.0 }
 0x242   : >> { %v1981_v10 = vmax.f32 %v1969_v62, 0.0  ;;  %v1875_v11 = vpop.f32.mrb[4].mxu0  ;;  %v2006_v12 = vmul.f32 %v1997_v58, %v1978_v61 }
 0x243   : >> { %v4661_v13 = vadd.f32 %v1875_v11, %v739_v37  ;;  %2031 = vrot.lane.b32.xlu1 %v2005_v63, %s4978_s12  ;;  %v1877_v14 = vpop.f32.mrb[5].mxu0  ;;  %v2008_v26 = vmul.f32 %v1993_v55, %v1980_v3 }
 0x244   : >> { %v4662_v15 = vadd.f32 %v1877_v14, %v741_v38  ;;  %2033 = vrot.lane.b32.xlu0 %v2006_v12, %s4978_s12  ;;  %v1879_v16 = vpop.f32.mrb[6].mxu0  ;;  %v2009_v18 = vmul.f32 %v1997_v58, %v1981_v10 }
 0x245   : >> { %v4663_v19 = vadd.f32 %v1879_v16, %v743_v39  ;;  %v1971_v20 = vadd.f32 %v4661_v13, %v1958_v17  ;;  %v1881_v21 = vpop.f32.mrb[7].mxu0 }
 0x246   : >> { %v1972_v24 = vadd.f32 %v4662_v15, %v1958_v17  ;;  %v4664_v25 = vadd.f32 %v1881_v21, %v745_v40 }
 0x247   : >> { %v1974_v27 = vadd.f32 %v4663_v19, %v1963_v23  ;;  %v1983_v28 = vmax.f32 %v1971_v20, 0.0  ;;  %2039 = vrot.lane.b32.xlu1 %v2009_v18, %s4978_s12 }
 0x248   : >> { %v1984_v30 = vmax.f32 %v1972_v24, 0.0  ;;  %2037 = vrot.lane.b32.xlu0 %v2008_v26, %s4978_s12  ;;  %v1975_v44 = vadd.f32 %v4664_v25, %v1963_v23 }
 0x249   : >> { %v2011_v31 = vmul.f32 %v1993_v55, %v1983_v28  ;;  %v1986_v32 = vmax.f32 %v1974_v27, 0.0 }
 0x24a   : >> { %v4511_v33 = vpop.f32.mrb[8].mxu1  ;;  %v2012_v34 = vmul.f32 %v1997_v58, %v1984_v30 }
 0x24b   : >> { %v1973_v22 = vadd.f32 %v4511_v33, %v1958_v17  ;;  %v1918_v36 = vpop.f32.mrb[9].mxu1  ;;  %2043 = vrot.lane.b32.xlu1 %v2011_v31, %s4978_s12  ;;  %v2014_v43 = vmul.f32 %v1993_v55, %v1986_v32 }
 0x24c   : >> { %v1967_v37 = vadd.f32 %v1948_v48, %v1918_v36  ;;  %v4512_v38 = vpop.f32.mrb[10].mxu1  ;;  %2045 = vrot.lane.b32.xlu0 %v2012_v34, %s4978_s12  ;;  %v1987_v48 = vmax.f32 %v1975_v44, 0.0 }
 0x24d   : >> { %v1985_v39 = vmax.f32 %v1973_v22, 0.0  ;;  %v1921_v40 = vpop.f32.mrb[11].mxu1  ;;  %v1976_v41 = vadd.f32 %v4512_v38, %v1963_v23 }
 0x24e   : >> { %v1970_v42 = vadd.f32 %v1953_v51, %v1921_v40  ;;  %v1979_v46 = vmax.f32 %v1967_v37, 0.0  ;;  %v2015_v51 = vmul.f32 %v1997_v58, %v1987_v48 }
 0x24f   : >> { %v2013_v45 = vmul.f32 %v2001_v35, %v1985_v39  ;;  %v1988_v49 = vmax.f32 %v1976_v41, 0.0 }
 0x250   : >> { %v1982_v47 = vmax.f32 %v1970_v42, 0.0  ;;  %2049 = vrot.lane.b32.xlu0 %v2014_v43, %s4978_s12  ;;  %v2007_v52 = vmul.f32 %v2001_v35, %v1979_v46 }
 0x251   : >> { %2047 = vrot.lane.b32.xlu1 %v2013_v45, %s4978_s12  ;;  %v2016_v53 = vmul.f32 %v2001_v35, %v1988_v49 }
 0x252   : >> { %v2010_v50 = vmul.f32 %v2001_v35, %v1982_v47 }
 0x254   : >> { %2041 = vrot.lane.b32.xlu0 %v2010_v50, %s4978_s12 }
 0x255   : >> { %2035 = vrot.lane.b32.xlu1 %v2007_v52, %s4978_s12 }
 0x258   : >> { %2053 = vrot.lane.b32.xlu0 %v2016_v53, %s4978_s12 }
 0x259   : >> { %2051 = vrot.lane.b32.xlu1 %v2015_v51, %s4978_s12 }
 0x2b5   : >> { %v2032_v54 = vpop.permute.xlu1 %2031 }
 0x2b6   : >> { %2082 = vst.msk [vmem:[%s5728_s17] sm:$0xff] %vm2081_vm11, %v2032_v54  ;;  %v2034_v55 = vpop.permute.xlu0 %2033 }
 0x2b7   : >> { %v2056_v56 = vsel %vm2055_vm12, %v2032_v54, %v2034_v55 }
 0x2b8   : >> { %2083 = vst [vmem:[%s5728_s17 + $0x8] sm:$0xff] %v2056_v56 }
 0x2b9   : >> { %v2040_v57 = vpop.permute.xlu1 %2039 }
 0x2ba   : >> { %v2038_v58 = vpop.permute.xlu0 %2037 }
 0x2bb   : >> { %v2058_v59 = vsel %vm2055_vm12, %v2038_v58, %v2040_v57  ;;  %2086 = vst.msk [vmem:[%s5728_s17 + $0x18] sm:$0xff] %vm2081_vm11, %v2038_v58 }
 0x2bc   : >> { %2087 = vst [vmem:[%s5728_s17 + $0x20] sm:$0xff] %v2058_v59 }
 0x2bd   : >> { %v2044_v60 = vpop.permute.xlu1 %2043 }
 0x2be   : >> { %2089 = vst.msk [vmem:[%s5728_s17 + $0x30] sm:$0xff] %vm2081_vm11, %v2044_v60  ;;  %v2046_v61 = vpop.permute.xlu0 %2045 }
 0x2bf   : >> { %v2060_v62 = vsel %vm2055_vm12, %v2044_v60, %v2046_v61 }
 0x2c0   : >> { %2090 = vst [vmem:[%s5728_s17 + $0x38] sm:$0xff] %v2060_v62 }
 0x2c2   : >> { %v2050_v63 = vpop.permute.xlu0 %2049 }
 0x2c3   : >> { %2092 = vst.msk [vmem:[%s5728_s17 + $0x48] sm:$0xff] %vm2081_vm11, %v2050_v63  ;;  %v2048_v3 = vpop.permute.xlu1 %2047 }
 0x2c4   : >> { %v2061_v10 = vsel %vm2055_vm12, %v2046_v61, %v2048_v3 }
 0x2c5   : >> { %2091 = vst.msk [vmem:[%s5728_s17 + $0x40] sm:$0xff] %vm2084_vm13, %v2061_v10 }
 0x2c6   : >> { %v2042_v11 = vpop.permute.xlu0 %2041 }
 0x2c7   : >> { %v2059_v12 = vsel %vm2055_vm12, %v2040_v57, %v2042_v11  ;;  %v2036_v13 = vpop.permute.xlu1 %2035  ;;  %483 = sbr.rel (!%p481_p4) target bundleno = 114 (0x72), region = 109 }
 0x2c8   : >> { %2088 = vst.msk [vmem:[%s5728_s17 + $0x28] sm:$0xff] %vm2084_vm13, %v2059_v12  ;;  %v2057_v14 = vsel %vm2055_vm12, %v2034_v55, %v2036_v13 }
 0x2c9   : >> { %2085 = vst.msk [vmem:[%s5728_s17 + $0x10] sm:$0xff] %vm2084_vm13, %v2057_v14 }
 0x2ca   : >> { %v2054_v15 = vpop.permute.xlu0 %2053 }
 0x2cb   : >> { %v2052_v16 = vpop.permute.xlu1 %2051 }
 0x2cc   : >> { %v2062_v17 = vsel %vm2055_vm12, %v2050_v63, %v2052_v16  ;;  %v2063_v18 = vsel %vm2055_vm12, %v2052_v16, %v2054_v15 }
 0x2cd   : >> { %2093 = vst [vmem:[%s5728_s17 + $0x50] sm:$0xff] %v2062_v17  ;;  %2094 = vst.msk [vmem:[%s5728_s17 + $0x58] sm:$0xff] %vm2084_vm13, %v2063_v18 }
 0x2ce LB: >> { %s4234_s19 = sshll.u32 %s4966_s18, 5  ;;  %s4979_s24 = smov 127   ;;  %v5858_v60 = vld [vmem:[%s6454_s3 + $0x10] sm:$0xff]   ;;  %vm2265_vm14 = vcmask 785408   ;;  %v4980_v62 = vmov 0   ;;  %vm4042_vm15 = vcmask 261120   ;;  %s4966_s18 = sphi %s5761_s18, %s2100_s18  }
 0x2cf   : >> { %s2102_s20 = sshra.s32 %s4234_s19, 3  ;;  %2304 = vmatprep.mubr.bf16.mxu0 %v4980_v62  ;;  %4525 = vmatprep.mubr.msk.bf16.mxu1 %vm2265_vm14, %v5858_v60  ;;  %s4981_s22 = smov 126  }
 0x2d0   : >> { %s4330_s23 = smul.u32 24, %s2102_s20  ;;  %4924 = vset.pattern.permute.xlu0 %v4980_v62  ;;  %4925 = vset.pattern.permute.xlu1 %v4980_v62  ;;  %s4982_s29 = smov 110  }
 0x2d1   : >> { %s4983_s30 = smov 109   ;;  %s4984_s7 = smov 108  }
 0x2d2   : >> { %s5769_s25 = scalar_lea.vmem [#allocation2], %s4330_s23  ;;  %s4985_s16 = smov 92  }
 0x2d3   : >> { %s3950_s12 = sadd.s32 32, %s4234_s19  ;;  %s4332_s9 = smul.u32 96, %s4966_s18 }
 0x2d4   : >> { %v2108_v0 = vld [vmem:[%s5769_s25 + $0x8] sm:$0xff]  ;;  %v2111_v1 = vld [vmem:[%s5769_s25 + $0x20] sm:$0xff]  ;;  %v2110_v5 = vld [vmem:[%s5769_s25 + $0x18] sm:$0xff]  ;;  %s3951_s13 = sshra.s32 %s3950_s12, 3  ;;  %s2100_s18 = sadd.s32 1, %s4966_s18  }
 0x2d5   : >> { %v2107_v2 = vld [vmem:[%s5769_s25] sm:$0xff]  ;;  %v5774_v4 = vpack.c.bf16 %v2111_v1, %v2108_v0  ;;  %v2109_v19 = vld [vmem:[%s5769_s25 + $0x10] sm:$0xff]  ;;  %v2112_v20 = vld [vmem:[%s5769_s25 + $0x28] sm:$0xff]  ;;  %s4331_s14 = smul.u32 24, %s3951_s13  ;;  %s6416_s10 = scalar_lea.vmem %s5386_s27, %s4332_s9 }
 0x2d6   : >> { %v5779_v21 = vpack.c.bf16 %v2110_v5, %v2107_v2  ;;  %v2114_v23 = vld [vmem:[%s5769_s25 + $0x38] sm:$0xff]  ;;  %v2117_v24 = vld [vmem:[%s5769_s25 + $0x50] sm:$0xff]  ;;  %v5785_v25 = vpack.c.bf16 %v2112_v20, %v2109_v19  ;;  %v2115_v27 = vld [vmem:[%s5769_s25 + $0x40] sm:$0xff]  ;;  %p2097_p5 = scmp.ge.s32.totalorder %s2100_s18, 16  }
 0x2d7   : >> { %2200 = vrot.lane.b32.xlu0 %v5774_v4, %s4979_s24  ;;  %v5789_v26 = vpack.c.bf16 %v2117_v24, %v2114_v23  ;;  %v2118_v28 = vld [vmem:[%s5769_s25 + $0x58] sm:$0xff]  ;;  %v2113_v29 = vld [vmem:[%s5769_s25 + $0x30] sm:$0xff]  ;;  %v2116_v30 = vld [vmem:[%s5769_s25 + $0x48] sm:$0xff]  ;;  %s6297_s20 = scalar_lea.vmem [#allocation2], %s4331_s14 }
 0x2d8   : >> { %2198 = vrot.lane.b32.xlu1 %v5779_v21, %s4979_s24  ;;  %v5797_v31 = vpack.c.bf16 %v2118_v28, %v2115_v27  ;;  %v5801_v32 = vpack.c.bf16 %v2116_v30, %v2113_v29  ;;  %v2120_v33 = vld [vmem:[%s5769_s25 + $0x68] sm:$0xff]  ;;  %v2123_v34 = vld [vmem:[%s5769_s25 + $0x80] sm:$0xff]  ;;  %v2121_v22 = vld [vmem:[%s5769_s25 + $0x70] sm:$0xff] }
 0x2d9   : >> { %v2124_v35 = vld [vmem:[%s5769_s25 + $0x88] sm:$0xff]  ;;  %v2119_v36 = vld [vmem:[%s5769_s25 + $0x60] sm:$0xff]  ;;  %v5810_v37 = vpack.c.bf16 %v2123_v34, %v2120_v33  ;;  %v2122_v38 = vld [vmem:[%s5769_s25 + $0x78] sm:$0xff] }
 0x2da   : >> { %v2126_v39 = vld [vmem:[%s5769_s25 + $0x98] sm:$0xff]  ;;  %v2129_v40 = vld [vmem:[%s5769_s25 + $0xb0] sm:$0xff]  ;;  %v5817_v41 = vpack.c.bf16 %v2124_v35, %v2121_v22  ;;  %v2127_v42 = vld [vmem:[%s5769_s25 + $0xa0] sm:$0xff]  ;;  %v5823_v44 = vpack.c.bf16 %v2122_v38, %v2119_v36 }
 0x2db   : >> { %2202 = vrot.lane.b32.xlu0 %v5785_v25, %s4979_s24  ;;  %v2130_v43 = vld [vmem:[%s5769_s25 + $0xb8] sm:$0xff]  ;;  %v2125_v45 = vld [vmem:[%s5769_s25 + $0x90] sm:$0xff]  ;;  %v2128_v46 = vld [vmem:[%s5769_s25 + $0xa8] sm:$0xff]  ;;  %v5829_v47 = vpack.c.bf16 %v2129_v40, %v2126_v39 }
 0x2dc   : >> { %2206 = vrot.lane.b32.xlu1 %v5789_v26, %s4979_s24  ;;  %v5833_v49 = vpack.c.bf16 %v2130_v43, %v2127_v42  ;;  %v5837_v50 = vpack.c.bf16 %v2128_v46, %v2125_v45  ;;  %v2132_v48 = vld [vmem:[%s5769_s25 + $0xc8] sm:$0xff]  ;;  %v2135_v52 = vld [vmem:[%s5769_s25 + $0xe0] sm:$0xff]  ;;  %v2133_v53 = vld [vmem:[%s5769_s25 + $0xd0] sm:$0xff] }
 0x2dd   : >> { %v2136_v51 = vld [vmem:[%s5769_s25 + $0xe8] sm:$0xff]  ;;  %v5845_v54 = vpack.c.bf16 %v2135_v52, %v2132_v48  ;;  %v2131_v56 = vld [vmem:[%s5769_s25 + $0xc0] sm:$0xff]  ;;  %v2134_v57 = vld [vmem:[%s5769_s25 + $0xd8] sm:$0xff] }
 0x2de   : >> { %v5849_v55 = vpack.c.bf16 %v2136_v51, %v2133_v53  ;;  %v2138_v58 = vld [vmem:[%s5769_s25 + $0xf8] sm:$0xff]  ;;  %v2141_v59 = vld [vmem:[%s5769_s25 + $0x110] sm:$0xff]  ;;  %v5862_v61 = vpack.c.bf16 %v2134_v57, %v2131_v56  ;;  %v2139_v3 = vld [vmem:[%s5769_s25 + $0x100] sm:$0xff] }
 0x2df   : >> { %2208 = vrot.lane.b32.xlu0 %v5797_v31, %s4979_s24  ;;  %v5867_v63 = vpack.c.bf16 %v2141_v59, %v2138_v58  ;;  %v2142_v10 = vld [vmem:[%s5769_s25 + $0x118] sm:$0xff]  ;;  %v2137_v11 = vld [vmem:[%s5769_s25 + $0xf0] sm:$0xff]  ;;  %v2140_v12 = vld [vmem:[%s5769_s25 + $0x108] sm:$0xff] }
 0x2e0   : >> { %2204 = vrot.lane.b32.xlu1 %v5801_v32, %s4979_s24  ;;  %v5879_v13 = vpack.c.bf16 %v2142_v10, %v2139_v3  ;;  %v5883_v14 = vpack.c.bf16 %v2140_v12, %v2137_v11  ;;  %v4927_v52 = vld [vmem:[%s6454_s3 + $0x18] sm:$0xff]   ;;  %v5983_v51 = vld [vmem:[%s6454_s3] sm:$0xff]  }
 0x2e3   : >> { %2212 = vrot.lane.b32.xlu0 %v5810_v37, %s4979_s24 }
 0x2e4   : >> { %2214 = vrot.lane.b32.xlu1 %v5817_v41, %s4979_s24 }
 0x2e7   : >> { %2210 = vrot.lane.b32.xlu0 %v5823_v44, %s4979_s24 }
 0x2e8   : >> { %2218 = vrot.lane.b32.xlu1 %v5829_v47, %s4979_s24 }
 0x2eb   : >> { %2220 = vrot.lane.b32.xlu0 %v5833_v49, %s4979_s24 }
 0x2ec   : >> { %2216 = vrot.lane.b32.xlu1 %v5837_v50, %s4979_s24 }
 0x2ef   : >> { %2224 = vrot.lane.b32.xlu0 %v5845_v54, %s4979_s24 }
 0x2f0   : >> { %2226 = vrot.lane.b32.xlu1 %v5849_v55, %s4979_s24 }
 0x2f3   : >> { %2222 = vrot.lane.b32.xlu0 %v5862_v61, %s4979_s24 }
 0x2f4   : >> { %2230 = vrot.lane.b32.xlu1 %v5867_v63, %s4979_s24 }
 0x2f7   : >> { %2232 = vrot.lane.b32.xlu0 %v5879_v13, %s4979_s24 }
 0x2f8   : >> { %2228 = vrot.lane.b32.xlu1 %v5883_v14, %s4979_s24  ;;  %s4986_s24 = smov 91  }
 0x2fb   : >> { %2509 = vrot.lane.b32.xlu0 %v5774_v4, %s4981_s22 }
 0x2fc   : >> { %2511 = vrot.lane.b32.xlu1 %v5785_v25, %s4981_s22 }
 0x2ff   : >> { %2507 = vrot.lane.b32.xlu0 %v5779_v21, %s4981_s22 }
 0x300   : >> { %2515 = vrot.lane.b32.xlu1 %v5789_v26, %s4981_s22 }
 0x303   : >> { %2517 = vrot.lane.b32.xlu0 %v5797_v31, %s4981_s22 }
 0x304   : >> { %2513 = vrot.lane.b32.xlu1 %v5801_v32, %s4981_s22 }
 0x307   : >> { %2521 = vrot.lane.b32.xlu0 %v5810_v37, %s4981_s22 }
 0x308   : >> { %2523 = vrot.lane.b32.xlu1 %v5817_v41, %s4981_s22 }
 0x30b   : >> { %2519 = vrot.lane.b32.xlu0 %v5823_v44, %s4981_s22 }
 0x30c   : >> { %2527 = vrot.lane.b32.xlu1 %v5829_v47, %s4981_s22 }
 0x30f   : >> { %2529 = vrot.lane.b32.xlu0 %v5833_v49, %s4981_s22 }
 0x310   : >> { %2525 = vrot.lane.b32.xlu1 %v5837_v50, %s4981_s22 }
 0x313   : >> { %2533 = vrot.lane.b32.xlu0 %v5845_v54, %s4981_s22 }
 0x314   : >> { %2535 = vrot.lane.b32.xlu1 %v5849_v55, %s4981_s22 }
 0x317   : >> { %2531 = vrot.lane.b32.xlu0 %v5862_v61, %s4981_s22 }
 0x318   : >> { %2539 = vrot.lane.b32.xlu1 %v5867_v63, %s4981_s22 }
 0x31b   : >> { %2541 = vrot.lane.b32.xlu0 %v5879_v13, %s4981_s22 }
 0x31c   : >> { %2537 = vrot.lane.b32.xlu1 %v5883_v14, %s4981_s22 }
 0x31f   : >> { %2711 = vrot.lane.b32.xlu0 %v5774_v4, %s4982_s29 }
 0x320   : >> { %2713 = vrot.lane.b32.xlu1 %v5785_v25, %s4982_s29 }
 0x323   : >> { %2709 = vrot.lane.b32.xlu0 %v5779_v21, %s4982_s29 }
 0x324   : >> { %2717 = vrot.lane.b32.xlu1 %v5789_v26, %s4982_s29 }
 0x327   : >> { %2719 = vrot.lane.b32.xlu0 %v5797_v31, %s4982_s29 }
 0x328   : >> { %2715 = vrot.lane.b32.xlu1 %v5801_v32, %s4982_s29 }
 0x32b   : >> { %2723 = vrot.lane.b32.xlu0 %v5810_v37, %s4982_s29 }
 0x32c   : >> { %2725 = vrot.lane.b32.xlu1 %v5817_v41, %s4982_s29 }
 0x32f   : >> { %2721 = vrot.lane.b32.xlu0 %v5823_v44, %s4982_s29 }
 0x330   : >> { %2729 = vrot.lane.b32.xlu1 %v5829_v47, %s4982_s29 }
 0x333   : >> { %2731 = vrot.lane.b32.xlu0 %v5833_v49, %s4982_s29 }
 0x334   : >> { %2727 = vrot.lane.b32.xlu1 %v5837_v50, %s4982_s29 }
 0x337   : >> { %2735 = vrot.lane.b32.xlu0 %v5845_v54, %s4982_s29 }
 0x338   : >> { %2737 = vrot.lane.b32.xlu1 %v5849_v55, %s4982_s29 }
 0x33b   : >> { %2733 = vrot.lane.b32.xlu0 %v5862_v61, %s4982_s29 }
 0x33c   : >> { %2741 = vrot.lane.b32.xlu1 %v5867_v63, %s4982_s29 }
 0x33f   : >> { %2743 = vrot.lane.b32.xlu0 %v5879_v13, %s4982_s29 }
 0x340   : >> { %2739 = vrot.lane.b32.xlu1 %v5883_v14, %s4982_s29 }
 0x343   : >> { %2913 = vrot.lane.b32.xlu0 %v5774_v4, %s4983_s30 }
 0x344   : >> { %2915 = vrot.lane.b32.xlu1 %v5785_v25, %s4983_s30 }
 0x347   : >> { %2911 = vrot.lane.b32.xlu0 %v5779_v21, %s4983_s30 }
 0x348   : >> { %2919 = vrot.lane.b32.xlu1 %v5789_v26, %s4983_s30 }
 0x349   : >> { %v2201_v15 = vpop.permute.xlu0 %2200 }
 0x34a   : >> { %v2199_v16 = vpop.permute.xlu1 %2198 }
 0x34b   : >> { %2921 = vrot.lane.b32.xlu0 %v5797_v31, %s4983_s30  ;;  %v2235_v1 = vsel %vm543_vm1, %v2199_v16, %v2201_v15 }
 0x34c   : >> { %2917 = vrot.lane.b32.xlu1 %v5801_v32, %s4983_s30 }
 0x34d   : >> { %v2203_v17 = vpop.permute.xlu0 %2202 }
 0x34e   : >> { %v2207_v18 = vpop.permute.xlu1 %2206  ;;  %4513 = vmatprep.subr.bf16.mxu1 %v2203_v17  ;;  %v2236_v0 = vsel %vm543_vm1, %v2201_v15, %v2203_v17 }
 0x34f   : >> { %2272 = vmatprep.subr.bf16.mxu0 %v2236_v0  ;;  %4514 = vmatpush3.bf16.msra.mxu1 %v2203_v17 }
 0x350   : >> { %2925 = vrot.lane.b32.xlu0 %v5810_v37, %s4983_s30  ;;  %2927 = vrot.lane.b32.xlu1 %v5817_v41, %s4983_s30 }
 0x351   : >> { %2273 = vmatpush1.bf16.msra.mxu0 %v2235_v1  ;;  %v2209_v2 = vpop.permute.xlu0 %2208 }
 0x352   : >> { %v2205_v5 = vpop.permute.xlu1 %2204  ;;  %4515 = vmatprep.subr.bf16.mxu1 %v2209_v2  ;;  %v2238_v19 = vsel %vm543_vm1, %v2207_v18, %v2209_v2 }
 0x353   : >> { %4516 = vmatpush3.bf16.msra.mxu1 %v2209_v2  ;;  %2274 = vmatprep.subr.bf16.mxu0 %v2238_v19  ;;  %v2237_v20 = vsel %vm543_vm1, %v2205_v5, %v2207_v18  ;;  %v4929_v18 = vld [vmem:[%s6454_s3 + $0x8] sm:$0xff]  }
 0x354   : >> { %2923 = vrot.lane.b32.xlu0 %v5823_v44, %s4983_s30  ;;  %2931 = vrot.lane.b32.xlu1 %v5829_v47, %s4983_s30 }
 0x355   : >> { %2275 = vmatpush1.bf16.msra.mxu0 %v2237_v20  ;;  %v2213_v23 = vpop.permute.xlu0 %2212  ;;  %v6068_v20 = vld [vmem:[%s6454_s3 + $0x20] sm:$0xff]  }
 0x356   : >> { %v2215_v24 = vpop.permute.xlu1 %2214 }
 0x357   : >> { %4517 = vmatprep.subr.bf16.mxu1 %v2215_v24  ;;  %v2240_v27 = vsel %vm543_vm1, %v2213_v23, %v2215_v24 }
 0x358   : >> { %2933 = vrot.lane.b32.xlu0 %v5833_v49, %s4983_s30  ;;  %2929 = vrot.lane.b32.xlu1 %v5837_v50, %s4983_s30 }
 0x359   : >> { %2276 = vmatprep.subr.bf16.mxu0 %v2240_v27  ;;  %4518 = vmatpush3.bf16.msra.mxu1 %v2215_v24  ;;  %v2211_v28 = vpop.permute.xlu0 %2210 }
 0x35a   : >> { %v2219_v29 = vpop.permute.xlu1 %2218  ;;  %v2239_v30 = vsel %vm543_vm1, %v2211_v28, %v2213_v23 }
 0x35b   : >> { %2277 = vmatpush1.bf16.msra.mxu0 %v2239_v30 }
 0x35c   : >> { %2937 = vrot.lane.b32.xlu0 %v5845_v54, %s4983_s30  ;;  %2939 = vrot.lane.b32.xlu1 %v5849_v55, %s4983_s30 }
 0x35d   : >> { %v2221_v33 = vpop.permute.xlu0 %2220 }
 0x35e   : >> { %v2217_v34 = vpop.permute.xlu1 %2216  ;;  %4519 = vmatprep.subr.bf16.mxu1 %v2221_v33  ;;  %v2242_v22 = vsel %vm543_vm1, %v2219_v29, %v2221_v33 }
 0x35f   : >> { %2278 = vmatprep.subr.bf16.mxu0 %v2242_v22  ;;  %4520 = vmatpush3.bf16.msra.mxu1 %v2221_v33  ;;  %v2241_v35 = vsel %vm543_vm1, %v2217_v34, %v2219_v29 }
 0x360   : >> { %2935 = vrot.lane.b32.xlu0 %v5862_v61, %s4983_s30  ;;  %2943 = vrot.lane.b32.xlu1 %v5867_v63, %s4983_s30 }
 0x361   : >> { %2279 = vmatpush1.bf16.msra.mxu0 %v2241_v35  ;;  %v2225_v36 = vpop.permute.xlu0 %2224 }
 0x362   : >> { %v2227_v38 = vpop.permute.xlu1 %2226 }
 0x363   : >> { %4521 = vmatprep.subr.bf16.mxu1 %v2227_v38  ;;  %v2244_v39 = vsel %vm543_vm1, %v2225_v36, %v2227_v38 }
 0x364   : >> { %2945 = vrot.lane.b32.xlu0 %v5879_v13, %s4983_s30  ;;  %2941 = vrot.lane.b32.xlu1 %v5883_v14, %s4983_s30 }
 0x365   : >> { %2280 = vmatprep.subr.bf16.mxu0 %v2244_v39  ;;  %4522 = vmatpush3.bf16.msra.mxu1 %v2227_v38  ;;  %v2223_v40 = vpop.permute.xlu0 %2222 }
 0x366   : >> { %v2231_v42 = vpop.permute.xlu1 %2230  ;;  %v2243_v43 = vsel %vm543_vm1, %v2223_v40, %v2225_v36 }
 0x367   : >> { %2281 = vmatpush1.bf16.msra.mxu0 %v2243_v43 }
 0x368   : >> { %3115 = vrot.lane.b32.xlu0 %v5774_v4, %s4984_s7  ;;  %3117 = vrot.lane.b32.xlu1 %v5785_v25, %s4984_s7 }
 0x369   : >> { %v2233_v45 = vpop.permute.xlu0 %2232 }
 0x36a   : >> { %v2229_v46 = vpop.permute.xlu1 %2228  ;;  %4523 = vmatprep.subr.bf16.mxu1 %v2233_v45  ;;  %v2246_v48 = vsel %vm543_vm1, %v2231_v42, %v2233_v45 }
 0x36b   : >> { %2282 = vmatprep.subr.bf16.mxu0 %v2246_v48  ;;  %4524 = vmatpush3.bf16.msra.mxu1 %v2233_v45  ;;  %v2245_v53 = vsel %vm543_vm1, %v2229_v46, %v2231_v42  ;;  %v4931_v48 = vld [vmem:[%s6454_s3 + $0x28] sm:$0xff]  }
 0x36c   : >> { %3113 = vrot.lane.b32.xlu0 %v5779_v21, %s4984_s7  ;;  %3121 = vrot.lane.b32.xlu1 %v5789_v26, %s4984_s7 }
 0x36d   : >> { %2283 = vmatpush1.bf16.msra.mxu0 %v2245_v53  ;;  %v5989_v56 = vpop.permute.xlu0 %2509  ;;  %4529 = vmatprep.subr.bf16.mxu1 %v5785_v25 }
 0x36e   : >> { %v2512_v57 = vpop.permute.xlu1 %2511  ;;  %4526 = vmatmul.mubr.msk.bf16.vlgmr.msra.gmra.mrb[0].mxu1 %vm2265_vm14, %v4927_v52  ;;  %2390 = vmatprep.subr.bf16.mxu0 %v5774_v4 }
 0x36f   : >> { %4530 = vmatpush3.bf16.msra.mxu1 %v5785_v25  ;;  %4541 = vmatprep.mubr.msk.bf16.mxu1 %vm2265_vm14, %v5983_v51  ;;  %v2545_v1 = vsel %vm824_vm3, %v5989_v56, %v2512_v57 }
 0x370   : >> { %3123 = vrot.lane.b32.xlu0 %v5797_v31, %s4984_s7  ;;  %3119 = vrot.lane.b32.xlu1 %v5801_v32, %s4984_s7 }
 0x371   : >> { %4242 = vmatmul.mubr.msk.bf16.vlgmr.msra.gmra.mrb[0].mxu0 %vm2265_vm14, %v5858_v60  ;;  %v2508_v58 = vpop.permute.xlu0 %2507  ;;  %4531 = vmatprep.subr.bf16.mxu1 %v5797_v31 }
 0x372   : >> { %2391 = vmatpush1.bf16.msra.mxu0 %v5779_v21  ;;  %v6005_v59 = vpop.permute.xlu1 %2515  ;;  %2314 = vmatprep.mubr.bf16.mxu0 %v4980_v62  ;;  %v2544_v5 = vsel %vm824_vm3, %v2508_v58, %v5989_v56 }
 0x373   : >> { %2392 = vmatprep.subr.bf16.mxu0 %v5789_v26  ;;  %4532 = vmatpush3.bf16.msra.mxu1 %v5797_v31 }
 0x374   : >> { %3127 = vrot.lane.b32.xlu0 %v5810_v37, %s4984_s7  ;;  %3129 = vrot.lane.b32.xlu1 %v5817_v41, %s4984_s7 }
 0x375   : >> { %v2518_v60 = vpop.permute.xlu0 %2517  ;;  %4533 = vmatprep.subr.bf16.mxu1 %v5817_v41 }
 0x376   : >> { %2393 = vmatpush1.bf16.msra.mxu0 %v5801_v32  ;;  %v2514_v3 = vpop.permute.xlu1 %2513  ;;  %v2547_v23 = vsel %vm824_vm3, %v6005_v59, %v2518_v60 }
 0x377   : >> { %2394 = vmatprep.subr.bf16.mxu0 %v5810_v37  ;;  %4534 = vmatpush3.bf16.msra.mxu1 %v5817_v41  ;;  %v2546_v27 = vsel %vm824_vm3, %v2514_v3, %v6005_v59  ;;  %v6124_v59 = vld [vmem:[%s6454_s3 + $0x30] sm:$0xff]  }
 0x378   : >> { %3125 = vrot.lane.b32.xlu0 %v5823_v44, %s4984_s7  ;;  %3133 = vrot.lane.b32.xlu1 %v5829_v47, %s4984_s7 }
 0x379   : >> { %v6022_v10 = vpop.permute.xlu0 %2521  ;;  %4535 = vmatprep.subr.bf16.mxu1 %v5833_v49  ;;  %4243 = vmatmul.mubr.msk.bf16.gmra.mrb[4].mxu0 %vm2265_vm14, %v4927_v52 }
 0x37a   : >> { %2395 = vmatpush1.bf16.msra.mxu0 %v5823_v44  ;;  %v2524_v11 = vpop.permute.xlu1 %2523  ;;  %2422 = vmatprep.mubr.bf16.mxu0 %v4980_v62 }
 0x37b   : >> { %2396 = vmatprep.subr.bf16.mxu0 %v5829_v47  ;;  %4536 = vmatpush3.bf16.msra.mxu1 %v5833_v49  ;;  %v2549_v29 = vsel %vm824_vm3, %v6022_v10, %v2524_v11 }
 0x37c   : >> { %3135 = vrot.lane.b32.xlu0 %v5833_v49, %s4984_s7  ;;  %3131 = vrot.lane.b32.xlu1 %v5837_v50, %s4984_s7 }
 0x37d   : >> { %v2520_v12 = vpop.permute.xlu0 %2519  ;;  %4537 = vmatprep.subr.bf16.mxu1 %v5849_v55 }
 0x37e   : >> { %2397 = vmatpush1.bf16.msra.mxu0 %v5837_v50  ;;  %v2528_v15 = vpop.permute.xlu1 %2527  ;;  %v2548_v33 = vsel %vm824_vm3, %v2520_v12, %v6022_v10 }
 0x37f   : >> { %2398 = vmatprep.subr.bf16.mxu0 %v5845_v54  ;;  %4538 = vmatpush3.bf16.msra.mxu1 %v5849_v55 }
 0x380   : >> { %3139 = vrot.lane.b32.xlu0 %v5845_v54, %s4984_s7  ;;  %3141 = vrot.lane.b32.xlu1 %v5849_v55, %s4984_s7 }
 0x381   : >> { %v2530_v16 = vpop.permute.xlu0 %2529  ;;  %4539 = vmatprep.subr.bf16.mxu1 %v5879_v13 }
 0x382   : >> { %2399 = vmatpush1.bf16.msra.mxu0 %v5862_v61  ;;  %v2526_v17 = vpop.permute.xlu1 %2525  ;;  %v2551_v22 = vsel %vm824_vm3, %v2528_v15, %v2530_v16 }
 0x383   : >> { %2400 = vmatprep.subr.bf16.mxu0 %v5867_v63  ;;  %4540 = vmatpush3.bf16.msra.mxu1 %v5879_v13  ;;  %v2550_v36 = vsel %vm824_vm3, %v2526_v17, %v2528_v15 }
 0x384   : >> { %3137 = vrot.lane.b32.xlu0 %v5862_v61, %s4984_s7  ;;  %3145 = vrot.lane.b32.xlu1 %v5867_v63, %s4984_s7 }
 0x385   : >> { %4545 = vmatprep.subr.bf16.mxu1 %v2512_v57  ;;  %v2534_v0 = vpop.permute.xlu0 %2533 }
 0x386   : >> { %2401 = vmatpush1.bf16.msra.mxu0 %v5883_v14  ;;  %v2536_v2 = vpop.permute.xlu1 %2535  ;;  %4542 = vmatmul.mubr.msk.bf16.vlgmr.msra.gmra.mrb[0].mxu1 %vm2265_vm14, %v4929_v18 }
 0x387   : >> { %2580 = vmatprep.subr.bf16.mxu0 %v2545_v1  ;;  %4546 = vmatpush3.bf16.msra.mxu1 %v2512_v57  ;;  %v2553_v39 = vsel %vm824_vm3, %v2534_v0, %v2536_v2 }
 0x388   : >> { %3147 = vrot.lane.b32.xlu0 %v5879_v13, %s4984_s7  ;;  %3143 = vrot.lane.b32.xlu1 %v5883_v14, %s4984_s7  ;;  %s4987_s7 = smov 90  }
 0x389   : >> { %4248 = vmatmul.mubr.msk.bf16.vlgmr.msra.gmra.mrb[0].mxu0 %vm2265_vm14, %v5983_v51  ;;  %4547 = vmatprep.subr.bf16.mxu1 %v2518_v60  ;;  %v2532_v19 = vpop.permute.xlu0 %2531 }
 0x38a   : >> { %2581 = vmatpush1.bf16.msra.mxu0 %v2544_v5  ;;  %v2540_v24 = vpop.permute.xlu1 %2539  ;;  %2432 = vmatprep.mubr.bf16.mxu0 %v4980_v62  ;;  %v2552_v42 = vsel %vm824_vm3, %v2532_v19, %v2534_v0 }
 0x38b   : >> { %2582 = vmatprep.subr.bf16.mxu0 %v2547_v23  ;;  %4548 = vmatpush3.bf16.msra.mxu1 %v2518_v60 }
 0x38c   : >> { %3317 = vrot.lane.b32.xlu0 %v5774_v4, %s4985_s16  ;;  %3319 = vrot.lane.b32.xlu1 %v5785_v25, %s4985_s16 }
 0x38d   : >> { %4549 = vmatprep.subr.bf16.mxu1 %v2524_v11  ;;  %v2542_v28 = vpop.permute.xlu0 %2541  ;;  %4557 = vmatprep.mubr.msk.bf16.mxu1 %vm2265_vm14, %v6068_v20 }
 0x38e   : >> { %2583 = vmatpush1.bf16.msra.mxu0 %v2546_v27  ;;  %v2538_v30 = vpop.permute.xlu1 %2537  ;;  %v2555_v45 = vsel %vm824_vm3, %v2540_v24, %v2542_v28 }
 0x38f   : >> { %2584 = vmatprep.subr.bf16.mxu0 %v2549_v29  ;;  %4550 = vmatpush3.bf16.msra.mxu1 %v2524_v11  ;;  %v2554_v52 = vsel %vm824_vm3, %v2538_v30, %v2540_v24  ;;  %v6163_v30 = vld [vmem:[%s6454_s3 + $0x40] sm:$0xff]  }
 0x390   : >> { %3315 = vrot.lane.b32.xlu0 %v5779_v21, %s4985_s16  ;;  %3323 = vrot.lane.b32.xlu1 %v5789_v26, %s4985_s16 }
 0x391   : >> { %4551 = vmatprep.subr.bf16.mxu1 %v2530_v16  ;;  %v2712_v34 = vpop.permute.xlu0 %2711  ;;  %4249 = vmatmul.mubr.msk.bf16.gmra.mrb[4].mxu0 %vm2265_vm14, %v4929_v18 }
 0x392   : >> { %2585 = vmatpush1.bf16.msra.mxu0 %v2548_v33  ;;  %v2714_v35 = vpop.permute.xlu1 %2713  ;;  %2612 = vmatprep.mubr.bf16.mxu0 %v4980_v62 }
 0x393   : >> { %2586 = vmatprep.subr.bf16.mxu0 %v2551_v22  ;;  %4552 = vmatpush3.bf16.msra.mxu1 %v2530_v16  ;;  %v2747_v51 = vsel %vm988_vm5, %v2712_v34, %v2714_v35 }
 0x394   : >> { %3325 = vrot.lane.b32.xlu0 %v5797_v31, %s4985_s16  ;;  %3321 = vrot.lane.b32.xlu1 %v5801_v32, %s4985_s16 }
 0x395   : >> { %4553 = vmatprep.subr.bf16.mxu1 %v2536_v2  ;;  %v2710_v38 = vpop.permute.xlu0 %2709 }
 0x396   : >> { %2587 = vmatpush1.bf16.msra.mxu0 %v2550_v36  ;;  %v2718_v40 = vpop.permute.xlu1 %2717  ;;  %v2746_v57 = vsel %vm988_vm5, %v2710_v38, %v2712_v34 }
 0x397   : >> { %2588 = vmatprep.subr.bf16.mxu0 %v2553_v39  ;;  %4554 = vmatpush3.bf16.msra.mxu1 %v2536_v2 }
 0x398   : >> { %3329 = vrot.lane.b32.xlu0 %v5810_v37, %s4985_s16  ;;  %3331 = vrot.lane.b32.xlu1 %v5817_v41, %s4985_s16 }
 0x399   : >> { %4555 = vmatprep.subr.bf16.mxu1 %v2542_v28  ;;  %v2720_v43 = vpop.permute.xlu0 %2719 }
 0x39a   : >> { %2589 = vmatpush1.bf16.msra.mxu0 %v2552_v42  ;;  %v2716_v46 = vpop.permute.xlu1 %2715  ;;  %v2749_v60 = vsel %vm988_vm5, %v2718_v40, %v2720_v43 }
 0x39b   : >> { %2590 = vmatprep.subr.bf16.mxu0 %v2555_v45  ;;  %4556 = vmatpush3.bf16.msra.mxu1 %v2542_v28  ;;  %v2748_v10 = vsel %vm988_vm5, %v2716_v46, %v2718_v40  ;;  %v4933_v28 = vld [vmem:[%s6454_s3 + $0x38] sm:$0xff]  }
 0x39c   : >> { %3327 = vrot.lane.b32.xlu0 %v5823_v44, %s4985_s16  ;;  %3335 = vrot.lane.b32.xlu1 %v5829_v47, %s4985_s16 }
 0x39d   : >> { %4561 = vmatprep.subr.bf16.mxu1 %v2714_v35  ;;  %v2724_v53 = vpop.permute.xlu0 %2723 }
 0x39e   : >> { %2591 = vmatpush1.bf16.msra.mxu0 %v2554_v52  ;;  %v2726_v56 = vpop.permute.xlu1 %2725  ;;  %4558 = vmatmul.mubr.msk.bf16.vlgmr.msra.gmra.mrb[0].mxu1 %vm2265_vm14, %v4931_v48 }
 0x39f   : >> { %2782 = vmatprep.subr.bf16.mxu0 %v2747_v51  ;;  %4562 = vmatpush3.bf16.msra.mxu1 %v2714_v35  ;;  %v2751_v12 = vsel %vm988_vm5, %v2724_v53, %v2726_v56 }
 0x3a0   : >> { %3337 = vrot.lane.b32.xlu0 %v5833_v49, %s4985_s16  ;;  %3333 = vrot.lane.b32.xlu1 %v5837_v50, %s4985_s16 }
 0x3a1   : >> { %4258 = vmatmul.mubr.msk.bf16.vlgmr.msra.gmra.mrb[0].mxu0 %vm2265_vm14, %v6068_v20  ;;  %4563 = vmatprep.subr.bf16.mxu1 %v2720_v43  ;;  %v2722_v58 = vpop.permute.xlu0 %2721 }
 0x3a2   : >> { %2783 = vmatpush1.bf16.msra.mxu0 %v2746_v57  ;;  %v2730_v3 = vpop.permute.xlu1 %2729  ;;  %2622 = vmatprep.mubr.bf16.mxu0 %v4980_v62  ;;  %v2750_v16 = vsel %vm988_vm5, %v2722_v58, %v2724_v53 }
 0x3a3   : >> { %2784 = vmatprep.subr.bf16.mxu0 %v2749_v60  ;;  %4564 = vmatpush3.bf16.msra.mxu1 %v2720_v43 }
 0x3a4   : >> { %3341 = vrot.lane.b32.xlu0 %v5845_v54, %s4985_s16  ;;  %3343 = vrot.lane.b32.xlu1 %v5849_v55, %s4985_s16 }
 0x3a5   : >> { %4565 = vmatprep.subr.bf16.mxu1 %v2726_v56  ;;  %v2732_v11 = vpop.permute.xlu0 %2731  ;;  %4573 = vmatprep.mubr.msk.bf16.mxu1 %vm2265_vm14, %v6124_v59 }
 0x3a6   : >> { %2785 = vmatpush1.bf16.msra.mxu0 %v2748_v10  ;;  %v2728_v15 = vpop.permute.xlu1 %2727  ;;  %v2753_v18 = vsel %vm988_vm5, %v2730_v3, %v2732_v11 }
 0x3a7   : >> { %2786 = vmatprep.subr.bf16.mxu0 %v2751_v12  ;;  %4566 = vmatpush3.bf16.msra.mxu1 %v2726_v56  ;;  %v2752_v1 = vsel %vm988_vm5, %v2728_v15, %v2730_v3 }
 0x3a8   : >> { %3339 = vrot.lane.b32.xlu0 %v5862_v61, %s4985_s16  ;;  %3347 = vrot.lane.b32.xlu1 %v5867_v63, %s4985_s16 }
 0x3a9   : >> { %4567 = vmatprep.subr.bf16.mxu1 %v2732_v11  ;;  %v2736_v17 = vpop.permute.xlu0 %2735  ;;  %4259 = vmatmul.mubr.msk.bf16.gmra.mrb[4].mxu0 %vm2265_vm14, %v4931_v48 }
 0x3aa   : >> { %2787 = vmatpush1.bf16.msra.mxu0 %v2750_v16  ;;  %v2738_v0 = vpop.permute.xlu1 %2737  ;;  %2814 = vmatprep.mubr.bf16.mxu0 %v4980_v62 }
 0x3ab   : >> { %2788 = vmatprep.subr.bf16.mxu0 %v2753_v18  ;;  %4568 = vmatpush3.bf16.msra.mxu1 %v2732_v11  ;;  %v2755_v5 = vsel %vm988_vm5, %v2736_v17, %v2738_v0 }
 0x3ac   : >> { %3349 = vrot.lane.b32.xlu0 %v5879_v13, %s4985_s16  ;;  %3345 = vrot.lane.b32.xlu1 %v5883_v14, %s4985_s16 }
 0x3ad   : >> { %4569 = vmatprep.subr.bf16.mxu1 %v2738_v0  ;;  %v2734_v2 = vpop.permute.xlu0 %2733 }
 0x3ae   : >> { %2789 = vmatpush1.bf16.msra.mxu0 %v2752_v1  ;;  %v2742_v19 = vpop.permute.xlu1 %2741  ;;  %v2754_v20 = vsel %vm988_vm5, %v2734_v2, %v2736_v17 }
 0x3af   : >> { %2790 = vmatprep.subr.bf16.mxu0 %v2755_v5  ;;  %4570 = vmatpush3.bf16.msra.mxu1 %v2738_v0  ;;  %v6232_v5 = vld [vmem:[%s6454_s3 + $0x50] sm:$0xff]  }
 0x3b0   : >> { %3519 = vrot.lane.b32.xlu0 %v5774_v4, %s4986_s24  ;;  %3521 = vrot.lane.b32.xlu1 %v5785_v25, %s4986_s24 }
 0x3b1   : >> { %v2744_v23 = vpop.permute.xlu0 %2743 }
 0x3b2   : >> { %2791 = vmatpush1.bf16.msra.mxu0 %v2754_v20  ;;  %v2740_v24 = vpop.permute.xlu1 %2739  ;;  %4571 = vmatprep.subr.bf16.mxu1 %v2744_v23  ;;  %v2757_v27 = vsel %vm988_vm5, %v2742_v19, %v2744_v23 }
 0x3b3   : >> { %v2756_v29 = vsel %vm988_vm5, %v2740_v24, %v2742_v19  ;;  %2792 = vmatprep.subr.bf16.mxu0 %v2757_v27  ;;  %4572 = vmatpush3.bf16.msra.mxu1 %v2744_v23 }
 0x3b4   : >> { %3517 = vrot.lane.b32.xlu0 %v5779_v21, %s4986_s24  ;;  %3525 = vrot.lane.b32.xlu1 %v5789_v26, %s4986_s24 }
 0x3b5   : >> { %v2914_v33 = vpop.permute.xlu0 %2913 }
 0x3b6   : >> { %2793 = vmatpush1.bf16.msra.mxu0 %v2756_v29  ;;  %v2916_v34 = vpop.permute.xlu1 %2915  ;;  %4574 = vmatmul.mubr.msk.bf16.vlgmr.msra.gmra.mrb[0].mxu1 %vm2265_vm14, %v4933_v28 }
 0x3b7   : >> { %4577 = vmatprep.subr.bf16.mxu1 %v2916_v34  ;;  %v2949_v22 = vsel %vm1152_vm6, %v2914_v33, %v2916_v34  ;;  %4589 = vmatprep.mubr.msk.bf16.mxu1 %vm2265_vm14, %v6163_v30 }
 0x3b8   : >> { %3527 = vrot.lane.b32.xlu0 %v5797_v31, %s4986_s24  ;;  %3523 = vrot.lane.b32.xlu1 %v5801_v32, %s4986_s24 }
 0x3b9   : >> { %2984 = vmatprep.subr.bf16.mxu0 %v2949_v22  ;;  %4578 = vmatpush3.bf16.msra.mxu1 %v2916_v34  ;;  %v2912_v35 = vpop.permute.xlu0 %2911 }
 0x3ba   : >> { %v2948_v36 = vsel %vm1152_vm6, %v2912_v35, %v2914_v33  ;;  %v2920_v38 = vpop.permute.xlu1 %2919  ;;  %4268 = vmatmul.mubr.msk.bf16.vlgmr.msra.gmra.mrb[0].mxu0 %vm2265_vm14, %v6124_v59  ;;  %v4937_v35 = vld [vmem:[%s6454_s3 + $0x58] sm:$0xff]  }
 0x3bb   : >> { %2985 = vmatpush1.bf16.msra.mxu0 %v2948_v36  ;;  %2824 = vmatprep.mubr.bf16.mxu0 %v4980_v62  ;;  %v6291_v36 = vld [vmem:[%s6454_s3 + $0x60] sm:$0xff]  }
 0x3bc   : >> { %3531 = vrot.lane.b32.xlu0 %v5810_v37, %s4986_s24  ;;  %3533 = vrot.lane.b32.xlu1 %v5817_v41, %s4986_s24 }
 0x3bd   : >> { %v2922_v39 = vpop.permute.xlu0 %2921 }
 0x3be   : >> { %v2918_v40 = vpop.permute.xlu1 %2917  ;;  %4579 = vmatprep.subr.bf16.mxu1 %v2922_v39  ;;  %v2951_v42 = vsel %vm1152_vm6, %v2920_v38, %v2922_v39 }
 0x3bf   : >> { %v2950_v43 = vsel %vm1152_vm6, %v2918_v40, %v2920_v38  ;;  %2986 = vmatprep.subr.bf16.mxu0 %v2951_v42  ;;  %4580 = vmatpush3.bf16.msra.mxu1 %v2922_v39  ;;  %v3957_v42 = vld [vmem:[%s6297_s20 + $0x8] sm:$0xff] }
 0x3c0   : >> { %3529 = vrot.lane.b32.xlu0 %v5823_v44, %s4986_s24  ;;  %3537 = vrot.lane.b32.xlu1 %v5829_v47, %s4986_s24 }
 0x3c1   : >> { %2987 = vmatpush1.bf16.msra.mxu0 %v2950_v43  ;;  %v3956_v43 = vld [vmem:[%s6297_s20] sm:$0xff] }
 0x3c2   : >> { %v2926_v45 = vpop.permute.xlu0 %2925  ;;  %v2928_v46 = vpop.permute.xlu1 %2927  ;;  %4269 = vmatmul.mubr.msk.bf16.gmra.mrb[4].mxu0 %vm2265_vm14, %v4933_v28 }
 0x3c3   : >> { %4581 = vmatprep.subr.bf16.mxu1 %v2928_v46  ;;  %v2953_v48 = vsel %vm1152_vm6, %v2926_v45, %v2928_v46  ;;  %3016 = vmatprep.mubr.bf16.mxu0 %v4980_v62 }
 0x3c4   : >> { %3539 = vrot.lane.b32.xlu0 %v5833_v49, %s4986_s24  ;;  %3535 = vrot.lane.b32.xlu1 %v5837_v50, %s4986_s24 }
 0x3c5   : >> { %2988 = vmatprep.subr.bf16.mxu0 %v2953_v48  ;;  %4582 = vmatpush3.bf16.msra.mxu1 %v2928_v46 }
 0x3c6   : >> { %v2924_v52 = vpop.permute.xlu0 %2923  ;;  %v2932_v53 = vpop.permute.xlu1 %2931 }
 0x3c7   : >> { %v2952_v51 = vsel %vm1152_vm6, %v2924_v52, %v2926_v45  ;;  %v3959_v52 = vld [vmem:[%s6297_s20 + $0x18] sm:$0xff] }
 0x3c8   : >> { %3543 = vrot.lane.b32.xlu0 %v5845_v54, %s4986_s24  ;;  %3545 = vrot.lane.b32.xlu1 %v5849_v55, %s4986_s24 }
 0x3c9   : >> { %2989 = vmatpush1.bf16.msra.mxu0 %v2952_v51 }
 0x3ca   : >> { %v2934_v56 = vpop.permute.xlu0 %2933  ;;  %v2930_v57 = vpop.permute.xlu1 %2929 }
 0x3cb   : >> { %v2954_v58 = vsel %vm1152_vm6, %v2930_v57, %v2932_v53  ;;  %4583 = vmatprep.subr.bf16.mxu1 %v2934_v56  ;;  %v2955_v59 = vsel %vm1152_vm6, %v2932_v53, %v2934_v56  ;;  %v3958_v53 = vld [vmem:[%s6297_s20 + $0x10] sm:$0xff] }
 0x3cc   : >> { %3541 = vrot.lane.b32.xlu0 %v5862_v61, %s4986_s24  ;;  %3549 = vrot.lane.b32.xlu1 %v5867_v63, %s4986_s24 }
 0x3cd   : >> { %2990 = vmatprep.subr.bf16.mxu0 %v2955_v59  ;;  %4584 = vmatpush3.bf16.msra.mxu1 %v2934_v56  ;;  %v3961_v59 = vld [vmem:[%s6297_s20 + $0x28] sm:$0xff] }
 0x3ce   : >> { %2991 = vmatpush1.bf16.msra.mxu0 %v2954_v58  ;;  %v2938_v60 = vpop.permute.xlu0 %2937  ;;  %v2940_v3 = vpop.permute.xlu1 %2939 }
 0x3cf   : >> { %4585 = vmatprep.subr.bf16.mxu1 %v2940_v3  ;;  %v2957_v10 = vsel %vm1152_vm6, %v2938_v60, %v2940_v3 }
 0x3d0   : >> { %3551 = vrot.lane.b32.xlu0 %v5879_v13, %s4986_s24  ;;  %3547 = vrot.lane.b32.xlu1 %v5883_v14, %s4986_s24 }
 0x3d1   : >> { %2992 = vmatprep.subr.bf16.mxu0 %v2957_v10  ;;  %4586 = vmatpush3.bf16.msra.mxu1 %v2940_v3  ;;  %v3960_v10 = vld [vmem:[%s6297_s20 + $0x20] sm:$0xff] }
 0x3d2   : >> { %v2936_v11 = vpop.permute.xlu0 %2935  ;;  %v2944_v12 = vpop.permute.xlu1 %2943 }
 0x3d3   : >> { %v2956_v15 = vsel %vm1152_vm6, %v2936_v11, %v2938_v60 }
 0x3d4   : >> { %3721 = vrot.lane.b32.xlu0 %v5774_v4, %s4987_s7  ;;  %3723 = vrot.lane.b32.xlu1 %v5785_v25, %s4987_s7  ;;  %v4935_v4 = vld [vmem:[%s6454_s3 + $0x48] sm:$0xff]  }
 0x3d5   : >> { %2993 = vmatpush1.bf16.msra.mxu0 %v2956_v15 }
 0x3d6   : >> { %v2946_v16 = vpop.permute.xlu0 %2945  ;;  %v2942_v17 = vpop.permute.xlu1 %2941 }
 0x3d7   : >> { %v2958_v18 = vsel %vm1152_vm6, %v2942_v17, %v2944_v12  ;;  %4587 = vmatprep.subr.bf16.mxu1 %v2946_v16  ;;  %v2959_v0 = vsel %vm1152_vm6, %v2944_v12, %v2946_v16  ;;  %v3963_v12 = vld [vmem:[%s6297_s20 + $0x38] sm:$0xff]  ;;  %v3962_v17 = vld [vmem:[%s6297_s20 + $0x30] sm:$0xff] }
 0x3d8   : >> { %3719 = vrot.lane.b32.xlu0 %v5779_v21, %s4987_s7  ;;  %3727 = vrot.lane.b32.xlu1 %v5789_v26, %s4987_s7 }
 0x3d9   : >> { %2994 = vmatprep.subr.bf16.mxu0 %v2959_v0  ;;  %4588 = vmatpush3.bf16.msra.mxu1 %v2946_v16  ;;  %v3965_v0 = vld [vmem:[%s6297_s20 + $0x48] sm:$0xff] }
 0x3da   : >> { %2995 = vmatpush1.bf16.msra.mxu0 %v2958_v18  ;;  %v3116_v25 = vpop.permute.xlu0 %3115  ;;  %v3118_v1 = vpop.permute.xlu1 %3117 }
 0x3db   : >> { %4593 = vmatprep.subr.bf16.mxu1 %v3118_v1  ;;  %v3151_v2 = vsel %vm1316_vm7, %v3116_v25, %v3118_v1 }
 0x3dc   : >> { %3729 = vrot.lane.b32.xlu0 %v5797_v31, %s4987_s7  ;;  %3725 = vrot.lane.b32.xlu1 %v5801_v32, %s4987_s7 }
 0x3dd   : >> { %4590 = vmatmul.mubr.msk.bf16.vlgmr.msra.gmra.mrb[0].mxu1 %vm2265_vm14, %v4935_v4  ;;  %3186 = vmatprep.subr.bf16.mxu0 %v3151_v2 }
 0x3de   : >> { %4594 = vmatpush3.bf16.msra.mxu1 %v3118_v1  ;;  %v3114_v21 = vpop.permute.xlu0 %3113  ;;  %v3122_v26 = vpop.permute.xlu1 %3121  ;;  %4278 = vmatmul.mubr.msk.bf16.vlgmr.msra.gmra.mrb[0].mxu0 %vm2265_vm14, %v6163_v30  ;;  %v3964_v1 = vld [vmem:[%s6297_s20 + $0x40] sm:$0xff] }
 0x3df   : >> { %v3150_v19 = vsel %vm1316_vm7, %v3114_v21, %v3116_v25  ;;  %3026 = vmatprep.mubr.bf16.mxu0 %v4980_v62  ;;  %4605 = vmatprep.mubr.msk.bf16.mxu1 %vm2265_vm14, %v6232_v5  ;;  %v3967_v21 = vld [vmem:[%s6297_s20 + $0x58] sm:$0xff] }
 0x3e0   : >> { %3733 = vrot.lane.b32.xlu0 %v5810_v37, %s4987_s7  ;;  %3735 = vrot.lane.b32.xlu1 %v5817_v41, %s4987_s7 }
 0x3e1   : >> { %3187 = vmatpush1.bf16.msra.mxu0 %v3150_v19 }
 0x3e2   : >> { %v3124_v31 = vpop.permute.xlu0 %3123  ;;  %v3120_v32 = vpop.permute.xlu1 %3119 }
 0x3e3   : >> { %v3152_v20 = vsel %vm1316_vm7, %v3120_v32, %v3122_v26  ;;  %4595 = vmatprep.subr.bf16.mxu1 %v3124_v31  ;;  %v3153_v23 = vsel %vm1316_vm7, %v3122_v26, %v3124_v31 }
 0x3e4   : >> { %3731 = vrot.lane.b32.xlu0 %v5823_v44, %s4987_s7  ;;  %3739 = vrot.lane.b32.xlu1 %v5829_v47, %s4987_s7 }
 0x3e5   : >> { %3188 = vmatprep.subr.bf16.mxu0 %v3153_v23  ;;  %4596 = vmatpush3.bf16.msra.mxu1 %v3124_v31  ;;  %v3966_v31 = vld [vmem:[%s6297_s20 + $0x50] sm:$0xff] }
 0x3e6   : >> { %3189 = vmatpush1.bf16.msra.mxu0 %v3152_v20  ;;  %v3128_v37 = vpop.permute.xlu0 %3127  ;;  %v3130_v24 = vpop.permute.xlu1 %3129 }
 0x3e7   : >> { %4597 = vmatprep.subr.bf16.mxu1 %v3130_v24  ;;  %v3155_v41 = vsel %vm1316_vm7, %v3128_v37, %v3130_v24  ;;  %4279 = vmatmul.mubr.msk.bf16.gmra.mrb[4].mxu0 %vm2265_vm14, %v4935_v4 }
 0x3e8   : >> { %3741 = vrot.lane.b32.xlu0 %v5833_v49, %s4987_s7  ;;  %3737 = vrot.lane.b32.xlu1 %v5837_v50, %s4987_s7 }
 0x3e9   : >> { %3190 = vmatprep.subr.bf16.mxu0 %v3155_v41  ;;  %4598 = vmatpush3.bf16.msra.mxu1 %v3130_v24 }
 0x3ea   : >> { %v3126_v44 = vpop.permute.xlu0 %3125  ;;  %v3134_v47 = vpop.permute.xlu1 %3133  ;;  %3218 = vmatprep.mubr.bf16.mxu0 %v4980_v62 }
 0x3eb   : >> { %v3154_v27 = vsel %vm1316_vm7, %v3126_v44, %v3128_v37 }
 0x3ec   : >> { %3745 = vrot.lane.b32.xlu0 %v5845_v54, %s4987_s7  ;;  %3747 = vrot.lane.b32.xlu1 %v5849_v55, %s4987_s7 }
 0x3ed   : >> { %3191 = vmatpush1.bf16.msra.mxu0 %v3154_v27  ;;  %v4939_v27 = vld [vmem:[%s6454_s3 + $0x68] sm:$0xff]  }
 0x3ee   : >> { %v3136_v28 = vpop.permute.xlu0 %3135  ;;  %v3132_v49 = vpop.permute.xlu1 %3131 }
 0x3ef   : >> { %v3156_v50 = vsel %vm1316_vm7, %v3132_v49, %v3134_v47  ;;  %4599 = vmatprep.subr.bf16.mxu1 %v3136_v28  ;;  %v3157_v29 = vsel %vm1316_vm7, %v3134_v47, %v3136_v28 }
 0x3f0   : >> { %3743 = vrot.lane.b32.xlu0 %v5862_v61, %s4987_s7  ;;  %3751 = vrot.lane.b32.xlu1 %v5867_v63, %s4987_s7 }
 0x3f1   : >> { %3192 = vmatprep.subr.bf16.mxu0 %v3157_v29  ;;  %4600 = vmatpush3.bf16.msra.mxu1 %v3136_v28  ;;  %v6347_v28 = vld [vmem:[%s6454_s3 + $0x70] sm:$0xff]  }
 0x3f2   : >> { %3193 = vmatpush1.bf16.msra.mxu0 %v3156_v50  ;;  %v3140_v54 = vpop.permute.xlu0 %3139  ;;  %v3142_v55 = vpop.permute.xlu1 %3141 }
 0x3f3   : >> { %4601 = vmatprep.subr.bf16.mxu1 %v3142_v55  ;;  %v3159_v30 = vsel %vm1316_vm7, %v3140_v54, %v3142_v55 }
 0x3f4   : >> { %3753 = vrot.lane.b32.xlu0 %v5879_v13, %s4987_s7  ;;  %3749 = vrot.lane.b32.xlu1 %v5883_v14, %s4987_s7 }
 0x3f5   : >> { %3194 = vmatprep.subr.bf16.mxu0 %v3159_v30  ;;  %4602 = vmatpush3.bf16.msra.mxu1 %v3142_v55 }
 0x3f6   : >> { %v3138_v61 = vpop.permute.xlu0 %3137  ;;  %v3146_v63 = vpop.permute.xlu1 %3145 }
 0x3f7   : >> { %v3158_v33 = vsel %vm1316_vm7, %v3138_v61, %v3140_v54 }
 0x3f8   : >> { %3195 = vmatpush1.bf16.msra.mxu0 %v3158_v33  ;;  %3908 = vperm.xlu0 %4924, %v5209_v6  }
 0x3f9   : >> { %3913 = vperm.xlu1 %4925, %v5220_v7  }
 0x3fa   : >> { %v3148_v34 = vpop.permute.xlu0 %3147  ;;  %v3144_v13 = vpop.permute.xlu1 %3143 }
 0x3fb   : >> { %v3160_v22 = vsel %vm1316_vm7, %v3144_v13, %v3146_v63  ;;  %4603 = vmatprep.subr.bf16.mxu1 %v3148_v34  ;;  %v3161_v14 = vsel %vm1316_vm7, %v3146_v63, %v3148_v34 }
 0x3fc   : >> { %3196 = vmatprep.subr.bf16.mxu0 %v3161_v14  ;;  %4604 = vmatpush3.bf16.msra.mxu1 %v3148_v34 }
 0x3fd   : >> { %3197 = vmatpush1.bf16.msra.mxu0 %v3160_v22  ;;  %3923 = vperm.xlu0 %4924, %v5230_v9  }
 0x3fe   : >> { %v3318_v38 = vpop.permute.xlu0 %3317  ;;  %v3320_v39 = vpop.permute.xlu1 %3319  ;;  %3918 = vperm.xlu1 %4925, %v5225_v8  }
 0x3ff   : >> { %4609 = vmatprep.subr.bf16.mxu1 %v3320_v39  ;;  %4606 = vmatmul.mubr.msk.bf16.vlgmr.msra.gmra.mrb[0].mxu1 %vm2265_vm14, %v4937_v35  ;;  %v3353_v40 = vsel %vm1480_vm8, %v3318_v38, %v3320_v39 }
 0x400   : >> { %3388 = vmatprep.subr.bf16.mxu0 %v3353_v40  ;;  %4610 = vmatpush3.bf16.msra.mxu1 %v3320_v39 }
 0x401   : >> { %4288 = vmatmul.mubr.msk.bf16.vlgmr.msra.gmra.mrb[0].mxu0 %vm2265_vm14, %v6232_v5  ;;  %4621 = vmatprep.mubr.msk.bf16.mxu1 %vm2265_vm14, %v6291_v36 }
 0x402   : >> { %v3316_v45 = vpop.permute.xlu0 %3315  ;;  %v3324_v46 = vpop.permute.xlu1 %3323  ;;  %3228 = vmatprep.mubr.bf16.mxu0 %v4980_v62  ;;  %3982 = vrot.lane.b32.xlu0 %v3957_v42, %s4983_s30 }
 0x403   : >> { %v3352_v48 = vsel %vm1480_vm8, %v3316_v45, %v3318_v38  ;;  %3980 = vrot.lane.b32.xlu1 %v3956_v43, %s4983_s30 }
 0x404   : >> { %3389 = vmatpush1.bf16.msra.mxu0 %v3352_v48 }
 0x406   : >> { %v3326_v51 = vpop.permute.xlu0 %3325  ;;  %v3322_v56 = vpop.permute.xlu1 %3321  ;;  %3986 = vrot.lane.b32.xlu0 %v3959_v52, %s4983_s30 }
 0x407   : >> { %v3354_v57 = vsel %vm1480_vm8, %v3322_v56, %v3324_v46  ;;  %4611 = vmatprep.subr.bf16.mxu1 %v3326_v51  ;;  %v3355_v58 = vsel %vm1480_vm8, %v3324_v46, %v3326_v51  ;;  %3984 = vrot.lane.b32.xlu1 %v3958_v53, %s4983_s30 }
 0x408   : >> { %3390 = vmatprep.subr.bf16.mxu0 %v3355_v58  ;;  %4612 = vmatpush3.bf16.msra.mxu1 %v3326_v51 }
 0x409   : >> { %3391 = vmatpush1.bf16.msra.mxu0 %v3354_v57 }
 0x40a   : >> { %v3330_v60 = vpop.permute.xlu0 %3329  ;;  %v3332_v3 = vpop.permute.xlu1 %3331  ;;  %4289 = vmatmul.mubr.msk.bf16.gmra.mrb[4].mxu0 %vm2265_vm14, %v4937_v35  ;;  %3990 = vrot.lane.b32.xlu0 %v3961_v59, %s4983_s30 }
 0x40b   : >> { %4613 = vmatprep.subr.bf16.mxu1 %v3332_v3  ;;  %v3357_v11 = vsel %vm1480_vm8, %v3330_v60, %v3332_v3  ;;  %3420 = vmatprep.mubr.bf16.mxu0 %v4980_v62 }
 0x40c   : >> { %3392 = vmatprep.subr.bf16.mxu0 %v3357_v11  ;;  %4614 = vmatpush3.bf16.msra.mxu1 %v3332_v3  ;;  %v6375_v3 = vld [vmem:[%s6454_s3 + $0x80] sm:$0xff]  }
 0x40d   : >> { %3988 = vrot.lane.b32.xlu1 %v3960_v10, %s4983_s30 }
 0x40e   : >> { %v3328_v15 = vpop.permute.xlu0 %3327  ;;  %v3336_v16 = vpop.permute.xlu1 %3335  ;;  %3994 = vrot.lane.b32.xlu0 %v3963_v12, %s4983_s30 }
 0x40f   : >> { %v3356_v18 = vsel %vm1480_vm8, %v3328_v15, %v3330_v60  ;;  %v4941_v60 = vld [vmem:[%s6454_s3 + $0x78] sm:$0xff]  }
 0x410   : >> { %3393 = vmatpush1.bf16.msra.mxu0 %v3356_v18 }
 0x411   : >> { %3992 = vrot.lane.b32.xlu1 %v3962_v17, %s4983_s30 }
 0x412   : >> { %v3338_v4 = vpop.permute.xlu0 %3337  ;;  %v3334_v25 = vpop.permute.xlu1 %3333  ;;  %3998 = vrot.lane.b32.xlu0 %v3965_v0, %s4983_s30 }
 0x413   : >> { %v3358_v2 = vsel %vm1480_vm8, %v3334_v25, %v3336_v16  ;;  %4615 = vmatprep.subr.bf16.mxu1 %v3338_v4  ;;  %v3359_v5 = vsel %vm1480_vm8, %v3336_v16, %v3338_v4 }
 0x414   : >> { %3394 = vmatprep.subr.bf16.mxu0 %v3359_v5  ;;  %4616 = vmatpush3.bf16.msra.mxu1 %v3338_v4 }
 0x415   : >> { %3395 = vmatpush1.bf16.msra.mxu0 %v3358_v2  ;;  %3996 = vrot.lane.b32.xlu1 %v3964_v1, %s4983_s30 }
 0x416   : >> { %v3342_v26 = vpop.permute.xlu0 %3341  ;;  %v3344_v19 = vpop.permute.xlu1 %3343  ;;  %4002 = vrot.lane.b32.xlu0 %v3967_v21, %s4983_s30 }
 0x417   : >> { %4617 = vmatprep.subr.bf16.mxu1 %v3344_v19  ;;  %v3361_v32 = vsel %vm1480_vm8, %v3342_v26, %v3344_v19 }
 0x418   : >> { %3396 = vmatprep.subr.bf16.mxu0 %v3361_v32  ;;  %4618 = vmatpush3.bf16.msra.mxu1 %v3344_v19 }
 0x419   : >> { %4000 = vrot.lane.b32.xlu1 %v3966_v31, %s4983_s30 }
 0x41a   : >> { %v3340_v20 = vpop.permute.xlu0 %3339  ;;  %v3348_v23 = vpop.permute.xlu1 %3347 }
 0x41b   : >> { %v3360_v37 = vsel %vm1480_vm8, %v3340_v20, %v3342_v26 }
 0x41c   : >> { %3397 = vmatpush1.bf16.msra.mxu0 %v3360_v37 }
 0x41e   : >> { %v3350_v24 = vpop.permute.xlu0 %3349  ;;  %v3346_v41 = vpop.permute.xlu1 %3345 }
 0x41f   : >> { %v3362_v44 = vsel %vm1480_vm8, %v3346_v41, %v3348_v23  ;;  %4619 = vmatprep.subr.bf16.mxu1 %v3350_v24  ;;  %v3363_v47 = vsel %vm1480_vm8, %v3348_v23, %v3350_v24 }
 0x420   : >> { %3398 = vmatprep.subr.bf16.mxu0 %v3363_v47  ;;  %4620 = vmatpush3.bf16.msra.mxu1 %v3350_v24 }
 0x421   : >> { %3399 = vmatpush1.bf16.msra.mxu0 %v3362_v44 }
 0x422   : >> { %v3520_v49 = vpop.permute.xlu0 %3519  ;;  %v3522_v50 = vpop.permute.xlu1 %3521 }
 0x423   : >> { %4625 = vmatprep.subr.bf16.mxu1 %v3522_v50  ;;  %4622 = vmatmul.mubr.msk.bf16.vlgmr.msra.gmra.mrb[0].mxu1 %vm2265_vm14, %v4939_v27  ;;  %v3555_v29 = vsel %vm1644_vm9, %v3520_v49, %v3522_v50 }
 0x424   : >> { %3590 = vmatprep.subr.bf16.mxu0 %v3555_v29  ;;  %4626 = vmatpush3.bf16.msra.mxu1 %v3522_v50 }
 0x425   : >> { %4298 = vmatmul.mubr.msk.bf16.vlgmr.msra.gmra.mrb[0].mxu0 %vm2265_vm14, %v6291_v36  ;;  %4637 = vmatprep.mubr.msk.bf16.mxu1 %vm2265_vm14, %v6347_v28 }
 0x426   : >> { %v3518_v54 = vpop.permute.xlu0 %3517  ;;  %v3526_v55 = vpop.permute.xlu1 %3525  ;;  %3430 = vmatprep.mubr.bf16.mxu0 %v4980_v62 }
 0x427   : >> { %v3554_v30 = vsel %vm1644_vm9, %v3518_v54, %v3520_v49  ;;  %v4943_v54 = vld [vmem:[%s6454_s3 + $0x88] sm:$0xff]  }
 0x428   : >> { %3591 = vmatpush1.bf16.msra.mxu0 %v3554_v30 }
 0x42a   : >> { %v3528_v61 = vpop.permute.xlu0 %3527  ;;  %v3524_v63 = vpop.permute.xlu1 %3523 }
 0x42b   : >> { %v3556_v33 = vsel %vm1644_vm9, %v3524_v63, %v3526_v55  ;;  %4627 = vmatprep.subr.bf16.mxu1 %v3528_v61  ;;  %v3557_v34 = vsel %vm1644_vm9, %v3526_v55, %v3528_v61 }
 0x42c   : >> { %3592 = vmatprep.subr.bf16.mxu0 %v3557_v34  ;;  %4628 = vmatpush3.bf16.msra.mxu1 %v3528_v61 }
 0x42d   : >> { %3593 = vmatpush1.bf16.msra.mxu0 %v3556_v33 }
 0x42e   : >> { %v3532_v13 = vpop.permute.xlu0 %3531  ;;  %v3534_v22 = vpop.permute.xlu1 %3533  ;;  %4299 = vmatmul.mubr.msk.bf16.gmra.mrb[4].mxu0 %vm2265_vm14, %v4939_v27 }
 0x42f   : >> { %4629 = vmatprep.subr.bf16.mxu1 %v3534_v22  ;;  %v3559_v14 = vsel %vm1644_vm9, %v3532_v13, %v3534_v22  ;;  %3622 = vmatprep.mubr.bf16.mxu0 %v4980_v62 }
 0x430   : >> { %3594 = vmatprep.subr.bf16.mxu0 %v3559_v14  ;;  %4630 = vmatpush3.bf16.msra.mxu1 %v3534_v22 }
 0x432   : >> { %v3530_v35 = vpop.permute.xlu0 %3529  ;;  %v3538_v36 = vpop.permute.xlu1 %3537 }
 0x433   : >> { %v3558_v38 = vsel %vm1644_vm9, %v3530_v35, %v3532_v13 }
 0x434   : >> { %3595 = vmatpush1.bf16.msra.mxu0 %v3558_v38 }
 0x436   : >> { %v3540_v39 = vpop.permute.xlu0 %3539  ;;  %v3536_v40 = vpop.permute.xlu1 %3535 }
 0x437   : >> { %v3560_v42 = vsel %vm1644_vm9, %v3536_v40, %v3538_v36  ;;  %4631 = vmatprep.subr.bf16.mxu1 %v3540_v39  ;;  %v3561_v43 = vsel %vm1644_vm9, %v3538_v36, %v3540_v39 }
 0x438   : >> { %3596 = vmatprep.subr.bf16.mxu0 %v3561_v43  ;;  %4632 = vmatpush3.bf16.msra.mxu1 %v3540_v39 }
 0x439   : >> { %3597 = vmatpush1.bf16.msra.mxu0 %v3560_v42 }
 0x43a   : >> { %v3544_v45 = vpop.permute.xlu0 %3543  ;;  %v3546_v46 = vpop.permute.xlu1 %3545 }
 0x43b   : >> { %4633 = vmatprep.subr.bf16.mxu1 %v3546_v46  ;;  %v3563_v48 = vsel %vm1644_vm9, %v3544_v45, %v3546_v46 }
 0x43c   : >> { %3598 = vmatprep.subr.bf16.mxu0 %v3563_v48  ;;  %4634 = vmatpush3.bf16.msra.mxu1 %v3546_v46 }
 0x43e   : >> { %v3542_v52 = vpop.permute.xlu0 %3541  ;;  %v3550_v53 = vpop.permute.xlu1 %3549 }
 0x43f   : >> { %v3562_v51 = vsel %vm1644_vm9, %v3542_v52, %v3544_v45 }
 0x440   : >> { %3599 = vmatpush1.bf16.msra.mxu0 %v3562_v51 }
 0x442   : >> { %v3552_v56 = vpop.permute.xlu0 %3551  ;;  %v3548_v57 = vpop.permute.xlu1 %3547 }
 0x443   : >> { %v3564_v58 = vsel %vm1644_vm9, %v3548_v57, %v3550_v53  ;;  %4635 = vmatprep.subr.bf16.mxu1 %v3552_v56  ;;  %v3565_v59 = vsel %vm1644_vm9, %v3550_v53, %v3552_v56 }
 0x444   : >> { %3600 = vmatprep.subr.bf16.mxu0 %v3565_v59  ;;  %4636 = vmatpush3.bf16.msra.mxu1 %v3552_v56 }
 0x445   : >> { %3601 = vmatpush1.bf16.msra.mxu0 %v3564_v58 }
 0x446   : >> { %v3722_v10 = vpop.permute.xlu0 %3721  ;;  %v3724_v11 = vpop.permute.xlu1 %3723 }
 0x447   : >> { %4641 = vmatprep.subr.bf16.mxu1 %v3724_v11  ;;  %4638 = vmatmul.mubr.msk.bf16.vlgmr.msra.gmra.mrb[0].mxu1 %vm2265_vm14, %v4941_v60  ;;  %v3757_v12 = vsel %vm1808_vm10, %v3722_v10, %v3724_v11 }
 0x448   : >> { %3792 = vmatprep.subr.bf16.mxu0 %v3757_v12  ;;  %4642 = vmatpush3.bf16.msra.mxu1 %v3724_v11 }
 0x449   : >> { %4308 = vmatmul.mubr.msk.bf16.vlgmr.msra.gmra.mrb[0].mxu0 %vm2265_vm14, %v6347_v28  ;;  %4653 = vmatprep.mubr.msk.bf16.mxu1 %vm2265_vm14, %v6375_v3 }
 0x44a   : >> { %v3720_v15 = vpop.permute.xlu0 %3719  ;;  %v3728_v16 = vpop.permute.xlu1 %3727  ;;  %3632 = vmatprep.mubr.bf16.mxu0 %v4980_v62 }
 0x44b   : >> { %v3756_v17 = vsel %vm1808_vm10, %v3720_v15, %v3722_v10 }
 0x44c   : >> { %3793 = vmatpush1.bf16.msra.mxu0 %v3756_v17 }
 0x44e   : >> { %v3730_v18 = vpop.permute.xlu0 %3729  ;;  %v3726_v0 = vpop.permute.xlu1 %3725 }
 0x44f   : >> { %v3758_v4 = vsel %vm1808_vm10, %v3726_v0, %v3728_v16  ;;  %4643 = vmatprep.subr.bf16.mxu1 %v3730_v18  ;;  %v3759_v25 = vsel %vm1808_vm10, %v3728_v16, %v3730_v18 }
 0x450   : >> { %3794 = vmatprep.subr.bf16.mxu0 %v3759_v25  ;;  %4644 = vmatpush3.bf16.msra.mxu1 %v3730_v18 }
 0x451   : >> { %3795 = vmatpush1.bf16.msra.mxu0 %v3758_v4 }
 0x452   : >> { %v3734_v1 = vpop.permute.xlu0 %3733  ;;  %v3736_v2 = vpop.permute.xlu1 %3735  ;;  %4309 = vmatmul.mubr.msk.bf16.gmra.mrb[4].mxu0 %vm2265_vm14, %v4941_v60 }
 0x453   : >> { %4645 = vmatprep.subr.bf16.mxu1 %v3736_v2  ;;  %v3761_v5 = vsel %vm1808_vm10, %v3734_v1, %v3736_v2  ;;  %3824 = vmatprep.mubr.bf16.mxu0 %v4980_v62 }
 0x454   : >> { %3796 = vmatprep.subr.bf16.mxu0 %v3761_v5  ;;  %4646 = vmatpush3.bf16.msra.mxu1 %v3736_v2 }
 0x456   : >> { %v3732_v21 = vpop.permute.xlu0 %3731  ;;  %v3740_v26 = vpop.permute.xlu1 %3739 }
 0x457   : >> { %v3760_v19 = vsel %vm1808_vm10, %v3732_v21, %v3734_v1 }
 0x458   : >> { %3797 = vmatpush1.bf16.msra.mxu0 %v3760_v19 }
 0x45a   : >> { %v3742_v31 = vpop.permute.xlu0 %3741  ;;  %v3738_v32 = vpop.permute.xlu1 %3737 }
 0x45b   : >> { %v3762_v20 = vsel %vm1808_vm10, %v3738_v32, %v3740_v26  ;;  %4647 = vmatprep.subr.bf16.mxu1 %v3742_v31  ;;  %v3763_v23 = vsel %vm1808_vm10, %v3740_v26, %v3742_v31 }
 0x45c   : >> { %3798 = vmatprep.subr.bf16.mxu0 %v3763_v23  ;;  %4648 = vmatpush3.bf16.msra.mxu1 %v3742_v31 }
 0x45d   : >> { %3799 = vmatpush1.bf16.msra.mxu0 %v3762_v20 }
 0x45e   : >> { %v3746_v37 = vpop.permute.xlu0 %3745  ;;  %v3748_v24 = vpop.permute.xlu1 %3747 }
 0x45f   : >> { %4649 = vmatprep.subr.bf16.mxu1 %v3748_v24  ;;  %v3765_v41 = vsel %vm1808_vm10, %v3746_v37, %v3748_v24 }
 0x460   : >> { %3800 = vmatprep.subr.bf16.mxu0 %v3765_v41  ;;  %4650 = vmatpush3.bf16.msra.mxu1 %v3748_v24 }
 0x462   : >> { %v3744_v44 = vpop.permute.xlu0 %3743  ;;  %v3752_v47 = vpop.permute.xlu1 %3751 }
 0x463   : >> { %v3764_v27 = vsel %vm1808_vm10, %v3744_v44, %v3746_v37 }
 0x464   : >> { %3801 = vmatpush1.bf16.msra.mxu0 %v3764_v27 }
 0x466   : >> { %v3754_v28 = vpop.permute.xlu0 %3753  ;;  %v3750_v49 = vpop.permute.xlu1 %3749 }
 0x467   : >> { %v3766_v50 = vsel %vm1808_vm10, %v3750_v49, %v3752_v47  ;;  %4651 = vmatprep.subr.bf16.mxu1 %v3754_v28  ;;  %v3767_v29 = vsel %vm1808_vm10, %v3752_v47, %v3754_v28 }
 0x468   : >> { %3802 = vmatprep.subr.bf16.mxu0 %v3767_v29  ;;  %4652 = vmatpush3.bf16.msra.mxu1 %v3754_v28 }
 0x469   : >> { %3803 = vmatpush1.bf16.msra.mxu0 %v3766_v50 }
 0x46b   : >> { %4654 = vmatmul.mubr.msk.bf16.vlgmr.msra.gmra.mrb[0].mxu1 %vm2265_vm14, %v4943_v54 }
 0x46c   : >> { %4318 = vmatmul.mubr.msk.bf16.vlgmr.msra.gmra.mrb[0].mxu0 %vm2265_vm14, %v6375_v3 }
 0x46d   : >> { %3834 = vmatprep.mubr.bf16.mxu0 %v4980_v62 }
 0x474   : >> { %4319 = vmatmul.mubr.msk.bf16.gmra.mrb[4].mxu0 %vm2265_vm14, %v4943_v54 }
 0x477   : >> { %v3909_v55 = vpop.permute.xlu0 %3908 }
 0x478   : >> { %v3914_v30 = vpop.permute.xlu1 %3913 }
 0x47c   : >> { %v6405_v61 = vpop.permute.xlu0 %3923 }
 0x47d   : >> { %v3919_v63 = vpop.permute.xlu1 %3918 }
 0x480   : >> { %v3983_v33 = vpop.permute.xlu0 %3982 }
 0x481   : >> { %v3981_v34 = vpop.permute.xlu1 %3980 }
 0x482   : >> { %v4005_v46 = vsel %vm1152_vm6, %v3981_v34, %v3983_v33 }
 0x484   : >> { %v3987_v13 = vpop.permute.xlu0 %3986 }
 0x485   : >> { %v3985_v22 = vpop.permute.xlu1 %3984 }
 0x486   : >> { %v4006_v48 = vsel %vm1152_vm6, %v3983_v33, %v3985_v22 }
 0x488   : >> { %v3991_v14 = vpop.permute.xlu0 %3990 }
 0x489   : >> { %v3989_v35 = vpop.permute.xlu1 %3988 }
 0x48a   : >> { %v4007_v26 = vsel %vm1152_vm6, %v3987_v13, %v3989_v35  ;;  %v4008_v20 = vsel %vm1152_vm6, %v3989_v35, %v3991_v14 }
 0x48c   : >> { %v6407_v36 = vpop.permute.xlu0 %3994 }
 0x48d   : >> { %v3993_v38 = vpop.permute.xlu1 %3992 }
 0x490   : >> { %v6409_v39 = vpop.permute.xlu0 %3998 }
 0x491   : >> { %v3997_v40 = vpop.permute.xlu1 %3996 }
 0x492   : >> { %v4010_v34 = vsel %vm1152_vm6, %v6407_v36, %v3997_v40 }
 0x494   : >> { %v4003_v17 = vpop.permute.xlu0 %4002 }
 0x495   : >> { %v4001_v29 = vpop.permute.xlu1 %4000 }
 0x496   : >> { %v4011_v35 = vsel %vm1152_vm6, %v6409_v39, %v4001_v29 }
 0x53e   : >> { %v4655_v62 = vpop.f32.mrb[0].mxu1 }
 0x53f   : >> { %v3934_v42 = vadd.f32 %v4655_v62, %v3919_v63  ;;  %v3826_v43 = vpop.f32.mrb[0].mxu0  ;;  %v3879_v45 = vpop.f32.mrb[1].mxu1 }
 0x540   : >> { %v3926_v52 = vadd.f32 %v3909_v55, %v3826_v43  ;;  %v3928_v53 = vadd.f32 %v3909_v55, %v3879_v45  ;;  %v3828_v51 = vpop.f32.mrb[1].mxu0  ;;  %v4656_v56 = vpop.f32.mrb[2].mxu1 }
 0x541   : >> { %v3946_v57 = vmax.f32 %v3934_v42, 0.0  ;;  %v3927_v58 = vadd.f32 %v3909_v55, %v3828_v51  ;;  %v3937_v59 = vadd.f32 %v4656_v56, %v6405_v61  ;;  %v3830_v60 = vpop.f32.mrb[2].mxu0  ;;  %v3882_v3 = vpop.f32.mrb[3].mxu1  ;;  %v4009_v55 = vsel %vm1152_vm6, %v3993_v38, %v6407_v36 }
 0x542   : >> { %v3938_v10 = vmax.f32 %v3926_v52, 0.0  ;;  %v3940_v11 = vmax.f32 %v3928_v53, 0.0  ;;  %v3929_v12 = vadd.f32 %v3914_v30, %v3830_v60  ;;  %v3931_v15 = vadd.f32 %v3914_v30, %v3882_v3  ;;  %v3832_v16 = vpop.f32.mrb[3].mxu0 }
 0x543   : >> { %v3939_v18 = vmax.f32 %v3927_v58, 0.0  ;;  %v3949_v0 = vmax.f32 %v3937_v59, 0.0  ;;  %v3930_v4 = vadd.f32 %v3914_v30, %v3832_v16  ;;  %v4033_v25 = vadd.f32 %v3997_v40, %v3946_v57 }
 0x544   : >> { %v4025_v1 = vadd.f32 %v4005_v46, %v3938_v10  ;;  %v4027_v2 = vadd.f32 %v3985_v22, %v3940_v11  ;;  %v3941_v5 = vmax.f32 %v3929_v12, 0.0  ;;  %v3943_v21 = vmax.f32 %v3931_v15, 0.0 }
 0x545   : >> { %v4026_v19 = vadd.f32 %v4006_v48, %v3939_v18  ;;  %v3942_v31 = vmax.f32 %v3930_v4, 0.0  ;;  %4049 = vst.msk [vmem:[%s6416_s10 + $0x40] sm:$0xff] %vm4042_vm15, %v4033_v25  ;;  %v4036_v32 = vadd.f32 %v4003_v17, %v3949_v0  ;;  %v4012_v22 = vsel %vm1152_vm6, %v4001_v29, %v4003_v17 }
 0x546   : >> { %4040 = vst [vmem:[%s6416_s10] sm:$0xff] %v4025_v1  ;;  %4043 = vst.msk [vmem:[%s6416_s10 + $0x10] sm:$0xff] %vm4042_vm15, %v4027_v2  ;;  %v4028_v23 = vadd.f32 %v4007_v26, %v3941_v5  ;;  %v4030_v37 = vadd.f32 %v3991_v14, %v3943_v21 }
 0x547   : >> { %4041 = vst [vmem:[%s6416_s10 + $0x8] sm:$0xff] %v4026_v19  ;;  %v4029_v24 = vadd.f32 %v4008_v20, %v3942_v31  ;;  %4052 = vst.msk [vmem:[%s6416_s10 + $0x58] sm:$0xff] %vm4042_vm15, %v4036_v32  ;;  %v3836_v41 = vpop.f32.mrb[4].mxu0 }
 0x548   : >> { %4044 = vst [vmem:[%s6416_s10 + $0x18] sm:$0xff] %v4028_v23  ;;  %4046 = vst.msk [vmem:[%s6416_s10 + $0x28] sm:$0xff] %vm4042_vm15, %v4030_v37  ;;  %v3932_v44 = vadd.f32 %v3919_v63, %v3836_v41  ;;  %v3838_v47 = vpop.f32.mrb[5].mxu0 }
 0x549   : >> { %4045 = vst [vmem:[%s6416_s10 + $0x20] sm:$0xff] %v4029_v24  ;;  %v3933_v27 = vadd.f32 %v3919_v63, %v3838_v47  ;;  %v3840_v28 = vpop.f32.mrb[6].mxu0 }
 0x54a   : >> { %v3944_v49 = vmax.f32 %v3932_v44, 0.0  ;;  %v3935_v50 = vadd.f32 %v6405_v61, %v3840_v28  ;;  %v3842_v54 = vpop.f32.mrb[7].mxu0 }
 0x54b   : >> { %v3945_v30 = vmax.f32 %v3933_v27, 0.0  ;;  %v3936_v33 = vadd.f32 %v6405_v61, %v3842_v54  ;;  %2099 = sbr.rel (!%p2097_p5) target bundleno = 718 (0x2ce), region = 120 }
 0x54c   : >> { %v4031_v63 = vadd.f32 %v4009_v55, %v3944_v49  ;;  %v3947_v13 = vmax.f32 %v3935_v50, 0.0 }
 0x54d   : >> { %v4032_v14 = vadd.f32 %v4010_v34, %v3945_v30  ;;  %v3948_v62 = vmax.f32 %v3936_v33, 0.0 }
 0x54e   : >> { %4047 = vst [vmem:[%s6416_s10 + $0x30] sm:$0xff] %v4031_v63  ;;  %v4034_v42 = vadd.f32 %v4011_v35, %v3947_v13 }
 0x54f   : >> { %4048 = vst [vmem:[%s6416_s10 + $0x38] sm:$0xff] %v4032_v14  ;;  %v4035_v43 = vadd.f32 %v4012_v22, %v3948_v62 }
 0x550   : >> { %4050 = vst [vmem:[%s6416_s10 + $0x48] sm:$0xff] %v4034_v42 }
 0x551   : >> { %4051 = vst [vmem:[%s6416_s10 + $0x50] sm:$0xff] %v4035_v43 }
 0x552 PF: > { %s16_s21 = sadd.s32 1, %s4958_s21  }
 0x553   : > { %p13_p6 = scmp.ge.s32.totalorder %s16_s21, 4  }
 0x555   :  { %15 = sbr.rel (!%p13_p6) target bundleno = 1 (0x1), region = 131 }

</bundles_post_ra>
